<compile_context>
chip_gen: v7x
topology: tpu7x:2x2x1
jax: 0.10.0
libtpu: 0.0.40
codegen_flags: <defaults>
</compile_context>

<pallas_src>
import functools

import jax
import jax.numpy as jnp
from jax import lax
from jax.experimental import pallas as pl
from jax.experimental.pallas import tpu as pltpu

_BATCH_PAD = 8  # sublane width


# ------------------------------- Pallas kernel -------------------------------


def _fused_lstm_fc_kernel(num_layers, seq_len, *refs):
    # refs layout:
    #   x_ref                      (T*Bp, D)     time-major, batch padded to Bp
    #   per layer l: wih_ref       (D_l, 4H)
    #                whh_ref       (H, 4H)
    #                b_ref         (1, 4H)       b_ih + b_hh
    #   wfc_ref                    (H, O)
    #   bfc_ref                    (1, O)
    #   out_ref                    (Bp, O)
    #   seq_scr (scratch, VMEM)    (T*Bp, H)     inter-layer hidden sequence
    #   z_scr   (scratch, VMEM)    (T*Bp, 4H)    hoisted input projection
    x_ref = refs[0]
    layer_refs = [tuple(refs[1 + 3 * l: 4 + 3 * l]) for l in range(num_layers)]
    wfc_ref = refs[1 + 3 * num_layers]
    bfc_ref = refs[2 + 3 * num_layers]
    out_ref = refs[3 + 3 * num_layers]
    seq_scr = refs[4 + 3 * num_layers]
    z_scr = refs[5 + 3 * num_layers]

    T = seq_len
    Bp, O = out_ref.shape
    H = seq_scr.shape[1]

    cur_2d = x_ref[...]  # (T*Bp, D) — layer-0 input for the hoisted projection
    h_last = None
    for l, (wih_ref, whh_ref, b_ref) in enumerate(layer_refs):
        # Hoisted input projection for ALL timesteps: one MXU push of Wih + bias add.
        z_scr[...] = (
            jnp.dot(cur_2d, wih_ref[...], preferred_element_type=jnp.float32)
            + b_ref[...]
        )

        last_layer = l == num_layers - 1
        h = jnp.zeros((Bp, H), jnp.float32)
        c = jnp.zeros((Bp, H), jnp.float32)

        # T is small & static -> fully unrolled recurrence with static, aligned slices.
        for t in range(T):
            z = z_scr[pl.ds(t * Bp, Bp), :] + jnp.dot(
                h, whh_ref[...], preferred_element_type=jnp.float32
            )  # (Bp, 4H)
            if_g = jax.nn.sigmoid(z[:, : 2 * H])      # fused [i, f] sigmoid
            i_g = if_g[:, :H]
            f_g = if_g[:, H:]
            g_g = jnp.tanh(z[:, 2 * H: 3 * H])
            o_g = jax.nn.sigmoid(z[:, 3 * H:])
            c = f_g * c + i_g * g_g
            h = o_g * jnp.tanh(c)
            if not last_layer:
                seq_scr[pl.ds(t * Bp, Bp), :] = h     # keep sequence in VMEM only

        if not last_layer:
            cur_2d = seq_scr[...]  # (T*Bp, H) input to next layer's hoisted projection
        h_last = h

    # FC head + ReLU on every 4th output column (== out[:, :, 3] after reshape).
    y = jnp.dot(h_last, wfc_ref[...], preferred_element_type=jnp.float32) + bfc_ref[...]
    col = lax.broadcasted_iota(jnp.int32, (Bp, O), 1)
    out_ref[...] = jnp.where((col % 4) == 3, jnp.maximum(y, 0.0), y)


# ------------------------------- host wrapper --------------------------------


def _full_spec(shape):
    ndim = len(shape)
    return pl.BlockSpec(shape, lambda *a, _n=ndim: (0,) * _n)


def _fused_forward(x_btd, layer_params, w_fc_t, b_fc_row, *, hidden_size, output_size):
    B, T, D = x_btd.shape
    H = hidden_size
    O = output_size
    Bp = _BATCH_PAD

    # Pad batch to the sublane width and go time-major as a flat (T*Bp, D) slab.
    xp = jnp.zeros((Bp, T, D), jnp.float32).at[:B].set(x_btd)
    x2d = jnp.transpose(xp, (1, 0, 2)).reshape(T * Bp, D)

    args = [x2d]
    in_specs = [_full_spec((T * Bp, D))]
    for wih_t, whh_t, b_row in layer_params:
        args += [wih_t, whh_t, b_row]
        in_specs += [
            _full_spec(wih_t.shape),
            _full_spec(whh_t.shape),
            _full_spec(b_row.shape),
        ]
    args += [w_fc_t, b_fc_row]
    in_specs += [_full_spec(w_fc_t.shape), _full_spec(b_fc_row.shape)]

    kernel = functools.partial(_fused_lstm_fc_kernel, len(layer_params), T)
    out = pl.pallas_call(
        kernel,
        out_shape=jax.ShapeDtypeStruct((Bp, O), jnp.float32),
        in_specs=in_specs,
        out_specs=_full_spec((Bp, O)),
        scratch_shapes=[
            pltpu.VMEM((T * Bp, H), jnp.float32),       # inter-layer hidden sequence
            pltpu.VMEM((T * Bp, 4 * H), jnp.float32),   # hoisted gate pre-activations
        ],
    )(*args)
    return out[:B].reshape(-1, O // 4, 4)


class PallasLSTM:
    """Mirrors the PyTorch LSTM module's forward pass (small-shape config)."""

    def __init__(self, key, input_size=4, hidden_size=128, num_layers=2,
                 output_size=4 * 24):
        self.input_size = input_size
        self.hidden_size = hidden_size
        self.num_layers = num_layers
        self.output_size = output_size

        H = hidden_size
        k = 1.0 / jnp.sqrt(jnp.float32(H))
        self.layers = []
        for layer in range(num_layers):
            d_in = input_size if layer == 0 else H
            key, k1, k2, k3, k4 = jax.random.split(key, 5)
            w_ih = jax.random.uniform(k1, (4 * H, d_in), jnp.float32, -k, k)
            w_hh = jax.random.uniform(k2, (4 * H, H), jnp.float32, -k, k)
            b_ih = jax.random.uniform(k3, (4 * H,), jnp.float32, -k, k)
            b_hh = jax.random.uniform(k4, (4 * H,), jnp.float32, -k, k)
            self.layers.append((w_ih.T, w_hh.T, (b_ih + b_hh).reshape(1, 4 * H)))
        key, k5, k6 = jax.random.split(key, 3)
        kf = 1.0 / jnp.sqrt(jnp.float32(H))
        w_fc = jax.random.uniform(k5, (output_size, H), jnp.float32, -kf, kf)
        b_fc = jax.random.uniform(k6, (output_size,), jnp.float32, -kf, kf)
        self.w_fc_t = w_fc.T
        self.b_fc_row = b_fc.reshape(1, output_size)

        self._forward = jax.jit(
            functools.partial(
                _fused_forward, hidden_size=hidden_size, output_size=output_size
            )
        )

    def __call__(self, x_btd):
        # x_btd: (B, T, D) float32 -> (B, 24, 4)
        return self._forward(x_btd, tuple(self.layers), self.w_fc_t, self.b_fc_row)


# ----------------------------- pure-JAX reference ----------------------------


def reference_forward(model, x_btd):
    B = x_btd.shape[0]
    H = model.hidden_size
    seq = jnp.transpose(x_btd, (1, 0, 2))
    for wih_t, whh_t, b_row in model.layers:
        h = jnp.zeros((B, H), jnp.float32)
        c = jnp.zeros((B, H), jnp.float32)
        outs = []
        for t in range(seq.shape[0]):
            z = seq[t] @ wih_t + h @ whh_t + b_row
            i_g = jax.nn.sigmoid(z[:, 0 * H:1 * H])
            f_g = jax.nn.sigmoid(z[:, 1 * H:2 * H])
            g_g = jnp.tanh(z[:, 2 * H:3 * H])
            o_g = jax.nn.sigmoid(z[:, 3 * H:4 * H])
            c = f_g * c + i_g * g_g
            h = o_g * jnp.tanh(c)
            outs.append(h)
        seq = jnp.stack(outs, axis=0)
    y = seq[-1] @ model.w_fc_t + model.b_fc_row
    y = y.reshape(-1, 24, 4)
    y = y.at[:, :, 3].set(jnp.maximum(y[:, :, 3], 0.0))
    return y


# ----------------------------------- main ------------------------------------

if __name__ == "__main__":
    key = jax.random.PRNGKey(0)
    key_params, key_x = jax.random.split(key)

    B, T, D = 2, 8, 4          # batch, sequence length, input features
    H, L = 128, 2              # hidden size, num LSTM layers (small-shape config)

    model = PallasLSTM(key_params, input_size=D, hidden_size=H, num_layers=L,
                       output_size=4 * 24)
    x = jax.random.normal(key_x, (B, T, D), dtype=jnp.float32)

    out = model(x)
    out = jax.block_until_ready(out)
    assert out.shape == (B, 24, 4), out.shape

    ref = jax.block_until_ready(reference_forward(model, x))
    assert jnp.allclose(out, ref, atol=1e-4, rtol=1e-4), (
        float(jnp.max(jnp.abs(out - ref)))
    )

    print("KERNEL_OK")
</pallas_src>

<mosaic_0001>
module attributes {stable_mosaic.version = 11 : i64} {
  func.func @_fused_lstm_fc_kernel(%arg0: memref<64x4xf32, #tpu.memory_space<vmem>>, %arg1: memref<4x512xf32, #tpu.memory_space<vmem>>, %arg2: memref<128x512xf32, #tpu.memory_space<vmem>>, %arg3: memref<1x512xf32, #tpu.memory_space<vmem>>, %arg4: memref<128x512xf32, #tpu.memory_space<vmem>>, %arg5: memref<128x512xf32, #tpu.memory_space<vmem>>, %arg6: memref<1x512xf32, #tpu.memory_space<vmem>>, %arg7: memref<128x96xf32, #tpu.memory_space<vmem>>, %arg8: memref<1x96xf32, #tpu.memory_space<vmem>>, %arg9: memref<8x96xf32, #tpu.memory_space<vmem>>, %arg10: memref<64x128xf32, #tpu.memory_space<vmem>>, %arg11: memref<64x512xf32, #tpu.memory_space<vmem>>) attributes {dimension_semantics = [], scalar_prefetch = 0 : i64, scratch_operands = 2 : i64, tpu.core_type = #tpu.core_type<tc>} {
    %c0 = arith.constant 0 : index
    %c0_0 = arith.constant 0 : index
    %0 = vector.load %arg0[%c0, %c0_0] : memref<64x4xf32, #tpu.memory_space<vmem>>, vector<64x4xf32>
    %c0_1 = arith.constant 0 : index
    %c0_2 = arith.constant 0 : index
    %1 = vector.load %arg1[%c0_1, %c0_2] : memref<4x512xf32, #tpu.memory_space<vmem>>, vector<4x512xf32>
    %cst = arith.constant dense<0.000000e+00> : vector<64x512xf32>
    %2 = tpu.matmul %0, %1, %cst {dimension_numbers = #tpu.dot_dimension_numbers<[1], [0], [0], [1], [0, 0, 1, 1], [], []>} : vector<64x4xf32>, vector<4x512xf32>, vector<64x512xf32> -> vector<64x512xf32>
    %c0_3 = arith.constant 0 : index
    %c0_4 = arith.constant 0 : index
    %3 = vector.load %arg3[%c0_3, %c0_4] : memref<1x512xf32, #tpu.memory_space<vmem>>, vector<1x512xf32>
    %4 = vector.broadcast %3 : vector<1x512xf32> to vector<64x512xf32>
    %5 = arith.addf %2, %4 : vector<64x512xf32>
    %c0_5 = arith.constant 0 : index
    %c0_6 = arith.constant 0 : index
    %6 = vector.load %arg11[%c0_5, %c0_6] : memref<64x512xf32, #tpu.memory_space<vmem>>, vector<64x512xf32>
    tpu.vector_store %arg11[%c0_5, %c0_6], %5 {strides = array<i32>} : memref<64x512xf32, #tpu.memory_space<vmem>>, vector<64x512xf32>,
    %cst_7 = arith.constant 0.000000e+00 : f32
    %7 = vector.broadcast %cst_7 : f32 to vector<8x128xf32>
    %cst_8 = arith.constant 0.000000e+00 : f32
    %8 = vector.broadcast %cst_8 : f32 to vector<8x128xf32>
    %c0_9 = arith.constant 0 : index
    %c0_10 = arith.constant 0 : index
    %9 = vector.load %arg11[%c0_9, %c0_10] : memref<64x512xf32, #tpu.memory_space<vmem>>, vector<8x512xf32>
    %c0_11 = arith.constant 0 : index
    %c0_12 = arith.constant 0 : index
    %10 = vector.load %arg2[%c0_11, %c0_12] : memref<128x512xf32, #tpu.memory_space<vmem>>, vector<128x512xf32>
    %cst_13 = arith.constant dense<0.000000e+00> : vector<8x512xf32>
    %11 = tpu.matmul %7, %10, %cst_13 {dimension_numbers = #tpu.dot_dimension_numbers<[1], [0], [0], [1], [0, 0, 1, 1], [], []>} : vector<8x128xf32>, vector<128x512xf32>, vector<8x512xf32> -> vector<8x512xf32>
    %12 = arith.addf %9, %11 : vector<8x512xf32>
    %13 = vector.extract_strided_slice %12 {offsets = [0, 0], sizes = [8, 256], strides = [1, 1]} : vector<8x512xf32> to vector<8x256xf32>
    %14 = arith.negf %13 : vector<8x256xf32>
    %15 = math.exp %14 : vector<8x256xf32>
    %cst_14 = arith.constant 1.000000e+00 : f32
    %16 = vector.broadcast %cst_14 : f32 to vector<8x256xf32>
    %17 = arith.addf %16, %15 : vector<8x256xf32>
    %18 = arith.divf %16, %17 : vector<8x256xf32>
    %19 = vector.extract_strided_slice %18 {offsets = [0, 0], sizes = [8, 128], strides = [1, 1]} : vector<8x256xf32> to vector<8x128xf32>
    %20 = vector.extract_strided_slice %18 {offsets = [0, 128], sizes = [8, 128], strides = [1, 1]} : vector<8x256xf32> to vector<8x128xf32>
    %21 = vector.extract_strided_slice %12 {offsets = [0, 256], sizes = [8, 128], strides = [1, 1]} : vector<8x512xf32> to vector<8x128xf32>
    %22 = math.tanh %21 : vector<8x128xf32>
    %23 = vector.extract_strided_slice %12 {offsets = [0, 384], sizes = [8, 128], strides = [1, 1]} : vector<8x512xf32> to vector<8x128xf32>
    %24 = arith.negf %23 : vector<8x128xf32>
    %25 = math.exp %24 : vector<8x128xf32>
    %cst_15 = arith.constant 1.000000e+00 : f32
    %26 = vector.broadcast %cst_15 : f32 to vector<8x128xf32>
    %27 = arith.addf %26, %25 : vector<8x128xf32>
    %28 = arith.divf %26, %27 : vector<8x128xf32>
    %29 = arith.mulf %20, %8 : vector<8x128xf32>
    %30 = arith.mulf %19, %22 : vector<8x128xf32>
    %31 = arith.addf %29, %30 : vector<8x128xf32>
    %32 = math.tanh %31 : vector<8x128xf32>
    %33 = arith.mulf %28, %32 : vector<8x128xf32>
    %c0_16 = arith.constant 0 : index
    %c0_17 = arith.constant 0 : index
    %34 = vector.load %arg10[%c0_16, %c0_17] : memref<64x128xf32, #tpu.memory_space<vmem>>, vector<8x128xf32>
    tpu.vector_store %arg10[%c0_16, %c0_17], %33 {strides = array<i32>} : memref<64x128xf32, #tpu.memory_space<vmem>>, vector<8x128xf32>,
    %c8 = arith.constant 8 : index
    %c0_18 = arith.constant 0 : index
    %35 = vector.load %arg11[%c8, %c0_18] : memref<64x512xf32, #tpu.memory_space<vmem>>, vector<8x512xf32>
    %c0_19 = arith.constant 0 : index
    %c0_20 = arith.constant 0 : index
    %36 = vector.load %arg2[%c0_19, %c0_20] : memref<128x512xf32, #tpu.memory_space<vmem>>, vector<128x512xf32>
    %cst_21 = arith.constant dense<0.000000e+00> : vector<8x512xf32>
    %37 = tpu.matmul %33, %36, %cst_21 {dimension_numbers = #tpu.dot_dimension_numbers<[1], [0], [0], [1], [0, 0, 1, 1], [], []>} : vector<8x128xf32>, vector<128x512xf32>, vector<8x512xf32> -> vector<8x512xf32>
    %38 = arith.addf %35, %37 : vector<8x512xf32>
    %39 = vector.extract_strided_slice %38 {offsets = [0, 0], sizes = [8, 256], strides = [1, 1]} : vector<8x512xf32> to vector<8x256xf32>
    %40 = arith.negf %39 : vector<8x256xf32>
    %41 = math.exp %40 : vector<8x256xf32>
    %cst_22 = arith.constant 1.000000e+00 : f32
    %42 = vector.broadcast %cst_22 : f32 to vector<8x256xf32>
    %43 = arith.addf %42, %41 : vector<8x256xf32>
    %44 = arith.divf %42, %43 : vector<8x256xf32>
    %45 = vector.extract_strided_slice %44 {offsets = [0, 0], sizes = [8, 128], strides = [1, 1]} : vector<8x256xf32> to vector<8x128xf32>
    %46 = vector.extract_strided_slice %44 {offsets = [0, 128], sizes = [8, 128], strides = [1, 1]} : vector<8x256xf32> to vector<8x128xf32>
    %47 = vector.extract_strided_slice %38 {offsets = [0, 256], sizes = [8, 128], strides = [1, 1]} : vector<8x512xf32> to vector<8x128xf32>
    %48 = math.tanh %47 : vector<8x128xf32>
    %49 = vector.extract_strided_slice %38 {offsets = [0, 384], sizes = [8, 128], strides = [1, 1]} : vector<8x512xf32> to vector<8x128xf32>
    %50 = arith.negf %49 : vector<8x128xf32>
    %51 = math.exp %50 : vector<8x128xf32>
    %cst_23 = arith.constant 1.000000e+00 : f32
    %52 = vector.broadcast %cst_23 : f32 to vector<8x128xf32>
    %53 = arith.addf %52, %51 : vector<8x128xf32>
    %54 = arith.divf %52, %53 : vector<8x128xf32>
    %55 = arith.mulf %46, %31 : vector<8x128xf32>
    %56 = arith.mulf %45, %48 : vector<8x128xf32>
    %57 = arith.addf %55, %56 : vector<8x128xf32>
    %58 = math.tanh %57 : vector<8x128xf32>
    %59 = arith.mulf %54, %58 : vector<8x128xf32>
    %c8_24 = arith.constant 8 : index
    %c0_25 = arith.constant 0 : index
    %60 = vector.load %arg10[%c8_24, %c0_25] : memref<64x128xf32, #tpu.memory_space<vmem>>, vector<8x128xf32>
    tpu.vector_store %arg10[%c8_24, %c0_25], %59 {strides = array<i32>} : memref<64x128xf32, #tpu.memory_space<vmem>>, vector<8x128xf32>,
    %c16 = arith.constant 16 : index
    %c0_26 = arith.constant 0 : index
    %61 = vector.load %arg11[%c16, %c0_26] : memref<64x512xf32, #tpu.memory_space<vmem>>, vector<8x512xf32>
    %c0_27 = arith.constant 0 : index
    %c0_28 = arith.constant 0 : index
    %62 = vector.load %arg2[%c0_27, %c0_28] : memref<128x512xf32, #tpu.memory_space<vmem>>, vector<128x512xf32>
    %cst_29 = arith.constant dense<0.000000e+00> : vector<8x512xf32>
    %63 = tpu.matmul %59, %62, %cst_29 {dimension_numbers = #tpu.dot_dimension_numbers<[1], [0], [0], [1], [0, 0, 1, 1], [], []>} : vector<8x128xf32>, vector<128x512xf32>, vector<8x512xf32> -> vector<8x512xf32>
    %64 = arith.addf %61, %63 : vector<8x512xf32>
    %65 = vector.extract_strided_slice %64 {offsets = [0, 0], sizes = [8, 256], strides = [1, 1]} : vector<8x512xf32> to vector<8x256xf32>
    %66 = arith.negf %65 : vector<8x256xf32>
    %67 = math.exp %66 : vector<8x256xf32>
    %cst_30 = arith.constant 1.000000e+00 : f32
    %68 = vector.broadcast %cst_30 : f32 to vector<8x256xf32>
    %69 = arith.addf %68, %67 : vector<8x256xf32>
    %70 = arith.divf %68, %69 : vector<8x256xf32>
    %71 = vector.extract_strided_slice %70 {offsets = [0, 0], sizes = [8, 128], strides = [1, 1]} : vector<8x256xf32> to vector<8x128xf32>
    %72 = vector.extract_strided_slice %70 {offsets = [0, 128], sizes = [8, 128], strides = [1, 1]} : vector<8x256xf32> to vector<8x128xf32>
    %73 = vector.extract_strided_slice %64 {offsets = [0, 256], sizes = [8, 128], strides = [1, 1]} : vector<8x512xf32> to vector<8x128xf32>
    %74 = math.tanh %73 : vector<8x128xf32>
    %75 = vector.extract_strided_slice %64 {offsets = [0, 384], sizes = [8, 128], strides = [1, 1]} : vector<8x512xf32> to vector<8x128xf32>
    %76 = arith.negf %75 : vector<8x128xf32>
    %77 = math.exp %76 : vector<8x128xf32>
    %cst_31 = arith.constant 1.000000e+00 : f32
    %78 = vector.broadcast %cst_31 : f32 to vector<8x128xf32>
    %79 = arith.addf %78, %77 : vector<8x128xf32>
    %80 = arith.divf %78, %79 : vector<8x128xf32>
    %81 = arith.mulf %72, %57 : vector<8x128xf32>
    %82 = arith.mulf %71, %74 : vector<8x128xf32>
    %83 = arith.addf %81, %82 : vector<8x128xf32>
    %84 = math.tanh %83 : vector<8x128xf32>
    %85 = arith.mulf %80, %84 : vector<8x128xf32>
    %c16_32 = arith.constant 16 : index
    %c0_33 = arith.constant 0 : index
    %86 = vector.load %arg10[%c16_32, %c0_33] : memref<64x128xf32, #tpu.memory_space<vmem>>, vector<8x128xf32>
    tpu.vector_store %arg10[%c16_32, %c0_33], %85 {strides = array<i32>} : memref<64x128xf32, #tpu.memory_space<vmem>>, vector<8x128xf32>,
    %c24 = arith.constant 24 : index
    %c0_34 = arith.constant 0 : index
    %87 = vector.load %arg11[%c24, %c0_34] : memref<64x512xf32, #tpu.memory_space<vmem>>, vector<8x512xf32>
    %c0_35 = arith.constant 0 : index
    %c0_36 = arith.constant 0 : index
    %88 = vector.load %arg2[%c0_35, %c0_36] : memref<128x512xf32, #tpu.memory_space<vmem>>, vector<128x512xf32>
    %cst_37 = arith.constant dense<0.000000e+00> : vector<8x512xf32>
    %89 = tpu.matmul %85, %88, %cst_37 {dimension_numbers = #tpu.dot_dimension_numbers<[1], [0], [0], [1], [0, 0, 1, 1], [], []>} : vector<8x128xf32>, vector<128x512xf32>, vector<8x512xf32> -> vector<8x512xf32>
    %90 = arith.addf %87, %89 : vector<8x512xf32>
    %91 = vector.extract_strided_slice %90 {offsets = [0, 0], sizes = [8, 256], strides = [1, 1]} : vector<8x512xf32> to vector<8x256xf32>
    %92 = arith.negf %91 : vector<8x256xf32>
    %93 = math.exp %92 : vector<8x256xf32>
    %cst_38 = arith.constant 1.000000e+00 : f32
    %94 = vector.broadcast %cst_38 : f32 to vector<8x256xf32>
    %95 = arith.addf %94, %93 : vector<8x256xf32>
    %96 = arith.divf %94, %95 : vector<8x256xf32>
    %97 = vector.extract_strided_slice %96 {offsets = [0, 0], sizes = [8, 128], strides = [1, 1]} : vector<8x256xf32> to vector<8x128xf32>
    %98 = vector.extract_strided_slice %96 {offsets = [0, 128], sizes = [8, 128], strides = [1, 1]} : vector<8x256xf32> to vector<8x128xf32>
    %99 = vector.extract_strided_slice %90 {offsets = [0, 256], sizes = [8, 128], strides = [1, 1]} : vector<8x512xf32> to vector<8x128xf32>
    %100 = math.tanh %99 : vector<8x128xf32>
    %101 = vector.extract_strided_slice %90 {offsets = [0, 384], sizes = [8, 128], strides = [1, 1]} : vector<8x512xf32> to vector<8x128xf32>
    %102 = arith.negf %101 : vector<8x128xf32>
    %103 = math.exp %102 : vector<8x128xf32>
    %cst_39 = arith.constant 1.000000e+00 : f32
    %104 = vector.broadcast %cst_39 : f32 to vector<8x128xf32>
    %105 = arith.addf %104, %103 : vector<8x128xf32>
    %106 = arith.divf %104, %105 : vector<8x128xf32>
    %107 = arith.mulf %98, %83 : vector<8x128xf32>
    %108 = arith.mulf %97, %100 : vector<8x128xf32>
    %109 = arith.addf %107, %108 : vector<8x128xf32>
    %110 = math.tanh %109 : vector<8x128xf32>
    %111 = arith.mulf %106, %110 : vector<8x128xf32>
    %c24_40 = arith.constant 24 : index
    %c0_41 = arith.constant 0 : index
    %112 = vector.load %arg10[%c24_40, %c0_41] : memref<64x128xf32, #tpu.memory_space<vmem>>, vector<8x128xf32>
    tpu.vector_store %arg10[%c24_40, %c0_41], %111 {strides = array<i32>} : memref<64x128xf32, #tpu.memory_space<vmem>>, vector<8x128xf32>,
    %c32 = arith.constant 32 : index
    %c0_42 = arith.constant 0 : index
    %113 = vector.load %arg11[%c32, %c0_42] : memref<64x512xf32, #tpu.memory_space<vmem>>, vector<8x512xf32>
    %c0_43 = arith.constant 0 : index
    %c0_44 = arith.constant 0 : index
    %114 = vector.load %arg2[%c0_43, %c0_44] : memref<128x512xf32, #tpu.memory_space<vmem>>, vector<128x512xf32>
    %cst_45 = arith.constant dense<0.000000e+00> : vector<8x512xf32>
    %115 = tpu.matmul %111, %114, %cst_45 {dimension_numbers = #tpu.dot_dimension_numbers<[1], [0], [0], [1], [0, 0, 1, 1], [], []>} : vector<8x128xf32>, vector<128x512xf32>, vector<8x512xf32> -> vector<8x512xf32>
    %116 = arith.addf %113, %115 : vector<8x512xf32>
    %117 = vector.extract_strided_slice %116 {offsets = [0, 0], sizes = [8, 256], strides = [1, 1]} : vector<8x512xf32> to vector<8x256xf32>
    %118 = arith.negf %117 : vector<8x256xf32>
    %119 = math.exp %118 : vector<8x256xf32>
    %cst_46 = arith.constant 1.000000e+00 : f32
    %120 = vector.broadcast %cst_46 : f32 to vector<8x256xf32>
    %121 = arith.addf %120, %119 : vector<8x256xf32>
    %122 = arith.divf %120, %121 : vector<8x256xf32>
    %123 = vector.extract_strided_slice %122 {offsets = [0, 0], sizes = [8, 128], strides = [1, 1]} : vector<8x256xf32> to vector<8x128xf32>
    %124 = vector.extract_strided_slice %122 {offsets = [0, 128], sizes = [8, 128], strides = [1, 1]} : vector<8x256xf32> to vector<8x128xf32>
    %125 = vector.extract_strided_slice %116 {offsets = [0, 256], sizes = [8, 128], strides = [1, 1]} : vector<8x512xf32> to vector<8x128xf32>
    %126 = math.tanh %125 : vector<8x128xf32>
    %127 = vector.extract_strided_slice %116 {offsets = [0, 384], sizes = [8, 128], strides = [1, 1]} : vector<8x512xf32> to vector<8x128xf32>
    %128 = arith.negf %127 : vector<8x128xf32>
    %129 = math.exp %128 : vector<8x128xf32>
    %cst_47 = arith.constant 1.000000e+00 : f32
    %130 = vector.broadcast %cst_47 : f32 to vector<8x128xf32>
    %131 = arith.addf %130, %129 : vector<8x128xf32>
    %132 = arith.divf %130, %131 : vector<8x128xf32>
    %133 = arith.mulf %124, %109 : vector<8x128xf32>
    %134 = arith.mulf %123, %126 : vector<8x128xf32>
    %135 = arith.addf %133, %134 : vector<8x128xf32>
    %136 = math.tanh %135 : vector<8x128xf32>
    %137 = arith.mulf %132, %136 : vector<8x128xf32>
    %c32_48 = arith.constant 32 : index
    %c0_49 = arith.constant 0 : index
    %138 = vector.load %arg10[%c32_48, %c0_49] : memref<64x128xf32, #tpu.memory_space<vmem>>, vector<8x128xf32>
    tpu.vector_store %arg10[%c32_48, %c0_49], %137 {strides = array<i32>} : memref<64x128xf32, #tpu.memory_space<vmem>>, vector<8x128xf32>,
    %c40 = arith.constant 40 : index
    %c0_50 = arith.constant 0 : index
    %139 = vector.load %arg11[%c40, %c0_50] : memref<64x512xf32, #tpu.memory_space<vmem>>, vector<8x512xf32>
    %c0_51 = arith.constant 0 : index
    %c0_52 = arith.constant 0 : index
    %140 = vector.load %arg2[%c0_51, %c0_52] : memref<128x512xf32, #tpu.memory_space<vmem>>, vector<128x512xf32>
    %cst_53 = arith.constant dense<0.000000e+00> : vector<8x512xf32>
    %141 = tpu.matmul %137, %140, %cst_53 {dimension_numbers = #tpu.dot_dimension_numbers<[1], [0], [0], [1], [0, 0, 1, 1], [], []>} : vector<8x128xf32>, vector<128x512xf32>, vector<8x512xf32> -> vector<8x512xf32>
    %142 = arith.addf %139, %141 : vector<8x512xf32>
    %143 = vector.extract_strided_slice %142 {offsets = [0, 0], sizes = [8, 256], strides = [1, 1]} : vector<8x512xf32> to vector<8x256xf32>
    %144 = arith.negf %143 : vector<8x256xf32>
    %145 = math.exp %144 : vector<8x256xf32>
    %cst_54 = arith.constant 1.000000e+00 : f32
    %146 = vector.broadcast %cst_54 : f32 to vector<8x256xf32>
    %147 = arith.addf %146, %145 : vector<8x256xf32>
    %148 = arith.divf %146, %147 : vector<8x256xf32>
    %149 = vector.extract_strided_slice %148 {offsets = [0, 0], sizes = [8, 128], strides = [1, 1]} : vector<8x256xf32> to vector<8x128xf32>
    %150 = vector.extract_strided_slice %148 {offsets = [0, 128], sizes = [8, 128], strides = [1, 1]} : vector<8x256xf32> to vector<8x128xf32>
    %151 = vector.extract_strided_slice %142 {offsets = [0, 256], sizes = [8, 128], strides = [1, 1]} : vector<8x512xf32> to vector<8x128xf32>
    %152 = math.tanh %151 : vector<8x128xf32>
    %153 = vector.extract_strided_slice %142 {offsets = [0, 384], sizes = [8, 128], strides = [1, 1]} : vector<8x512xf32> to vector<8x128xf32>
    %154 = arith.negf %153 : vector<8x128xf32>
    %155 = math.exp %154 : vector<8x128xf32>
    %cst_55 = arith.constant 1.000000e+00 : f32
    %156 = vector.broadcast %cst_55 : f32 to vector<8x128xf32>
    %157 = arith.addf %156, %155 : vector<8x128xf32>
    %158 = arith.divf %156, %157 : vector<8x128xf32>
    %159 = arith.mulf %150, %135 : vector<8x128xf32>
    %160 = arith.mulf %149, %152 : vector<8x128xf32>
    %161 = arith.addf %159, %160 : vector<8x128xf32>
    %162 = math.tanh %161 : vector<8x128xf32>
    %163 = arith.mulf %158, %162 : vector<8x128xf32>
    %c40_56 = arith.constant 40 : index
    %c0_57 = arith.constant 0 : index
    %164 = vector.load %arg10[%c40_56, %c0_57] : memref<64x128xf32, #tpu.memory_space<vmem>>, vector<8x128xf32>
    tpu.vector_store %arg10[%c40_56, %c0_57], %163 {strides = array<i32>} : memref<64x128xf32, #tpu.memory_space<vmem>>, vector<8x128xf32>,
    %c48 = arith.constant 48 : index
    %c0_58 = arith.constant 0 : index
    %165 = vector.load %arg11[%c48, %c0_58] : memref<64x512xf32, #tpu.memory_space<vmem>>, vector<8x512xf32>
    %c0_59 = arith.constant 0 : index
    %c0_60 = arith.constant 0 : index
    %166 = vector.load %arg2[%c0_59, %c0_60] : memref<128x512xf32, #tpu.memory_space<vmem>>, vector<128x512xf32>
    %cst_61 = arith.constant dense<0.000000e+00> : vector<8x512xf32>
    %167 = tpu.matmul %163, %166, %cst_61 {dimension_numbers = #tpu.dot_dimension_numbers<[1], [0], [0], [1], [0, 0, 1, 1], [], []>} : vector<8x128xf32>, vector<128x512xf32>, vector<8x512xf32> -> vector<8x512xf32>
    %168 = arith.addf %165, %167 : vector<8x512xf32>
    %169 = vector.extract_strided_slice %168 {offsets = [0, 0], sizes = [8, 256], strides = [1, 1]} : vector<8x512xf32> to vector<8x256xf32>
    %170 = arith.negf %169 : vector<8x256xf32>
    %171 = math.exp %170 : vector<8x256xf32>
    %cst_62 = arith.constant 1.000000e+00 : f32
    %172 = vector.broadcast %cst_62 : f32 to vector<8x256xf32>
    %173 = arith.addf %172, %171 : vector<8x256xf32>
    %174 = arith.divf %172, %173 : vector<8x256xf32>
    %175 = vector.extract_strided_slice %174 {offsets = [0, 0], sizes = [8, 128], strides = [1, 1]} : vector<8x256xf32> to vector<8x128xf32>
    %176 = vector.extract_strided_slice %174 {offsets = [0, 128], sizes = [8, 128], strides = [1, 1]} : vector<8x256xf32> to vector<8x128xf32>
    %177 = vector.extract_strided_slice %168 {offsets = [0, 256], sizes = [8, 128], strides = [1, 1]} : vector<8x512xf32> to vector<8x128xf32>
    %178 = math.tanh %177 : vector<8x128xf32>
    %179 = vector.extract_strided_slice %168 {offsets = [0, 384], sizes = [8, 128], strides = [1, 1]} : vector<8x512xf32> to vector<8x128xf32>
    %180 = arith.negf %179 : vector<8x128xf32>
    %181 = math.exp %180 : vector<8x128xf32>
    %cst_63 = arith.constant 1.000000e+00 : f32
    %182 = vector.broadcast %cst_63 : f32 to vector<8x128xf32>
    %183 = arith.addf %182, %181 : vector<8x128xf32>
    %184 = arith.divf %182, %183 : vector<8x128xf32>
    %185 = arith.mulf %176, %161 : vector<8x128xf32>
    %186 = arith.mulf %175, %178 : vector<8x128xf32>
    %187 = arith.addf %185, %186 : vector<8x128xf32>
    %188 = math.tanh %187 : vector<8x128xf32>
    %189 = arith.mulf %184, %188 : vector<8x128xf32>
    %c48_64 = arith.constant 48 : index
    %c0_65 = arith.constant 0 : index
    %190 = vector.load %arg10[%c48_64, %c0_65] : memref<64x128xf32, #tpu.memory_space<vmem>>, vector<8x128xf32>
    tpu.vector_store %arg10[%c48_64, %c0_65], %189 {strides = array<i32>} : memref<64x128xf32, #tpu.memory_space<vmem>>, vector<8x128xf32>,
    %c56 = arith.constant 56 : index
    %c0_66 = arith.constant 0 : index
    %191 = vector.load %arg11[%c56, %c0_66] : memref<64x512xf32, #tpu.memory_space<vmem>>, vector<8x512xf32>
    %c0_67 = arith.constant 0 : index
    %c0_68 = arith.constant 0 : index
    %192 = vector.load %arg2[%c0_67, %c0_68] : memref<128x512xf32, #tpu.memory_space<vmem>>, vector<128x512xf32>
    %cst_69 = arith.constant dense<0.000000e+00> : vector<8x512xf32>
    %193 = tpu.matmul %189, %192, %cst_69 {dimension_numbers = #tpu.dot_dimension_numbers<[1], [0], [0], [1], [0, 0, 1, 1], [], []>} : vector<8x128xf32>, vector<128x512xf32>, vector<8x512xf32> -> vector<8x512xf32>
    %194 = arith.addf %191, %193 : vector<8x512xf32>
    %195 = vector.extract_strided_slice %194 {offsets = [0, 0], sizes = [8, 256], strides = [1, 1]} : vector<8x512xf32> to vector<8x256xf32>
    %196 = arith.negf %195 : vector<8x256xf32>
    %197 = math.exp %196 : vector<8x256xf32>
    %cst_70 = arith.constant 1.000000e+00 : f32
    %198 = vector.broadcast %cst_70 : f32 to vector<8x256xf32>
    %199 = arith.addf %198, %197 : vector<8x256xf32>
    %200 = arith.divf %198, %199 : vector<8x256xf32>
    %201 = vector.extract_strided_slice %200 {offsets = [0, 0], sizes = [8, 128], strides = [1, 1]} : vector<8x256xf32> to vector<8x128xf32>
    %202 = vector.extract_strided_slice %200 {offsets = [0, 128], sizes = [8, 128], strides = [1, 1]} : vector<8x256xf32> to vector<8x128xf32>
    %203 = vector.extract_strided_slice %194 {offsets = [0, 256], sizes = [8, 128], strides = [1, 1]} : vector<8x512xf32> to vector<8x128xf32>
    %204 = math.tanh %203 : vector<8x128xf32>
    %205 = vector.extract_strided_slice %194 {offsets = [0, 384], sizes = [8, 128], strides = [1, 1]} : vector<8x512xf32> to vector<8x128xf32>
    %206 = arith.negf %205 : vector<8x128xf32>
    %207 = math.exp %206 : vector<8x128xf32>
    %cst_71 = arith.constant 1.000000e+00 : f32
    %208 = vector.broadcast %cst_71 : f32 to vector<8x128xf32>
    %209 = arith.addf %208, %207 : vector<8x128xf32>
    %210 = arith.divf %208, %209 : vector<8x128xf32>
    %211 = arith.mulf %202, %187 : vector<8x128xf32>
    %212 = arith.mulf %201, %204 : vector<8x128xf32>
    %213 = arith.addf %211, %212 : vector<8x128xf32>
    %214 = math.tanh %213 : vector<8x128xf32>
    %215 = arith.mulf %210, %214 : vector<8x128xf32>
    %c56_72 = arith.constant 56 : index
    %c0_73 = arith.constant 0 : index
    %216 = vector.load %arg10[%c56_72, %c0_73] : memref<64x128xf32, #tpu.memory_space<vmem>>, vector<8x128xf32>
    tpu.vector_store %arg10[%c56_72, %c0_73], %215 {strides = array<i32>} : memref<64x128xf32, #tpu.memory_space<vmem>>, vector<8x128xf32>,
    %c0_74 = arith.constant 0 : index
    %c0_75 = arith.constant 0 : index
    %217 = vector.load %arg10[%c0_74, %c0_75] : memref<64x128xf32, #tpu.memory_space<vmem>>, vector<64x128xf32>
    %c0_76 = arith.constant 0 : index
    %c0_77 = arith.constant 0 : index
    %218 = vector.load %arg4[%c0_76, %c0_77] : memref<128x512xf32, #tpu.memory_space<vmem>>, vector<128x512xf32>
    %cst_78 = arith.constant dense<0.000000e+00> : vector<64x512xf32>
    %219 = tpu.matmul %217, %218, %cst_78 {dimension_numbers = #tpu.dot_dimension_numbers<[1], [0], [0], [1], [0, 0, 1, 1], [], []>} : vector<64x128xf32>, vector<128x512xf32>, vector<64x512xf32> -> vector<64x512xf32>
    %c0_79 = arith.constant 0 : index
    %c0_80 = arith.constant 0 : index
    %220 = vector.load %arg6[%c0_79, %c0_80] : memref<1x512xf32, #tpu.memory_space<vmem>>, vector<1x512xf32>
    %221 = vector.broadcast %220 : vector<1x512xf32> to vector<64x512xf32>
    %222 = arith.addf %219, %221 : vector<64x512xf32>
    %c0_81 = arith.constant 0 : index
    %c0_82 = arith.constant 0 : index
    %223 = vector.load %arg11[%c0_81, %c0_82] : memref<64x512xf32, #tpu.memory_space<vmem>>, vector<64x512xf32>
    tpu.vector_store %arg11[%c0_81, %c0_82], %222 {strides = array<i32>} : memref<64x512xf32, #tpu.memory_space<vmem>>, vector<64x512xf32>,
    %cst_83 = arith.constant 0.000000e+00 : f32
    %224 = vector.broadcast %cst_83 : f32 to vector<8x128xf32>
    %cst_84 = arith.constant 0.000000e+00 : f32
    %225 = vector.broadcast %cst_84 : f32 to vector<8x128xf32>
    %c0_85 = arith.constant 0 : index
    %c0_86 = arith.constant 0 : index
    %226 = vector.load %arg11[%c0_85, %c0_86] : memref<64x512xf32, #tpu.memory_space<vmem>>, vector<8x512xf32>
    %c0_87 = arith.constant 0 : index
    %c0_88 = arith.constant 0 : index
    %227 = vector.load %arg5[%c0_87, %c0_88] : memref<128x512xf32, #tpu.memory_space<vmem>>, vector<128x512xf32>
    %cst_89 = arith.constant dense<0.000000e+00> : vector<8x512xf32>
    %228 = tpu.matmul %224, %227, %cst_89 {dimension_numbers = #tpu.dot_dimension_numbers<[1], [0], [0], [1], [0, 0, 1, 1], [], []>} : vector<8x128xf32>, vector<128x512xf32>, vector<8x512xf32> -> vector<8x512xf32>
    %229 = arith.addf %226, %228 : vector<8x512xf32>
    %230 = vector.extract_strided_slice %229 {offsets = [0, 0], sizes = [8, 256], strides = [1, 1]} : vector<8x512xf32> to vector<8x256xf32>
    %231 = arith.negf %230 : vector<8x256xf32>
    %232 = math.exp %231 : vector<8x256xf32>
    %cst_90 = arith.constant 1.000000e+00 : f32
    %233 = vector.broadcast %cst_90 : f32 to vector<8x256xf32>
    %234 = arith.addf %233, %232 : vector<8x256xf32>
    %235 = arith.divf %233, %234 : vector<8x256xf32>
    %236 = vector.extract_strided_slice %235 {offsets = [0, 0], sizes = [8, 128], strides = [1, 1]} : vector<8x256xf32> to vector<8x128xf32>
    %237 = vector.extract_strided_slice %235 {offsets = [0, 128], sizes = [8, 128], strides = [1, 1]} : vector<8x256xf32> to vector<8x128xf32>
    %238 = vector.extract_strided_slice %229 {offsets = [0, 256], sizes = [8, 128], strides = [1, 1]} : vector<8x512xf32> to vector<8x128xf32>
    %239 = math.tanh %238 : vector<8x128xf32>
    %240 = vector.extract_strided_slice %229 {offsets = [0, 384], sizes = [8, 128], strides = [1, 1]} : vector<8x512xf32> to vector<8x128xf32>
    %241 = arith.negf %240 : vector<8x128xf32>
    %242 = math.exp %241 : vector<8x128xf32>
    %cst_91 = arith.constant 1.000000e+00 : f32
    %243 = vector.broadcast %cst_91 : f32 to vector<8x128xf32>
    %244 = arith.addf %243, %242 : vector<8x128xf32>
    %245 = arith.divf %243, %244 : vector<8x128xf32>
    %246 = arith.mulf %237, %225 : vector<8x128xf32>
    %247 = arith.mulf %236, %239 : vector<8x128xf32>
    %248 = arith.addf %246, %247 : vector<8x128xf32>
    %249 = math.tanh %248 : vector<8x128xf32>
    %250 = arith.mulf %245, %249 : vector<8x128xf32>
    %c8_92 = arith.constant 8 : index
    %c0_93 = arith.constant 0 : index
    %251 = vector.load %arg11[%c8_92, %c0_93] : memref<64x512xf32, #tpu.memory_space<vmem>>, vector<8x512xf32>
    %c0_94 = arith.constant 0 : index
    %c0_95 = arith.constant 0 : index
    %252 = vector.load %arg5[%c0_94, %c0_95] : memref<128x512xf32, #tpu.memory_space<vmem>>, vector<128x512xf32>
    %cst_96 = arith.constant dense<0.000000e+00> : vector<8x512xf32>
    %253 = tpu.matmul %250, %252, %cst_96 {dimension_numbers = #tpu.dot_dimension_numbers<[1], [0], [0], [1], [0, 0, 1, 1], [], []>} : vector<8x128xf32>, vector<128x512xf32>, vector<8x512xf32> -> vector<8x512xf32>
    %254 = arith.addf %251, %253 : vector<8x512xf32>
    %255 = vector.extract_strided_slice %254 {offsets = [0, 0], sizes = [8, 256], strides = [1, 1]} : vector<8x512xf32> to vector<8x256xf32>
    %256 = arith.negf %255 : vector<8x256xf32>
    %257 = math.exp %256 : vector<8x256xf32>
    %cst_97 = arith.constant 1.000000e+00 : f32
    %258 = vector.broadcast %cst_97 : f32 to vector<8x256xf32>
    %259 = arith.addf %258, %257 : vector<8x256xf32>
    %260 = arith.divf %258, %259 : vector<8x256xf32>
    %261 = vector.extract_strided_slice %260 {offsets = [0, 0], sizes = [8, 128], strides = [1, 1]} : vector<8x256xf32> to vector<8x128xf32>
    %262 = vector.extract_strided_slice %260 {offsets = [0, 128], sizes = [8, 128], strides = [1, 1]} : vector<8x256xf32> to vector<8x128xf32>
    %263 = vector.extract_strided_slice %254 {offsets = [0, 256], sizes = [8, 128], strides = [1, 1]} : vector<8x512xf32> to vector<8x128xf32>
    %264 = math.tanh %263 : vector<8x128xf32>
    %265 = vector.extract_strided_slice %254 {offsets = [0, 384], sizes = [8, 128], strides = [1, 1]} : vector<8x512xf32> to vector<8x128xf32>
    %266 = arith.negf %265 : vector<8x128xf32>
    %267 = math.exp %266 : vector<8x128xf32>
    %cst_98 = arith.constant 1.000000e+00 : f32
    %268 = vector.broadcast %cst_98 : f32 to vector<8x128xf32>
    %269 = arith.addf %268, %267 : vector<8x128xf32>
    %270 = arith.divf %268, %269 : vector<8x128xf32>
    %271 = arith.mulf %262, %248 : vector<8x128xf32>
    %272 = arith.mulf %261, %264 : vector<8x128xf32>
    %273 = arith.addf %271, %272 : vector<8x128xf32>
    %274 = math.tanh %273 : vector<8x128xf32>
    %275 = arith.mulf %270, %274 : vector<8x128xf32>
    %c16_99 = arith.constant 16 : index
    %c0_100 = arith.constant 0 : index
    %276 = vector.load %arg11[%c16_99, %c0_100] : memref<64x512xf32, #tpu.memory_space<vmem>>, vector<8x512xf32>
    %c0_101 = arith.constant 0 : index
    %c0_102 = arith.constant 0 : index
    %277 = vector.load %arg5[%c0_101, %c0_102] : memref<128x512xf32, #tpu.memory_space<vmem>>, vector<128x512xf32>
    %cst_103 = arith.constant dense<0.000000e+00> : vector<8x512xf32>
    %278 = tpu.matmul %275, %277, %cst_103 {dimension_numbers = #tpu.dot_dimension_numbers<[1], [0], [0], [1], [0, 0, 1, 1], [], []>} : vector<8x128xf32>, vector<128x512xf32>, vector<8x512xf32> -> vector<8x512xf32>
    %279 = arith.addf %276, %278 : vector<8x512xf32>
    %280 = vector.extract_strided_slice %279 {offsets = [0, 0], sizes = [8, 256], strides = [1, 1]} : vector<8x512xf32> to vector<8x256xf32>
    %281 = arith.negf %280 : vector<8x256xf32>
    %282 = math.exp %281 : vector<8x256xf32>
    %cst_104 = arith.constant 1.000000e+00 : f32
    %283 = vector.broadcast %cst_104 : f32 to vector<8x256xf32>
    %284 = arith.addf %283, %282 : vector<8x256xf32>
    %285 = arith.divf %283, %284 : vector<8x256xf32>
    %286 = vector.extract_strided_slice %285 {offsets = [0, 0], sizes = [8, 128], strides = [1, 1]} : vector<8x256xf32> to vector<8x128xf32>
    %287 = vector.extract_strided_slice %285 {offsets = [0, 128], sizes = [8, 128], strides = [1, 1]} : vector<8x256xf32> to vector<8x128xf32>
    %288 = vector.extract_strided_slice %279 {offsets = [0, 256], sizes = [8, 128], strides = [1, 1]} : vector<8x512xf32> to vector<8x128xf32>
    %289 = math.tanh %288 : vector<8x128xf32>
    %290 = vector.extract_strided_slice %279 {offsets = [0, 384], sizes = [8, 128], strides = [1, 1]} : vector<8x512xf32> to vector<8x128xf32>
    %291 = arith.negf %290 : vector<8x128xf32>
    %292 = math.exp %291 : vector<8x128xf32>
    %cst_105 = arith.constant 1.000000e+00 : f32
    %293 = vector.broadcast %cst_105 : f32 to vector<8x128xf32>
    %294 = arith.addf %293, %292 : vector<8x128xf32>
    %295 = arith.divf %293, %294 : vector<8x128xf32>
    %296 = arith.mulf %287, %273 : vector<8x128xf32>
    %297 = arith.mulf %286, %289 : vector<8x128xf32>
    %298 = arith.addf %296, %297 : vector<8x128xf32>
    %299 = math.tanh %298 : vector<8x128xf32>
    %300 = arith.mulf %295, %299 : vector<8x128xf32>
    %c24_106 = arith.constant 24 : index
    %c0_107 = arith.constant 0 : index
    %301 = vector.load %arg11[%c24_106, %c0_107] : memref<64x512xf32, #tpu.memory_space<vmem>>, vector<8x512xf32>
    %c0_108 = arith.constant 0 : index
    %c0_109 = arith.constant 0 : index
    %302 = vector.load %arg5[%c0_108, %c0_109] : memref<128x512xf32, #tpu.memory_space<vmem>>, vector<128x512xf32>
    %cst_110 = arith.constant dense<0.000000e+00> : vector<8x512xf32>
    %303 = tpu.matmul %300, %302, %cst_110 {dimension_numbers = #tpu.dot_dimension_numbers<[1], [0], [0], [1], [0, 0, 1, 1], [], []>} : vector<8x128xf32>, vector<128x512xf32>, vector<8x512xf32> -> vector<8x512xf32>
    %304 = arith.addf %301, %303 : vector<8x512xf32>
    %305 = vector.extract_strided_slice %304 {offsets = [0, 0], sizes = [8, 256], strides = [1, 1]} : vector<8x512xf32> to vector<8x256xf32>
    %306 = arith.negf %305 : vector<8x256xf32>
    %307 = math.exp %306 : vector<8x256xf32>
    %cst_111 = arith.constant 1.000000e+00 : f32
    %308 = vector.broadcast %cst_111 : f32 to vector<8x256xf32>
    %309 = arith.addf %308, %307 : vector<8x256xf32>
    %310 = arith.divf %308, %309 : vector<8x256xf32>
    %311 = vector.extract_strided_slice %310 {offsets = [0, 0], sizes = [8, 128], strides = [1, 1]} : vector<8x256xf32> to vector<8x128xf32>
    %312 = vector.extract_strided_slice %310 {offsets = [0, 128], sizes = [8, 128], strides = [1, 1]} : vector<8x256xf32> to vector<8x128xf32>
    %313 = vector.extract_strided_slice %304 {offsets = [0, 256], sizes = [8, 128], strides = [1, 1]} : vector<8x512xf32> to vector<8x128xf32>
    %314 = math.tanh %313 : vector<8x128xf32>
    %315 = vector.extract_strided_slice %304 {offsets = [0, 384], sizes = [8, 128], strides = [1, 1]} : vector<8x512xf32> to vector<8x128xf32>
    %316 = arith.negf %315 : vector<8x128xf32>
    %317 = math.exp %316 : vector<8x128xf32>
    %cst_112 = arith.constant 1.000000e+00 : f32
    %318 = vector.broadcast %cst_112 : f32 to vector<8x128xf32>
    %319 = arith.addf %318, %317 : vector<8x128xf32>
    %320 = arith.divf %318, %319 : vector<8x128xf32>
    %321 = arith.mulf %312, %298 : vector<8x128xf32>
    %322 = arith.mulf %311, %314 : vector<8x128xf32>
    %323 = arith.addf %321, %322 : vector<8x128xf32>
    %324 = math.tanh %323 : vector<8x128xf32>
    %325 = arith.mulf %320, %324 : vector<8x128xf32>
    %c32_113 = arith.constant 32 : index
    %c0_114 = arith.constant 0 : index
    %326 = vector.load %arg11[%c32_113, %c0_114] : memref<64x512xf32, #tpu.memory_space<vmem>>, vector<8x512xf32>
    %c0_115 = arith.constant 0 : index
    %c0_116 = arith.constant 0 : index
    %327 = vector.load %arg5[%c0_115, %c0_116] : memref<128x512xf32, #tpu.memory_space<vmem>>, vector<128x512xf32>
    %cst_117 = arith.constant dense<0.000000e+00> : vector<8x512xf32>
    %328 = tpu.matmul %325, %327, %cst_117 {dimension_numbers = #tpu.dot_dimension_numbers<[1], [0], [0], [1], [0, 0, 1, 1], [], []>} : vector<8x128xf32>, vector<128x512xf32>, vector<8x512xf32> -> vector<8x512xf32>
    %329 = arith.addf %326, %328 : vector<8x512xf32>
    %330 = vector.extract_strided_slice %329 {offsets = [0, 0], sizes = [8, 256], strides = [1, 1]} : vector<8x512xf32> to vector<8x256xf32>
    %331 = arith.negf %330 : vector<8x256xf32>
    %332 = math.exp %331 : vector<8x256xf32>
    %cst_118 = arith.constant 1.000000e+00 : f32
    %333 = vector.broadcast %cst_118 : f32 to vector<8x256xf32>
    %334 = arith.addf %333, %332 : vector<8x256xf32>
    %335 = arith.divf %333, %334 : vector<8x256xf32>
    %336 = vector.extract_strided_slice %335 {offsets = [0, 0], sizes = [8, 128], strides = [1, 1]} : vector<8x256xf32> to vector<8x128xf32>
    %337 = vector.extract_strided_slice %335 {offsets = [0, 128], sizes = [8, 128], strides = [1, 1]} : vector<8x256xf32> to vector<8x128xf32>
    %338 = vector.extract_strided_slice %329 {offsets = [0, 256], sizes = [8, 128], strides = [1, 1]} : vector<8x512xf32> to vector<8x128xf32>
    %339 = math.tanh %338 : vector<8x128xf32>
    %340 = vector.extract_strided_slice %329 {offsets = [0, 384], sizes = [8, 128], strides = [1, 1]} : vector<8x512xf32> to vector<8x128xf32>
    %341 = arith.negf %340 : vector<8x128xf32>
    %342 = math.exp %341 : vector<8x128xf32>
    %cst_119 = arith.constant 1.000000e+00 : f32
    %343 = vector.broadcast %cst_119 : f32 to vector<8x128xf32>
    %344 = arith.addf %343, %342 : vector<8x128xf32>
    %345 = arith.divf %343, %344 : vector<8x128xf32>
    %346 = arith.mulf %337, %323 : vector<8x128xf32>
    %347 = arith.mulf %336, %339 : vector<8x128xf32>
    %348 = arith.addf %346, %347 : vector<8x128xf32>
    %349 = math.tanh %348 : vector<8x128xf32>
    %350 = arith.mulf %345, %349 : vector<8x128xf32>
    %c40_120 = arith.constant 40 : index
    %c0_121 = arith.constant 0 : index
    %351 = vector.load %arg11[%c40_120, %c0_121] : memref<64x512xf32, #tpu.memory_space<vmem>>, vector<8x512xf32>
    %c0_122 = arith.constant 0 : index
    %c0_123 = arith.constant 0 : index
    %352 = vector.load %arg5[%c0_122, %c0_123] : memref<128x512xf32, #tpu.memory_space<vmem>>, vector<128x512xf32>
    %cst_124 = arith.constant dense<0.000000e+00> : vector<8x512xf32>
    %353 = tpu.matmul %350, %352, %cst_124 {dimension_numbers = #tpu.dot_dimension_numbers<[1], [0], [0], [1], [0, 0, 1, 1], [], []>} : vector<8x128xf32>, vector<128x512xf32>, vector<8x512xf32> -> vector<8x512xf32>
    %354 = arith.addf %351, %353 : vector<8x512xf32>
    %355 = vector.extract_strided_slice %354 {offsets = [0, 0], sizes = [8, 256], strides = [1, 1]} : vector<8x512xf32> to vector<8x256xf32>
    %356 = arith.negf %355 : vector<8x256xf32>
    %357 = math.exp %356 : vector<8x256xf32>
    %cst_125 = arith.constant 1.000000e+00 : f32
    %358 = vector.broadcast %cst_125 : f32 to vector<8x256xf32>
    %359 = arith.addf %358, %357 : vector<8x256xf32>
    %360 = arith.divf %358, %359 : vector<8x256xf32>
    %361 = vector.extract_strided_slice %360 {offsets = [0, 0], sizes = [8, 128], strides = [1, 1]} : vector<8x256xf32> to vector<8x128xf32>
    %362 = vector.extract_strided_slice %360 {offsets = [0, 128], sizes = [8, 128], strides = [1, 1]} : vector<8x256xf32> to vector<8x128xf32>
    %363 = vector.extract_strided_slice %354 {offsets = [0, 256], sizes = [8, 128], strides = [1, 1]} : vector<8x512xf32> to vector<8x128xf32>
    %364 = math.tanh %363 : vector<8x128xf32>
    %365 = vector.extract_strided_slice %354 {offsets = [0, 384], sizes = [8, 128], strides = [1, 1]} : vector<8x512xf32> to vector<8x128xf32>
    %366 = arith.negf %365 : vector<8x128xf32>
    %367 = math.exp %366 : vector<8x128xf32>
    %cst_126 = arith.constant 1.000000e+00 : f32
    %368 = vector.broadcast %cst_126 : f32 to vector<8x128xf32>
    %369 = arith.addf %368, %367 : vector<8x128xf32>
    %370 = arith.divf %368, %369 : vector<8x128xf32>
    %371 = arith.mulf %362, %348 : vector<8x128xf32>
    %372 = arith.mulf %361, %364 : vector<8x128xf32>
    %373 = arith.addf %371, %372 : vector<8x128xf32>
    %374 = math.tanh %373 : vector<8x128xf32>
    %375 = arith.mulf %370, %374 : vector<8x128xf32>
    %c48_127 = arith.constant 48 : index
    %c0_128 = arith.constant 0 : index
    %376 = vector.load %arg11[%c48_127, %c0_128] : memref<64x512xf32, #tpu.memory_space<vmem>>, vector<8x512xf32>
    %c0_129 = arith.constant 0 : index
    %c0_130 = arith.constant 0 : index
    %377 = vector.load %arg5[%c0_129, %c0_130] : memref<128x512xf32, #tpu.memory_space<vmem>>, vector<128x512xf32>
    %cst_131 = arith.constant dense<0.000000e+00> : vector<8x512xf32>
    %378 = tpu.matmul %375, %377, %cst_131 {dimension_numbers = #tpu.dot_dimension_numbers<[1], [0], [0], [1], [0, 0, 1, 1], [], []>} : vector<8x128xf32>, vector<128x512xf32>, vector<8x512xf32> -> vector<8x512xf32>
    %379 = arith.addf %376, %378 : vector<8x512xf32>
    %380 = vector.extract_strided_slice %379 {offsets = [0, 0], sizes = [8, 256], strides = [1, 1]} : vector<8x512xf32> to vector<8x256xf32>
    %381 = arith.negf %380 : vector<8x256xf32>
    %382 = math.exp %381 : vector<8x256xf32>
    %cst_132 = arith.constant 1.000000e+00 : f32
    %383 = vector.broadcast %cst_132 : f32 to vector<8x256xf32>
    %384 = arith.addf %383, %382 : vector<8x256xf32>
    %385 = arith.divf %383, %384 : vector<8x256xf32>
    %386 = vector.extract_strided_slice %385 {offsets = [0, 0], sizes = [8, 128], strides = [1, 1]} : vector<8x256xf32> to vector<8x128xf32>
    %387 = vector.extract_strided_slice %385 {offsets = [0, 128], sizes = [8, 128], strides = [1, 1]} : vector<8x256xf32> to vector<8x128xf32>
    %388 = vector.extract_strided_slice %379 {offsets = [0, 256], sizes = [8, 128], strides = [1, 1]} : vector<8x512xf32> to vector<8x128xf32>
    %389 = math.tanh %388 : vector<8x128xf32>
    %390 = vector.extract_strided_slice %379 {offsets = [0, 384], sizes = [8, 128], strides = [1, 1]} : vector<8x512xf32> to vector<8x128xf32>
    %391 = arith.negf %390 : vector<8x128xf32>
    %392 = math.exp %391 : vector<8x128xf32>
    %cst_133 = arith.constant 1.000000e+00 : f32
    %393 = vector.broadcast %cst_133 : f32 to vector<8x128xf32>
    %394 = arith.addf %393, %392 : vector<8x128xf32>
    %395 = arith.divf %393, %394 : vector<8x128xf32>
    %396 = arith.mulf %387, %373 : vector<8x128xf32>
    %397 = arith.mulf %386, %389 : vector<8x128xf32>
    %398 = arith.addf %396, %397 : vector<8x128xf32>
    %399 = math.tanh %398 : vector<8x128xf32>
    %400 = arith.mulf %395, %399 : vector<8x128xf32>
    %c56_134 = arith.constant 56 : index
    %c0_135 = arith.constant 0 : index
    %401 = vector.load %arg11[%c56_134, %c0_135] : memref<64x512xf32, #tpu.memory_space<vmem>>, vector<8x512xf32>
    %c0_136 = arith.constant 0 : index
    %c0_137 = arith.constant 0 : index
    %402 = vector.load %arg5[%c0_136, %c0_137] : memref<128x512xf32, #tpu.memory_space<vmem>>, vector<128x512xf32>
    %cst_138 = arith.constant dense<0.000000e+00> : vector<8x512xf32>
    %403 = tpu.matmul %400, %402, %cst_138 {dimension_numbers = #tpu.dot_dimension_numbers<[1], [0], [0], [1], [0, 0, 1, 1], [], []>} : vector<8x128xf32>, vector<128x512xf32>, vector<8x512xf32> -> vector<8x512xf32>
    %404 = arith.addf %401, %403 : vector<8x512xf32>
    %405 = vector.extract_strided_slice %404 {offsets = [0, 0], sizes = [8, 256], strides = [1, 1]} : vector<8x512xf32> to vector<8x256xf32>
    %406 = arith.negf %405 : vector<8x256xf32>
    %407 = math.exp %406 : vector<8x256xf32>
    %cst_139 = arith.constant 1.000000e+00 : f32
    %408 = vector.broadcast %cst_139 : f32 to vector<8x256xf32>
    %409 = arith.addf %408, %407 : vector<8x256xf32>
    %410 = arith.divf %408, %409 : vector<8x256xf32>
    %411 = vector.extract_strided_slice %410 {offsets = [0, 0], sizes = [8, 128], strides = [1, 1]} : vector<8x256xf32> to vector<8x128xf32>
    %412 = vector.extract_strided_slice %410 {offsets = [0, 128], sizes = [8, 128], strides = [1, 1]} : vector<8x256xf32> to vector<8x128xf32>
    %413 = vector.extract_strided_slice %404 {offsets = [0, 256], sizes = [8, 128], strides = [1, 1]} : vector<8x512xf32> to vector<8x128xf32>
    %414 = math.tanh %413 : vector<8x128xf32>
    %415 = vector.extract_strided_slice %404 {offsets = [0, 384], sizes = [8, 128], strides = [1, 1]} : vector<8x512xf32> to vector<8x128xf32>
    %416 = arith.negf %415 : vector<8x128xf32>
    %417 = math.exp %416 : vector<8x128xf32>
    %cst_140 = arith.constant 1.000000e+00 : f32
    %418 = vector.broadcast %cst_140 : f32 to vector<8x128xf32>
    %419 = arith.addf %418, %417 : vector<8x128xf32>
    %420 = arith.divf %418, %419 : vector<8x128xf32>
    %421 = arith.mulf %412, %398 : vector<8x128xf32>
    %422 = arith.mulf %411, %414 : vector<8x128xf32>
    %423 = arith.addf %421, %422 : vector<8x128xf32>
    %424 = math.tanh %423 : vector<8x128xf32>
    %425 = arith.mulf %420, %424 : vector<8x128xf32>
    %c0_141 = arith.constant 0 : index
    %c0_142 = arith.constant 0 : index
    %426 = vector.load %arg7[%c0_141, %c0_142] : memref<128x96xf32, #tpu.memory_space<vmem>>, vector<128x96xf32>
    %cst_143 = arith.constant dense<0.000000e+00> : vector<8x96xf32>
    %427 = tpu.matmul %425, %426, %cst_143 {dimension_numbers = #tpu.dot_dimension_numbers<[1], [0], [0], [1], [0, 0, 1, 1], [], []>} : vector<8x128xf32>, vector<128x96xf32>, vector<8x96xf32> -> vector<8x96xf32>
    %c0_144 = arith.constant 0 : index
    %c0_145 = arith.constant 0 : index
    %428 = vector.load %arg8[%c0_144, %c0_145] : memref<1x96xf32, #tpu.memory_space<vmem>>, vector<1x96xf32>
    %429 = vector.broadcast %428 : vector<1x96xf32> to vector<8x96xf32>
    %430 = arith.addf %427, %429 : vector<8x96xf32>
    %431 = tpu.iota {dimensions = array<i32: 1>} : vector<8x96xi32>
    %c4_i32 = arith.constant 4 : i32
    %c0_i32 = arith.constant 0 : i32
    %432 = arith.cmpi eq, %c4_i32, %c0_i32 : i32
    %c1_i32 = arith.constant 1 : i32
    %433 = arith.select %432, %c1_i32, %c4_i32 : i32
    %434 = vector.broadcast %433 : i32 to vector<8x96xi32>
    %435 = arith.remsi %431, %434 : vector<8x96xi32>
    %c0_i32_146 = arith.constant 0 : i32
    %436 = vector.broadcast %c0_i32_146 : i32 to vector<8x96xi32>
    %437 = arith.cmpi ne, %435, %436 : vector<8x96xi32>
    %c0_i32_147 = arith.constant 0 : i32
    %438 = vector.broadcast %c0_i32_147 : i32 to vector<8x96xi32>
    %439 = arith.cmpi slt, %435, %438 : vector<8x96xi32>
    %c0_i32_148 = arith.constant 0 : i32
    %440 = arith.cmpi slt, %433, %c0_i32_148 : i32
    %441 = vector.broadcast %440 : i1 to vector<8x96xi1>
    %442 = vector.broadcast %441 : vector<8x96xi1> to vector<8x96xi1>
    %443 = arith.xori %439, %442 : vector<8x96xi1>
    %444 = arith.andi %443, %437 : vector<8x96xi1>
    %445 = vector.broadcast %433 : i32 to vector<8x96xi32>
    %446 = arith.addi %435, %445 : vector<8x96xi32>
    %447 = arith.select %444, %446, %435 : vector<8x96xi1>, vector<8x96xi32>
    %c3_i32 = arith.constant 3 : i32
    %448 = vector.broadcast %c3_i32 : i32 to vector<8x96xi32>
    %449 = arith.cmpi eq, %447, %448 : vector<8x96xi32>
    %cst_149 = arith.constant 0.000000e+00 : f32
    %450 = vector.broadcast %cst_149 : f32 to vector<8x96xf32>
    %451 = arith.maximumf %430, %450 : vector<8x96xf32>
    %452 = arith.select %449, %451, %430 : vector<8x96xi1>, vector<8x96xf32>
    %c0_150 = arith.constant 0 : index
    %c0_151 = arith.constant 0 : index
    %453 = vector.load %arg9[%c0_150, %c0_151] : memref<8x96xf32, #tpu.memory_space<vmem>>, vector<8x96xf32>
    tpu.vector_store %arg9[%c0_150, %c0_151], %452 {strides = array<i32>} : memref<8x96xf32, #tpu.memory_space<vmem>>, vector<8x96xf32>,
    return
  }
}

</mosaic_0001>

<bundles_post_ra>
// kernel: _fused_forward.1
= control target key start
LH: loop header
LB: loop body
LE: loop exit
PB: predicated region body
PF: predicated region fallthrough
CT: control target
= control target key end

     0   :  { %14 = vsyncpa [#allocation5], 0  ;;  %s7123_s0 = inlined_call_operand.vmem [shape: f32[64,4], index: 0, kind: input, shape index: {}]   ;;  %s7124_s1 = inlined_call_operand.vmem [shape: f32[4,512], index: 1, kind: input, shape index: {}]   ;;  %s7125_s2 = inlined_call_operand.hbm [shape: f32[128,512], index: 2, kind: input, shape index: {}]   ;;  %s7126_s3 = inlined_call_operand.vmem [shape: f32[1,512], index: 3, kind: input, shape index: {}]   ;;  %s7127_s4 = inlined_call_operand.hbm [shape: f32[128,512], index: 4, kind: input, shape index: {}]   ;;  %s7128_s5 = inlined_call_operand.hbm [shape: f32[128,512], index: 5, kind: input, shape index: {}]   ;;  %s7129_s6 = inlined_call_operand.vmem [shape: f32[1,512], index: 6, kind: input, shape index: {}]   ;;  %s7130_s7 = inlined_call_operand.vmem [shape: f32[128,96], index: 7, kind: input, shape index: {}]   ;;  %s7131_s8 = inlined_call_operand.vmem [shape: f32[1,96], index: 8, kind: input, shape index: {}]   ;;  %s7132_s9 = inlined_call_operand.vmem [shape: f32[8,96], index: 9, kind: output, shape index: {}]  }
   0x1   :  { %15 = vsyncpa [#allocation7], 0  ;;  %s5936_s30 = smov [#allocation6]   ;;  %s5937_s11 = smov [#allocation4]  }
   0x2   :  { %s39_s10 = sshll.u32 %s5936_s30, 4  ;;  %s25_s12 = sshll.u32 %s5937_s11, 4  ;;  %s40_s10 = int_to_ptr.vmem [resolvable:$true] %s39_s10  ;;  %s5994_s12 = int_to_ptr.vmem [resolvable:$true] %s25_s12 }
   0x3   :  { %s5866_s15 = scalar_lea.hbm %s7127_s4, 8192 }
   0x4   :  { %p5867_p0 = scmp.ne.s32.totalorder %s7127_s4, %s5866_s15  ;;  %p5870_p1 = scmp.lt.u32.totalorder %s5866_s15, %s7127_s4 }
   0x6   :  { %p5872_p2 = pnand %p5870_p1, %p5867_p0 }
   0x8   :  { %5875 = shalt.err (!%p5872_p2)
}
   0x9   :  { %s5876_s20 = scalar_lea.vmem %s40_s10, 8192  ;;  %p5881_p4 = scmp.lt.s32.totalorder %s40_s10, %s40_s10 }
   0xa   :  { %p5877_p3 = scmp.ne.s32.totalorder %s40_s10, %s5876_s20  ;;  %p5882_p5 = scmp.lt.s32.totalorder %s5876_s20, %s5876_s20 }
   0xc   :  { %p5883_p6 = por %p5882_p5, %p5881_p4 }
   0xe   :  { %p5884_p7 = pnand %p5883_p6, %p5877_p3 }
  0x10   :  { %5887 = shalt.err (!%p5884_p7)
}
  0x11   :  { %s5938_s21 = smov 512   ;;  %s5939_s22 = smov 32  }
  0x12   :  { %45 = dma.hbm_to_vmem [thread:$0]  %s7127_s4, 8192, %s40_s10, [#allocation7], %s5938_s21, %s5938_s21, %s5939_s22  }
  0x13   :  { %s5888_s27 = scalar_lea.hbm %s7125_s2, 8192 }
  0x14   :  { %p5889_p8 = scmp.ne.s32.totalorder %s7125_s2, %s5888_s27  ;;  %p5892_p9 = scmp.lt.u32.totalorder %s5888_s27, %s7125_s2 }
  0x16   :  { %p5894_p10 = pnand %p5892_p9, %p5889_p8 }
  0x18   :  { %5897 = shalt.err (!%p5894_p10)
}
  0x19   :  { %s5898_s13 = scalar_lea.vmem %s5994_s12, 8192  ;;  %p5903_p12 = scmp.lt.s32.totalorder %s5994_s12, %s5994_s12 }
  0x1a   :  { %p5899_p11 = scmp.ne.s32.totalorder %s5994_s12, %s5898_s13  ;;  %p5904_p13 = scmp.lt.s32.totalorder %s5898_s13, %s5898_s13 }
  0x1c   :  { %p5905_p0 = por %p5904_p13, %p5903_p12 }
  0x1e   :  { %p5906_p1 = pnand %p5905_p0, %p5899_p11 }
  0x20   :  { %5909 = shalt.err (!%p5906_p1)
}
  0x21   :  { %31 = dma.hbm_to_vmem [thread:$0]  %s7125_s2, 8192, %s5994_s12, [#allocation5], %s5938_s21, %s5938_s21, %s5939_s22  }
  0x22   :  { %s5940_s14 = smov [#allocation8]   ;;  %s5910_s18 = scalar_lea.hbm %s7128_s5, 8192 }
  0x23   :  { %s51_s15 = sshll.u32 %s5940_s14, 4  ;;  %p5911_p2 = scmp.ne.s32.totalorder %s7128_s5, %s5910_s18  ;;  %s52_s15 = int_to_ptr.vmem [resolvable:$true] %s51_s15 }
  0x24   :  { %p5914_p3 = scmp.lt.u32.totalorder %s5910_s18, %s7128_s5 }
  0x26   :  { %p5916_p4 = pnand %p5914_p3, %p5911_p2 }
  0x28   :  { %5919 = shalt.err (!%p5916_p4)
}
  0x29   :  { %s5920_s25 = scalar_lea.vmem %s52_s15, 8192  ;;  %p5925_p6 = scmp.lt.s32.totalorder %s52_s15, %s52_s15 }
  0x2a   :  { %p5921_p5 = scmp.ne.s32.totalorder %s52_s15, %s5920_s25  ;;  %p5926_p7 = scmp.lt.s32.totalorder %s5920_s25, %s5920_s25 }
  0x2c   :  { %p5927_p8 = por %p5926_p7, %p5925_p6 }
  0x2e   :  { %p5928_p9 = pnand %p5927_p8, %p5921_p5 }
  0x30   :  { %5931 = shalt.err (!%p5928_p9)
}
  0x31   :  { %57 = dma.hbm_to_vmem [thread:$0]  %s7128_s5, 8192, %s52_s15, [#allocation7], %s5938_s21, %s5938_s21, %s5939_s22  }
  0x32   :  { %5932 = dma.done.wait [#allocation5], 8192  }
  0x33   :  { %5933 = vsyncadd [#allocation5], 4294959104 }
  0x34   :  { %5934 = dma.done.wait [#allocation7], 16384  }
  0x35   :  { %5935 = vsyncadd [#allocation7], 4294950912  ;;  %v5941_v0 = vmov 0.0   ;;  %v81_v1 = vld [vmem:[%s7124_s1] sm:$0xff]  ;;  %vm134_vm0 = vcmask 1043456   ;;  %v82_v2 = vld [vmem:[%s7124_s1 + $0x8] sm:$0xff] }
  0x36   :  { %207 = vmatprep.mubr.f32.mxu0 %v5941_v0  ;;  %320 = vmatprep.mubr.f32.mxu1 %v5941_v0  ;;  %v73_v3 = vld [vmem:[%s7123_s0] sm:$0xff]  ;;  %v107_v4 = vcombine.high %v81_v1, %v81_v1  ;;  %v108_v5 = vcombine.high %v82_v2, %v82_v2  ;;  %v406_v6 = vld [vmem:[#allocation4 + $0x8] sm:$0xff]  ;;  %v408_v8 = vld [vmem:[#allocation4 + $0x18] sm:$0xff]  ;;  %vm109_vm1 = vcmask 31744   ;;  %vm5943_vm2 = vmmov 0  }
  0x37   :  { %v410_v7 = vld [vmem:[#allocation4 + $0x28] sm:$0xff]  ;;  %v412_v10 = vld [vmem:[#allocation4 + $0x38] sm:$0xff]  ;;  %v405_v11 = vld [vmem:[#allocation4] sm:$0xff]  ;;  %vm4231_vm4 = vcmask 785408  }
  0x38   :  { %v6057_v9 = vpack.c.bf16 %v410_v7, %v406_v6  ;;  %v409_v12 = vld [vmem:[#allocation4 + $0x20] sm:$0xff]  ;;  %4239 = vmatprep.subr.msk.mxu0 %vm134_vm0, %v107_v4  ;;  %4249 = vmatprep.subr.msk.mxu1 %vm134_vm0, %v108_v5  ;;  %v6061_v13 = vpack.c.bf16 %v412_v10, %v408_v8  ;;  %v407_v15 = vld [vmem:[#allocation4 + $0x10] sm:$0xff]  ;;  %v414_v18 = vld [vmem:[#allocation4 + $0x48] sm:$0xff] }
  0x39   :  { %v6063_v14 = vpack.c.bf16 %v409_v12, %v405_v11  ;;  %v411_v16 = vld [vmem:[#allocation4 + $0x30] sm:$0xff]  ;;  %4240 = vmatpush1.msk.msra.mxu0 %vm134_vm0, %v81_v1  ;;  %4250 = vmatpush1.msk.msra.mxu1 %vm134_vm0, %v82_v2  ;;  %v418_v19 = vld [vmem:[#allocation4 + $0x68] sm:$0xff]  ;;  %v416_v20 = vld [vmem:[#allocation4 + $0x58] sm:$0xff] }
  0x3a   :  { %v6067_v17 = vpack.c.bf16 %v411_v16, %v407_v15  ;;  %4241 = vmatmul.mubr.msk.f32.vlgmr.msra.gmra.mrb[0].mxu0 %vm109_vm1, %v73_v3  ;;  %4251 = vmatmul.mubr.msk.f32.vlgmr.msra.gmra.mrb[0].mxu1 %vm109_vm1, %v73_v3  ;;  %v420_v21 = vld [vmem:[#allocation4 + $0x78] sm:$0xff]  ;;  %v413_v22 = vld [vmem:[#allocation4 + $0x40] sm:$0xff]  ;;  %v74_v24 = vld [vmem:[%s7123_s0 + $0x8] sm:$0xff]  ;;  %v6076_v25 = vpack.c.bf16 %v418_v19, %v414_v18 }
  0x3b   :  { %v417_v23 = vld [vmem:[#allocation4 + $0x60] sm:$0xff]  ;;  %4361 = vmatprep.subr.bf16.mxu0 %v6057_v9  ;;  %4393 = vmatprep.subr.bf16.mxu1 %v6061_v13  ;;  %v6078_v26 = vpack.c.bf16 %v420_v21, %v416_v20  ;;  %v415_v27 = vld [vmem:[#allocation4 + $0x50] sm:$0xff]  ;;  %v422_v31 = vld [vmem:[#allocation4 + $0x88] sm:$0xff] }
  0x3c   :  { %v419_v28 = vld [vmem:[#allocation4 + $0x70] sm:$0xff]  ;;  %4363 = vmatpush1.bf16.msra.mxu0 %v6063_v14  ;;  %4395 = vmatpush1.bf16.msra.mxu1 %v6067_v17  ;;  %v6082_v29 = vpack.c.bf16 %v417_v23, %v413_v22  ;;  %v426_v32 = vld [vmem:[#allocation4 + $0xa8] sm:$0xff]  ;;  %v424_v33 = vld [vmem:[#allocation4 + $0x98] sm:$0xff] }
  0x3d   :  { %v6084_v30 = vpack.c.bf16 %v419_v28, %v415_v27  ;;  %213 = vmatprep.mubr.f32.mxu0 %v5941_v0  ;;  %326 = vmatprep.mubr.f32.mxu1 %v5941_v0  ;;  %v428_v34 = vld [vmem:[#allocation4 + $0xb8] sm:$0xff]  ;;  %v421_v35 = vld [vmem:[#allocation4 + $0x80] sm:$0xff]  ;;  %v423_v37 = vld [vmem:[#allocation4 + $0x90] sm:$0xff]  ;;  %v6095_v40 = vpack.c.bf16 %v426_v32, %v422_v31 }
  0x3e   :  { %v425_v36 = vld [vmem:[#allocation4 + $0xa0] sm:$0xff]  ;;  %4242 = vmatmul.mubr.msk.f32.gmra.mrb[2].mxu0 %vm109_vm1, %v74_v24  ;;  %4252 = vmatmul.mubr.msk.f32.gmra.mrb[2].mxu1 %vm109_vm1, %v74_v24  ;;  %v427_v38 = vld [vmem:[#allocation4 + $0xb0] sm:$0xff]  ;;  %v6097_v41 = vpack.c.bf16 %v428_v34, %v424_v33  ;;  %v430_v42 = vld [vmem:[#allocation4 + $0xc8] sm:$0xff] }
  0x3f   :  { %4365 = vmatprep.subr.bf16.mxu0 %v6076_v25  ;;  %4397 = vmatprep.subr.bf16.mxu1 %v6078_v26  ;;  %v75_v39 = vld [vmem:[%s7123_s0 + $0x10] sm:$0xff]  ;;  %v434_v43 = vld [vmem:[#allocation4 + $0xe8] sm:$0xff]  ;;  %v6101_v44 = vpack.c.bf16 %v425_v36, %v421_v35  ;;  %v6103_v45 = vpack.c.bf16 %v427_v38, %v423_v37  ;;  %v432_v46 = vld [vmem:[#allocation4 + $0xd8] sm:$0xff] }
  0x40   :  { %4367 = vmatpush1.bf16.msra.mxu0 %v6082_v29  ;;  %4399 = vmatpush1.bf16.msra.mxu1 %v6084_v30  ;;  %v436_v47 = vld [vmem:[#allocation4 + $0xf8] sm:$0xff]  ;;  %v429_v48 = vld [vmem:[#allocation4 + $0xc0] sm:$0xff]  ;;  %v431_v50 = vld [vmem:[#allocation4 + $0xd0] sm:$0xff]  ;;  %v6114_v53 = vpack.c.bf16 %v434_v43, %v430_v42 }
  0x41   :  { %219 = vmatprep.mubr.f32.mxu0 %v5941_v0  ;;  %332 = vmatprep.mubr.f32.mxu1 %v5941_v0  ;;  %v433_v49 = vld [vmem:[#allocation4 + $0xe0] sm:$0xff]  ;;  %v435_v51 = vld [vmem:[#allocation4 + $0xf0] sm:$0xff]  ;;  %v76_v52 = vld [vmem:[%s7123_s0 + $0x18] sm:$0xff]  ;;  %v6116_v54 = vpack.c.bf16 %v436_v47, %v432_v46 }
  0x42   :  { %4243 = vmatmul.mubr.msk.f32.gmra.mrb[4].mxu0 %vm109_vm1, %v75_v39  ;;  %4253 = vmatmul.mubr.msk.f32.gmra.mrb[4].mxu1 %vm109_vm1, %v75_v39  ;;  %v438_v55 = vld [vmem:[#allocation4 + $0x108] sm:$0xff]  ;;  %v6120_v57 = vpack.c.bf16 %v433_v49, %v429_v48  ;;  %v6122_v58 = vpack.c.bf16 %v435_v51, %v431_v50  ;;  %v440_v59 = vld [vmem:[#allocation4 + $0x118] sm:$0xff]  ;;  %v437_v61 = vld [vmem:[#allocation4 + $0x100] sm:$0xff] }
  0x43   :  { %4369 = vmatprep.subr.bf16.mxu0 %v6095_v40  ;;  %4401 = vmatprep.subr.bf16.mxu1 %v6097_v41  ;;  %v442_v56 = vld [vmem:[#allocation4 + $0x128] sm:$0xff]  ;;  %v444_v60 = vld [vmem:[#allocation4 + $0x138] sm:$0xff]  ;;  %v441_v62 = vld [vmem:[#allocation4 + $0x120] sm:$0xff] }
  0x44   :  { %4371 = vmatpush1.bf16.msra.mxu0 %v6101_v44  ;;  %4403 = vmatpush1.bf16.msra.mxu1 %v6103_v45  ;;  %v439_v63 = vld [vmem:[#allocation4 + $0x110] sm:$0xff]  ;;  %v77_v2 = vld [vmem:[%s7123_s0 + $0x20] sm:$0xff]  ;;  %v6133_v3 = vpack.c.bf16 %v442_v56, %v438_v55  ;;  %v6135_v4 = vpack.c.bf16 %v444_v60, %v440_v59  ;;  %v446_v5 = vld [vmem:[#allocation4 + $0x148] sm:$0xff]  ;;  %v6139_v7 = vpack.c.bf16 %v441_v62, %v437_v61  ;;  %v85_v62 = vlaneseq }
  0x45   :  { %225 = vmatprep.mubr.f32.mxu0 %v5941_v0  ;;  %338 = vmatprep.mubr.f32.mxu1 %v5941_v0  ;;  %v443_v1 = vld [vmem:[#allocation4 + $0x130] sm:$0xff]  ;;  %v450_v6 = vld [vmem:[#allocation4 + $0x168] sm:$0xff]  ;;  %v448_v10 = vld [vmem:[#allocation4 + $0x158] sm:$0xff] }
  0x46   :  { %4244 = vmatmul.mubr.msk.f32.gmra.mrb[6].mxu0 %vm109_vm1, %v76_v52  ;;  %4254 = vmatmul.mubr.msk.f32.gmra.mrb[6].mxu1 %vm109_vm1, %v76_v52  ;;  %v6141_v8 = vpack.c.bf16 %v443_v1, %v439_v63  ;;  %v452_v11 = vld [vmem:[#allocation4 + $0x178] sm:$0xff]  ;;  %v445_v12 = vld [vmem:[#allocation4 + $0x140] sm:$0xff]  ;;  %v447_v16 = vld [vmem:[#allocation4 + $0x150] sm:$0xff]  ;;  %v6152_v20 = vpack.c.bf16 %v450_v6, %v446_v5  ;;  %v6249_v63 = vshrl.u32 %v85_v62, 7 }
  0x47   :  { %4373 = vmatprep.subr.bf16.mxu0 %v6114_v53  ;;  %4405 = vmatprep.subr.bf16.mxu1 %v6116_v54  ;;  %v449_v15 = vld [vmem:[#allocation4 + $0x160] sm:$0xff]  ;;  %v451_v18 = vld [vmem:[#allocation4 + $0x170] sm:$0xff]  ;;  %v78_v19 = vld [vmem:[%s7123_s0 + $0x28] sm:$0xff]  ;;  %v6154_v21 = vpack.c.bf16 %v452_v11, %v448_v10 }
  0x48   :  { %4375 = vmatpush1.bf16.msra.mxu0 %v6120_v57  ;;  %4407 = vmatpush1.bf16.msra.mxu1 %v6122_v58  ;;  %v454_v22 = vld [vmem:[#allocation4 + $0x188] sm:$0xff]  ;;  %v6158_v24 = vpack.c.bf16 %v449_v15, %v445_v12  ;;  %v6160_v27 = vpack.c.bf16 %v451_v18, %v447_v16  ;;  %v456_v28 = vld [vmem:[#allocation4 + $0x198] sm:$0xff]  ;;  %v453_v32 = vld [vmem:[#allocation4 + $0x180] sm:$0xff]  ;;  %v87_v1 = vsub.s32 0, %v6249_v63  ;;  %v91_v5 = vsub.s32 1, %v6249_v63 }
  0x49   :  { %231 = vmatprep.mubr.f32.mxu0 %v5941_v0  ;;  %344 = vmatprep.mubr.f32.mxu1 %v5941_v0  ;;  %v458_v23 = vld [vmem:[#allocation4 + $0x1a8] sm:$0xff]  ;;  %v460_v31 = vld [vmem:[#allocation4 + $0x1b8] sm:$0xff]  ;;  %v457_v33 = vld [vmem:[#allocation4 + $0x1a0] sm:$0xff]  ;;  %v99_v11 = vsub.s32 3, %v6249_v63 }
  0x4a   :  { %4245 = vmatmul.mubr.msk.f32.gmra.mrb[8].mxu0 %vm109_vm1, %v77_v2  ;;  %4255 = vmatmul.mubr.msk.f32.gmra.mrb[8].mxu1 %vm109_vm1, %v77_v2  ;;  %v455_v34 = vld [vmem:[#allocation4 + $0x190] sm:$0xff]  ;;  %v6171_v37 = vpack.c.bf16 %v458_v23, %v454_v22  ;;  %v6173_v38 = vpack.c.bf16 %v460_v31, %v456_v28  ;;  %v462_v39 = vld [vmem:[#allocation4 + $0x1c8] sm:$0xff]  ;;  %v6177_v43 = vpack.c.bf16 %v457_v33, %v453_v32  ;;  %v464_v47 = vld [vmem:[#allocation4 + $0x1d8] sm:$0xff]  ;;  %v95_v28 = vsub.s32 2, %v6249_v63 }
  0x4b   :  { %4377 = vmatprep.subr.bf16.mxu0 %v6133_v3  ;;  %4409 = vmatprep.subr.bf16.mxu1 %v6135_v4  ;;  %v459_v35 = vld [vmem:[#allocation4 + $0x1b0] sm:$0xff]  ;;  %v466_v42 = vld [vmem:[#allocation4 + $0x1e8] sm:$0xff]  ;;  %v468_v48 = vld [vmem:[#allocation4 + $0x1f8] sm:$0xff] }
  0x4c   :  { %4379 = vmatpush1.bf16.msra.mxu0 %v6139_v7  ;;  %4411 = vmatpush1.bf16.msra.mxu1 %v6141_v8  ;;  %v79_v36 = vld [vmem:[%s7123_s0 + $0x30] sm:$0xff]  ;;  %v6179_v46 = vpack.c.bf16 %v459_v35, %v455_v34  ;;  %v461_v49 = vld [vmem:[#allocation4 + $0x1c0] sm:$0xff]  ;;  %v80_v55 = vld [vmem:[%s7123_s0 + $0x38] sm:$0xff]  ;;  %v6190_v56 = vpack.c.bf16 %v466_v42, %v462_v39  ;;  %v6192_v59 = vpack.c.bf16 %v468_v48, %v464_v47 }
  0x4d   :  { %237 = vmatprep.mubr.f32.mxu0 %v5941_v0  ;;  %350 = vmatprep.mubr.f32.mxu1 %v5941_v0  ;;  %v465_v50 = vld [vmem:[#allocation4 + $0x1e0] sm:$0xff]  ;;  %v463_v51 = vld [vmem:[#allocation4 + $0x1d0] sm:$0xff] }
  0x4e   :  { %4246 = vmatmul.mubr.msk.f32.gmra.mrb[10].mxu0 %vm109_vm1, %v78_v19  ;;  %4256 = vmatmul.mubr.msk.f32.gmra.mrb[10].mxu1 %vm109_vm1, %v78_v19  ;;  %v467_v52 = vld [vmem:[#allocation4 + $0x1f0] sm:$0xff]  ;;  %v6196_v60 = vpack.c.bf16 %v465_v50, %v461_v49  ;;  %v83_v2 = vld [vmem:[%s7126_s3] sm:$0xf] }
  0x4f   :  { %4381 = vmatprep.subr.bf16.mxu0 %v6152_v20  ;;  %4413 = vmatprep.subr.bf16.mxu1 %v6154_v21  ;;  %v6198_v61 = vpack.c.bf16 %v467_v52, %v463_v51  ;;  %v6258_v6 = vrot.slane %v83_v2, %v87_v1  ;;  %v6269_v23 = vrot.slane %v83_v2, %v99_v11 }
  0x50   :  { %4383 = vmatpush1.bf16.msra.mxu0 %v6158_v24  ;;  %4415 = vmatpush1.bf16.msra.mxu1 %v6160_v27  ;;  %v6275_v32 = vrot.slane %v83_v2, %v95_v28 }
  0x51   :  { %243 = vmatprep.mubr.f32.mxu0 %v5941_v0  ;;  %356 = vmatprep.mubr.f32.mxu1 %v5941_v0 }
  0x52   :  { %4247 = vmatmul.mubr.msk.f32.gmra.mrb[12].mxu0 %vm109_vm1, %v79_v36  ;;  %4257 = vmatmul.mubr.msk.f32.gmra.mrb[12].mxu1 %vm109_vm1, %v79_v36 }
  0x53   :  { %4385 = vmatprep.subr.bf16.mxu0 %v6171_v37  ;;  %4417 = vmatprep.subr.bf16.mxu1 %v6173_v38 }
  0x54   :  { %4387 = vmatpush1.bf16.msra.mxu0 %v6177_v43  ;;  %4419 = vmatpush1.bf16.msra.mxu1 %v6179_v46 }
  0x55   :  { %249 = vmatprep.mubr.f32.mxu0 %v5941_v0  ;;  %362 = vmatprep.mubr.f32.mxu1 %v5941_v0 }
  0x56   :  { %4248 = vmatmul.mubr.msk.f32.gmra.mrb[14].mxu0 %vm109_vm1, %v80_v55  ;;  %4258 = vmatmul.mubr.msk.f32.gmra.mrb[14].mxu1 %vm109_vm1, %v80_v55 }
  0x57   :  { %4389 = vmatprep.subr.bf16.mxu0 %v6190_v56  ;;  %4421 = vmatprep.subr.bf16.mxu1 %v6192_v59 }
  0x58   :  { %4391 = vmatpush1.bf16.msra.mxu0 %v6196_v60  ;;  %4423 = vmatpush1.bf16.msra.mxu1 %v6198_v61 }
  0x59   :  { %533 = vmatprep.mubr.f32.mxu0 %v5941_v0  ;;  %604 = vmatprep.mubr.f32.mxu1 %v5941_v0 }
  0x5a   :  { %4425 = vmatprep.subr.bf16.mxu0 %v6057_v9  ;;  %4457 = vmatprep.subr.bf16.mxu1 %v6061_v13 }
  0x5b   :  { %534 = vmatmul.mubr.f32.vlgmr.msra.gmra.mrb[0].mxu0 %v5941_v0  ;;  %605 = vmatmul.mubr.f32.vlgmr.msra.gmra.mrb[0].mxu1 %v5941_v0 }
  0x5c   :  { %4427 = vmatpush1.bf16.msra.mxu0 %v6063_v14  ;;  %4459 = vmatpush1.bf16.msra.mxu1 %v6067_v17 }
  0x5d   :  { %4429 = vmatprep.subr.bf16.mxu0 %v6076_v25  ;;  %4461 = vmatprep.subr.bf16.mxu1 %v6078_v26 }
  0x5e   :  { %772 = vmatprep.mubr.f32.mxu0 %v5941_v0  ;;  %843 = vmatprep.mubr.f32.mxu1 %v5941_v0 }
  0x60   :  { %4431 = vmatpush1.bf16.msra.mxu0 %v6082_v29  ;;  %4463 = vmatpush1.bf16.msra.mxu1 %v6084_v30 }
  0x61   :  { %4433 = vmatprep.subr.bf16.mxu0 %v6095_v40  ;;  %4465 = vmatprep.subr.bf16.mxu1 %v6097_v41 }
  0x64   :  { %4435 = vmatpush1.bf16.msra.mxu0 %v6101_v44  ;;  %4467 = vmatpush1.bf16.msra.mxu1 %v6103_v45 }
  0x65   :  { %4437 = vmatprep.subr.bf16.mxu0 %v6114_v53  ;;  %4469 = vmatprep.subr.bf16.mxu1 %v6116_v54 }
  0x68   :  { %4439 = vmatpush1.bf16.msra.mxu0 %v6120_v57  ;;  %4471 = vmatpush1.bf16.msra.mxu1 %v6122_v58 }
  0x69   :  { %4441 = vmatprep.subr.bf16.mxu0 %v6133_v3  ;;  %4473 = vmatprep.subr.bf16.mxu1 %v6135_v4 }
  0x6c   :  { %4443 = vmatpush1.bf16.msra.mxu0 %v6139_v7  ;;  %4475 = vmatpush1.bf16.msra.mxu1 %v6141_v8 }
  0x6d   :  { %4445 = vmatprep.subr.bf16.mxu0 %v6152_v20  ;;  %4477 = vmatprep.subr.bf16.mxu1 %v6154_v21 }
  0x70   :  { %4447 = vmatpush1.bf16.msra.mxu0 %v6158_v24  ;;  %4479 = vmatpush1.bf16.msra.mxu1 %v6160_v27 }
  0x71   :  { %4449 = vmatprep.subr.bf16.mxu0 %v6171_v37  ;;  %4481 = vmatprep.subr.bf16.mxu1 %v6173_v38 }
  0x74   :  { %4451 = vmatpush1.bf16.msra.mxu0 %v6177_v43  ;;  %4483 = vmatpush1.bf16.msra.mxu1 %v6179_v46 }
  0x75   :  { %4453 = vmatprep.subr.bf16.mxu0 %v6190_v56  ;;  %4485 = vmatprep.subr.bf16.mxu1 %v6192_v59 }
  0x78   :  { %4455 = vmatpush1.bf16.msra.mxu0 %v6196_v60  ;;  %4487 = vmatpush1.bf16.msra.mxu1 %v6198_v61 }
  0x79   :  { %4489 = vmatprep.subr.bf16.mxu0 %v6057_v9  ;;  %4521 = vmatprep.subr.bf16.mxu1 %v6061_v13  ;;  %v6262_v9 = vrot.slane %v83_v2, %v91_v5 }
 0x12e   :  { %v535_v13 = vpop.f32.mrb[0].mxu0  ;;  %v606_v10 = vpop.f32.mrb[0].mxu1 }
 0x12f   :  { %v5472_v12 = vadd.f32 %v535_v13, %v6258_v6  ;;  %v537_v15 = vpop.f32.mrb[1].mxu0  ;;  %v608_v16 = vpop.f32.mrb[1].mxu1  ;;  %v5488_v34 = vadd.f32 %v606_v10, %v6275_v32 }
 0x130   :  { %v5473_v18 = vadd.f32 %v537_v15, %v6262_v9  ;;  %v5489_v31 = vadd.f32 %v608_v16, %v6269_v23 }
 0x131   :  { %v4259_v19 = vmul.f32 -1.442695, %v5472_v12 }
 0x132   :  { %v4260_v22 = vmul.f32 -1.442695, %v5473_v18  ;;  %v4261_v33 = vmul.f32 -1.442695, %v5489_v31 }
 0x133   :  { %5610 = vpow2.f32 %v4259_v19 }
 0x134   :  { %5612 = vpow2.f32 %v4260_v22 }
 0x135   :  { %5614 = vpow2.f32 %v4261_v33 }
 0x136   :  { %5616 = vtanh.f32 %v5488_v34 }
 0x13d   :  { %v5611_v35 = vpop.eup %5610 }
 0x13e   :  { %v5613_v36 = vpop.eup %5612  ;;  %v621_v39 = vadd.f32 1.0, %v5611_v35 }
 0x13f   :  { %v622_v42 = vadd.f32 1.0, %v5613_v36  ;;  %v5615_v47 = vpop.eup %5614 }
 0x140   :  { %5618 = vrcp.f32 %v621_v39  ;;  %v5617_v48 = vpop.eup %5616  ;;  %v631_v52 = vadd.f32 1.0, %v5615_v47 }
 0x141   :  { %5620 = vrcp.f32 %v622_v42 }
 0x142   :  { %5622 = vrcp.f32 %v631_v52 }
 0x14a   :  { %v5619_v49 = vpop.eup %5618 }
 0x14b   :  { %v5621_v50 = vpop.eup %5620  ;;  %v635_v51 = vmul.f32 %v5619_v49, %v5617_v48 }
 0x14c   :  { %v634_v55 = vmul.f32 0.0, %v5621_v50  ;;  %v5623_v13 = vpop.eup %5622 }
 0x14e   :  { %v6278_v2 = vadd.f32 %v635_v51, %v634_v55 }
 0x150   :  { %5624 = vtanh.f32 %v6278_v2 }
 0x15a   :  { %v5625_v10 = vpop.eup %5624 }
 0x15b   :  { %v6281_v12 = vmul.f32 %v5625_v10, %v5623_v13  ;;  %v1123_v10 = vld [vmem:[#allocation4 + $0x8] sm:$0xff] }
 0x15d   :  { %773 = vmatmul.mubr.f32.vlgmr.msra.gmra.mrb[2].mxu0 %v6281_v12  ;;  %844 = vmatmul.mubr.f32.vlgmr.msra.gmra.mrb[2].mxu1 %v6281_v12 }
 0x15e   :  { %4491 = vmatpush1.bf16.msra.mxu0 %v6063_v14  ;;  %4523 = vmatpush1.bf16.msra.mxu1 %v6067_v17 }
 0x15f   :  { %4493 = vmatprep.subr.bf16.mxu0 %v6076_v25  ;;  %4525 = vmatprep.subr.bf16.mxu1 %v6078_v26 }
 0x160   :  { %1011 = vmatprep.mubr.f32.mxu0 %v5941_v0  ;;  %1082 = vmatprep.mubr.f32.mxu1 %v5941_v0 }
 0x162   :  { %4495 = vmatpush1.bf16.msra.mxu0 %v6082_v29  ;;  %4527 = vmatpush1.bf16.msra.mxu1 %v6084_v30 }
 0x163   :  { %4497 = vmatprep.subr.bf16.mxu0 %v6095_v40  ;;  %4529 = vmatprep.subr.bf16.mxu1 %v6097_v41 }
 0x166   :  { %4499 = vmatpush1.bf16.msra.mxu0 %v6101_v44  ;;  %4531 = vmatpush1.bf16.msra.mxu1 %v6103_v45 }
 0x167   :  { %4501 = vmatprep.subr.bf16.mxu0 %v6114_v53  ;;  %4533 = vmatprep.subr.bf16.mxu1 %v6116_v54 }
 0x16a   :  { %4503 = vmatpush1.bf16.msra.mxu0 %v6120_v57  ;;  %4535 = vmatpush1.bf16.msra.mxu1 %v6122_v58 }
 0x16b   :  { %4505 = vmatprep.subr.bf16.mxu0 %v6133_v3  ;;  %4537 = vmatprep.subr.bf16.mxu1 %v6135_v4 }
 0x16e   :  { %4507 = vmatpush1.bf16.msra.mxu0 %v6139_v7  ;;  %4539 = vmatpush1.bf16.msra.mxu1 %v6141_v8 }
 0x16f   :  { %4509 = vmatprep.subr.bf16.mxu0 %v6152_v20  ;;  %4541 = vmatprep.subr.bf16.mxu1 %v6154_v21 }
 0x172   :  { %4511 = vmatpush1.bf16.msra.mxu0 %v6158_v24  ;;  %4543 = vmatpush1.bf16.msra.mxu1 %v6160_v27 }
 0x173   :  { %4513 = vmatprep.subr.bf16.mxu0 %v6171_v37  ;;  %4545 = vmatprep.subr.bf16.mxu1 %v6173_v38 }
 0x176   :  { %4515 = vmatpush1.bf16.msra.mxu0 %v6177_v43  ;;  %4547 = vmatpush1.bf16.msra.mxu1 %v6179_v46 }
 0x177   :  { %4517 = vmatprep.subr.bf16.mxu0 %v6190_v56  ;;  %4549 = vmatprep.subr.bf16.mxu1 %v6192_v59 }
 0x17a   :  { %4519 = vmatpush1.bf16.msra.mxu0 %v6196_v60  ;;  %4551 = vmatpush1.bf16.msra.mxu1 %v6198_v61 }
 0x230   :  { %v774_v14 = vpop.f32.mrb[2].mxu0  ;;  %v845_v17 = vpop.f32.mrb[2].mxu1 }
 0x231   :  { %v5474_v25 = vadd.f32 %v774_v14, %v6258_v6  ;;  %v776_v26 = vpop.f32.mrb[3].mxu0  ;;  %v847_v29 = vpop.f32.mrb[3].mxu1  ;;  %v5490_v22 = vadd.f32 %v845_v17, %v6275_v32  ;;  %v1127_v14 = vld [vmem:[#allocation4 + $0x28] sm:$0xff] }
 0x232   :  { %v5475_v30 = vadd.f32 %v776_v26, %v6262_v9  ;;  %v5491_v18 = vadd.f32 %v847_v29, %v6269_v23  ;;  %v6331_v17 = vpack.c.bf16 %v1127_v14, %v1123_v10  ;;  %v1122_v26 = vld [vmem:[#allocation4] sm:$0xff]  ;;  %v1382_v10 = vld [vmem:[#allocation4 + $0xa8] sm:$0xff]  ;;  %v1380_v14 = vld [vmem:[#allocation4 + $0x98] sm:$0xff] }
 0x233   :  { %v4262_v15 = vmul.f32 -1.442695, %v5474_v25  ;;  %v1129_v25 = vld [vmem:[#allocation4 + $0x38] sm:$0xff]  ;;  %v1126_v29 = vld [vmem:[#allocation4 + $0x20] sm:$0xff] }
 0x234   :  { %v4263_v16 = vmul.f32 -1.442695, %v5475_v30  ;;  %v4264_v19 = vmul.f32 -1.442695, %v5491_v18  ;;  %v1128_v18 = vld [vmem:[#allocation4 + $0x30] sm:$0xff]  ;;  %4553 = vmatprep.subr.bf16.mxu0 %v6331_v17 }
 0x235   :  { %5626 = vpow2.f32 %v4262_v15  ;;  %v6335_v15 = vpack.c.bf16 %v1126_v29, %v1122_v26  ;;  %v1377_v26 = vld [vmem:[#allocation4 + $0x80] sm:$0xff] }
 0x236   :  { %5628 = vpow2.f32 %v4263_v16  ;;  %v1124_v16 = vld [vmem:[#allocation4 + $0x10] sm:$0xff]  ;;  %v1381_v29 = vld [vmem:[#allocation4 + $0xa0] sm:$0xff] }
 0x237   :  { %5630 = vpow2.f32 %v4264_v19  ;;  %v6338_v19 = vpack.c.bf16 %v1128_v18, %v1124_v16  ;;  %v6405_v18 = vpack.c.bf16 %v1381_v29, %v1377_v26  ;;  %v1403_v26 = vld [vmem:[#allocation4 + $0x150] sm:$0xff] }
 0x238   :  { %5632 = vtanh.f32 %v5490_v22  ;;  %v1131_v22 = vld [vmem:[#allocation4 + $0x48] sm:$0xff]  ;;  %v1407_v29 = vld [vmem:[#allocation4 + $0x170] sm:$0xff] }
 0x23f   :  { %v5627_v31 = vpop.eup %5626 }
 0x240   :  { %v5629_v33 = vpop.eup %5628  ;;  %v860_v34 = vadd.f32 1.0, %v5627_v31  ;;  %v1135_v31 = vld [vmem:[#allocation4 + $0x68] sm:$0xff] }
 0x241   :  { %v861_v35 = vadd.f32 1.0, %v5629_v33  ;;  %v5631_v36 = vpop.eup %5630  ;;  %v1133_v33 = vld [vmem:[#allocation4 + $0x58] sm:$0xff] }
 0x242   :  { %5634 = vrcp.f32 %v860_v34  ;;  %v5633_v39 = vpop.eup %5632  ;;  %v870_v49 = vadd.f32 1.0, %v5631_v36  ;;  %v6343_v34 = vpack.c.bf16 %v1135_v31, %v1131_v22  ;;  %v1130_v36 = vld [vmem:[#allocation4 + $0x40] sm:$0xff]  ;;  %v1379_v22 = vld [vmem:[#allocation4 + $0x90] sm:$0xff] }
 0x243   :  { %5636 = vrcp.f32 %v861_v35  ;;  %v1137_v35 = vld [vmem:[#allocation4 + $0x78] sm:$0xff]  ;;  %v1383_v31 = vld [vmem:[#allocation4 + $0xb0] sm:$0xff] }
 0x244   :  { %5638 = vrcp.f32 %v870_v49  ;;  %v1136_v49 = vld [vmem:[#allocation4 + $0x70] sm:$0xff] }
 0x24c   :  { %v5635_v42 = vpop.eup %5634 }
 0x24d   :  { %v5637_v47 = vpop.eup %5636  ;;  %v874_v48 = vmul.f32 %v5635_v42, %v5633_v39  ;;  %v1134_v39 = vld [vmem:[#allocation4 + $0x60] sm:$0xff]  ;;  %v6345_v42 = vpack.c.bf16 %v1137_v35, %v1133_v33  ;;  %v6408_v33 = vpack.c.bf16 %v1383_v31, %v1379_v22  ;;  %v1386_v35 = vld [vmem:[#allocation4 + $0xc8] sm:$0xff]  ;;  %v6444_v31 = vpack.c.bf16 %v1407_v29, %v1403_v26 }
 0x24e   :  { %v873_v50 = vmul.f32 %v5637_v47, %v6278_v2  ;;  %v5639_v52 = vpop.eup %5638  ;;  %v1125_v2 = vld [vmem:[#allocation4 + $0x18] sm:$0xff]  ;;  %v6347_v47 = vpack.c.bf16 %v1134_v39, %v1130_v36  ;;  %v1390_v36 = vld [vmem:[#allocation4 + $0xe8] sm:$0xff] }
 0x24f   :  { %v6333_v30 = vpack.c.bf16 %v1129_v25, %v1125_v2  ;;  %v1384_v25 = vld [vmem:[#allocation4 + $0xb8] sm:$0xff]  ;;  %v1410_v22 = vld [vmem:[#allocation4 + $0x188] sm:$0xff] }
 0x250   :  { %v6322_v51 = vadd.f32 %v874_v48, %v873_v50  ;;  %v1132_v48 = vld [vmem:[#allocation4 + $0x50] sm:$0xff]  ;;  %v6403_v16 = vpack.c.bf16 %v1384_v25, %v1380_v14  ;;  %v1388_v39 = vld [vmem:[#allocation4 + $0xd8] sm:$0xff] }
 0x251   :  { %4585 = vmatprep.subr.bf16.mxu1 %v6333_v30  ;;  %v6350_v50 = vpack.c.bf16 %v1136_v49, %v1132_v48  ;;  %v6413_v48 = vpack.c.bf16 %v1390_v36, %v1386_v35  ;;  %v1392_v49 = vld [vmem:[#allocation4 + $0xf8] sm:$0xff]  ;;  %v1414_v35 = vld [vmem:[#allocation4 + $0x1a8] sm:$0xff] }
 0x252   :  { %5640 = vtanh.f32 %v6322_v51  ;;  %v1412_v36 = vld [vmem:[#allocation4 + $0x198] sm:$0xff] }
 0x25c   :  { %v5641_v55 = vpop.eup %5640 }
 0x25d   :  { %v6325_v13 = vmul.f32 %v5641_v55, %v5639_v52 }
 0x25f   :  { %1012 = vmatmul.mubr.f32.vlgmr.msra.gmra.mrb[4].mxu0 %v6325_v13  ;;  %1083 = vmatmul.mubr.f32.vlgmr.msra.gmra.mrb[4].mxu1 %v6325_v13 }
 0x260   :  { %1250 = vmatprep.mubr.f32.mxu0 %v5941_v0  ;;  %1321 = vmatprep.mubr.f32.mxu1 %v5941_v0 }
 0x261   :  { %4555 = vmatpush1.bf16.msra.mxu0 %v6335_v15  ;;  %4587 = vmatpush1.bf16.msra.mxu1 %v6338_v19 }
 0x262   :  { %4557 = vmatprep.subr.bf16.mxu0 %v6343_v34  ;;  %4589 = vmatprep.subr.bf16.mxu1 %v6345_v42 }
 0x265   :  { %4559 = vmatpush1.bf16.msra.mxu0 %v6347_v47  ;;  %4591 = vmatpush1.bf16.msra.mxu1 %v6350_v50 }
 0x266   :  { %4561 = vmatprep.subr.bf16.mxu0 %v6095_v40  ;;  %4593 = vmatprep.subr.bf16.mxu1 %v6097_v41 }
 0x269   :  { %4563 = vmatpush1.bf16.msra.mxu0 %v6101_v44  ;;  %4595 = vmatpush1.bf16.msra.mxu1 %v6103_v45 }
 0x26a   :  { %4565 = vmatprep.subr.bf16.mxu0 %v6114_v53  ;;  %4597 = vmatprep.subr.bf16.mxu1 %v6116_v54 }
 0x26d   :  { %4567 = vmatpush1.bf16.msra.mxu0 %v6120_v57  ;;  %4599 = vmatpush1.bf16.msra.mxu1 %v6122_v58 }
 0x26e   :  { %4569 = vmatprep.subr.bf16.mxu0 %v6133_v3  ;;  %4601 = vmatprep.subr.bf16.mxu1 %v6135_v4 }
 0x271   :  { %4571 = vmatpush1.bf16.msra.mxu0 %v6139_v7  ;;  %4603 = vmatpush1.bf16.msra.mxu1 %v6141_v8 }
 0x272   :  { %4573 = vmatprep.subr.bf16.mxu0 %v6152_v20  ;;  %4605 = vmatprep.subr.bf16.mxu1 %v6154_v21 }
 0x275   :  { %4575 = vmatpush1.bf16.msra.mxu0 %v6158_v24  ;;  %4607 = vmatpush1.bf16.msra.mxu1 %v6160_v27 }
 0x276   :  { %4577 = vmatprep.subr.bf16.mxu0 %v6171_v37  ;;  %4609 = vmatprep.subr.bf16.mxu1 %v6173_v38 }
 0x279   :  { %4579 = vmatpush1.bf16.msra.mxu0 %v6177_v43  ;;  %4611 = vmatpush1.bf16.msra.mxu1 %v6179_v46 }
 0x27a   :  { %4581 = vmatprep.subr.bf16.mxu0 %v6190_v56  ;;  %4613 = vmatprep.subr.bf16.mxu1 %v6192_v59 }
 0x27d   :  { %4583 = vmatpush1.bf16.msra.mxu0 %v6196_v60  ;;  %4615 = vmatpush1.bf16.msra.mxu1 %v6198_v61 }
 0x27e   :  { %4617 = vmatprep.subr.bf16.mxu0 %v6331_v17  ;;  %4649 = vmatprep.subr.bf16.mxu1 %v6333_v30 }
 0x332   :  { %v1013_v40 = vpop.f32.mrb[4].mxu0  ;;  %v1084_v41 = vpop.f32.mrb[4].mxu1 }
 0x333   :  { %v5476_v44 = vadd.f32 %v1013_v40, %v6258_v6  ;;  %v1015_v45 = vpop.f32.mrb[5].mxu0  ;;  %v1086_v53 = vpop.f32.mrb[5].mxu1  ;;  %v5492_v7 = vadd.f32 %v1084_v41, %v6275_v32  ;;  %v1385_v40 = vld [vmem:[#allocation4 + $0xc0] sm:$0xff] }
 0x334   :  { %v5477_v54 = vadd.f32 %v1015_v45, %v6262_v9  ;;  %v5493_v3 = vadd.f32 %v1086_v53, %v6269_v23  ;;  %v1389_v41 = vld [vmem:[#allocation4 + $0xe0] sm:$0xff]  ;;  %v1387_v53 = vld [vmem:[#allocation4 + $0xd0] sm:$0xff] }
 0x335   :  { %v4265_v57 = vmul.f32 -1.442695, %v5476_v44  ;;  %v6415_v44 = vpack.c.bf16 %v1392_v49, %v1388_v39  ;;  %v6417_v45 = vpack.c.bf16 %v1389_v41, %v1385_v40  ;;  %v1416_v39 = vld [vmem:[#allocation4 + $0x1b8] sm:$0xff]  ;;  %v6447_v49 = vpack.c.bf16 %v1414_v35, %v1410_v22  ;;  %v1409_v41 = vld [vmem:[#allocation4 + $0x180] sm:$0xff] }
 0x336   :  { %v4266_v58 = vmul.f32 -1.442695, %v5477_v54  ;;  %v4267_v4 = vmul.f32 -1.442695, %v5493_v3  ;;  %v1391_v54 = vld [vmem:[#allocation4 + $0xf0] sm:$0xff]  ;;  %v1398_v3 = vld [vmem:[#allocation4 + $0x128] sm:$0xff]  ;;  %v6449_v40 = vpack.c.bf16 %v1416_v39, %v1412_v36 }
 0x337   :  { %5642 = vpow2.f32 %v4265_v57  ;;  %v6420_v57 = vpack.c.bf16 %v1391_v54, %v1387_v53  ;;  %v1413_v53 = vld [vmem:[#allocation4 + $0x1a0] sm:$0xff]  ;;  %v1411_v54 = vld [vmem:[#allocation4 + $0x190] sm:$0xff] }
 0x338   :  { %5644 = vpow2.f32 %v4266_v58  ;;  %v1394_v58 = vld [vmem:[#allocation4 + $0x108] sm:$0xff] }
 0x339   :  { %5646 = vpow2.f32 %v4267_v4  ;;  %v1396_v4 = vld [vmem:[#allocation4 + $0x118] sm:$0xff] }
 0x33a   :  { %5648 = vtanh.f32 %v5492_v7  ;;  %v6425_v7 = vpack.c.bf16 %v1398_v3, %v1394_v58  ;;  %v6452_v58 = vpack.c.bf16 %v1413_v53, %v1409_v41  ;;  %v1415_v3 = vld [vmem:[#allocation4 + $0x1b0] sm:$0xff] }
 0x341   :  { %v5643_v8 = vpop.eup %5642 }
 0x342   :  { %v5645_v20 = vpop.eup %5644  ;;  %v1099_v21 = vadd.f32 1.0, %v5643_v8  ;;  %v1400_v8 = vld [vmem:[#allocation4 + $0x138] sm:$0xff] }
 0x343   :  { %v1100_v24 = vadd.f32 1.0, %v5645_v20  ;;  %v5647_v27 = vpop.eup %5646  ;;  %v1393_v20 = vld [vmem:[#allocation4 + $0x100] sm:$0xff] }
 0x344   :  { %5650 = vrcp.f32 %v1099_v21  ;;  %v5649_v37 = vpop.eup %5648  ;;  %v1109_v56 = vadd.f32 1.0, %v5647_v27  ;;  %v1397_v21 = vld [vmem:[#allocation4 + $0x120] sm:$0xff] }
 0x345   :  { %5652 = vrcp.f32 %v1100_v24  ;;  %v6427_v24 = vpack.c.bf16 %v1400_v8, %v1396_v4  ;;  %v6429_v27 = vpack.c.bf16 %v1397_v21, %v1393_v20  ;;  %v1418_v4 = vld [vmem:[#allocation4 + $0x1c8] sm:$0xff]  ;;  %v6456_v20 = vpack.c.bf16 %v1415_v3, %v1411_v54 }
 0x346   :  { %5654 = vrcp.f32 %v1109_v56  ;;  %v1406_v56 = vld [vmem:[#allocation4 + $0x168] sm:$0xff] }
 0x347   :  { %v1422_v8 = vld [vmem:[#allocation4 + $0x1e8] sm:$0xff] }
 0x348   :  { %v6458_v21 = vpack.c.bf16 %v1422_v8, %v1418_v4 }
 0x34e   :  { %v5651_v38 = vpop.eup %5650 }
 0x34f   :  { %v5653_v43 = vpop.eup %5652  ;;  %v1113_v46 = vmul.f32 %v5651_v38, %v5649_v37  ;;  %v1395_v37 = vld [vmem:[#allocation4 + $0x110] sm:$0xff] }
 0x350   :  { %v1112_v59 = vmul.f32 %v5653_v43, %v6322_v51  ;;  %v5655_v61 = vpop.eup %5654  ;;  %v1378_v51 = vld [vmem:[#allocation4 + $0x88] sm:$0xff]  ;;  %v1399_v38 = vld [vmem:[#allocation4 + $0x130] sm:$0xff] }
 0x351   :  { %v6401_v2 = vpack.c.bf16 %v1382_v10, %v1378_v51  ;;  %v6432_v43 = vpack.c.bf16 %v1399_v38, %v1395_v37  ;;  %v1401_v51 = vld [vmem:[#allocation4 + $0x140] sm:$0xff]  ;;  %v1420_v37 = vld [vmem:[#allocation4 + $0x1d8] sm:$0xff] }
 0x352   :  { %v6386_v60 = vadd.f32 %v1113_v46, %v1112_v59  ;;  %v1402_v46 = vld [vmem:[#allocation4 + $0x148] sm:$0xff]  ;;  %v1404_v59 = vld [vmem:[#allocation4 + $0x158] sm:$0xff]  ;;  %v1405_v10 = vld [vmem:[#allocation4 + $0x160] sm:$0xff] }
 0x353   :  { %v6441_v25 = vpack.c.bf16 %v1405_v10, %v1401_v51  ;;  %v1424_v38 = vld [vmem:[#allocation4 + $0x1f8] sm:$0xff]  ;;  %v1423_v51 = vld [vmem:[#allocation4 + $0x1f0] sm:$0xff] }
 0x354   :  { %5656 = vtanh.f32 %v6386_v60 }
 0x35e   :  { %v5657_v52 = vpop.eup %5656 }
 0x35f   :  { %v6389_v55 = vmul.f32 %v5657_v52, %v5655_v61  ;;  %v6436_v61 = vpack.c.bf16 %v1406_v56, %v1402_v46  ;;  %v1408_v52 = vld [vmem:[#allocation4 + $0x178] sm:$0xff]  ;;  %v1417_v46 = vld [vmem:[#allocation4 + $0x1c0] sm:$0xff]  ;;  %v6461_v56 = vpack.c.bf16 %v1424_v38, %v1420_v37 }
 0x360   :  { %v6439_v14 = vpack.c.bf16 %v1408_v52, %v1404_v59  ;;  %v1421_v59 = vld [vmem:[#allocation4 + $0x1e0] sm:$0xff]  ;;  %v1419_v52 = vld [vmem:[#allocation4 + $0x1d0] sm:$0xff] }
 0x361   :  { %1251 = vmatmul.mubr.f32.vlgmr.msra.gmra.mrb[6].mxu0 %v6389_v55  ;;  %1322 = vmatmul.mubr.f32.vlgmr.msra.gmra.mrb[6].mxu1 %v6389_v55  ;;  %v6464_v10 = vpack.c.bf16 %v1421_v59, %v1417_v46  ;;  %v6468_v26 = vpack.c.bf16 %v1423_v51, %v1419_v52 }
 0x362   :  { %4619 = vmatpush1.bf16.msra.mxu0 %v6335_v15  ;;  %4651 = vmatpush1.bf16.msra.mxu1 %v6338_v19 }
 0x363   :  { %4621 = vmatprep.subr.bf16.mxu0 %v6343_v34  ;;  %4653 = vmatprep.subr.bf16.mxu1 %v6345_v42 }
 0x364   :  { %1489 = vmatprep.mubr.f32.mxu0 %v5941_v0  ;;  %1560 = vmatprep.mubr.f32.mxu1 %v5941_v0 }
 0x366   :  { %4623 = vmatpush1.bf16.msra.mxu0 %v6347_v47  ;;  %4655 = vmatpush1.bf16.msra.mxu1 %v6350_v50 }
 0x367   :  { %4625 = vmatprep.subr.bf16.mxu0 %v6401_v2  ;;  %4657 = vmatprep.subr.bf16.mxu1 %v6403_v16 }
 0x36a   :  { %4627 = vmatpush1.bf16.msra.mxu0 %v6405_v18  ;;  %4659 = vmatpush1.bf16.msra.mxu1 %v6408_v33 }
 0x36b   :  { %4629 = vmatprep.subr.bf16.mxu0 %v6413_v48  ;;  %4661 = vmatprep.subr.bf16.mxu1 %v6415_v44 }
 0x36e   :  { %4631 = vmatpush1.bf16.msra.mxu0 %v6417_v45  ;;  %4663 = vmatpush1.bf16.msra.mxu1 %v6420_v57 }
 0x36f   :  { %4633 = vmatprep.subr.bf16.mxu0 %v6425_v7  ;;  %4665 = vmatprep.subr.bf16.mxu1 %v6427_v24 }
 0x372   :  { %4635 = vmatpush1.bf16.msra.mxu0 %v6429_v27  ;;  %4667 = vmatpush1.bf16.msra.mxu1 %v6432_v43 }
 0x373   :  { %4637 = vmatprep.subr.bf16.mxu0 %v6436_v61  ;;  %4669 = vmatprep.subr.bf16.mxu1 %v6439_v14 }
 0x376   :  { %4639 = vmatpush1.bf16.msra.mxu0 %v6441_v25  ;;  %4671 = vmatpush1.bf16.msra.mxu1 %v6444_v31 }
 0x377   :  { %4641 = vmatprep.subr.bf16.mxu0 %v6447_v49  ;;  %4673 = vmatprep.subr.bf16.mxu1 %v6449_v40 }
 0x37a   :  { %4643 = vmatpush1.bf16.msra.mxu0 %v6452_v58  ;;  %4675 = vmatpush1.bf16.msra.mxu1 %v6456_v20 }
 0x37b   :  { %4645 = vmatprep.subr.bf16.mxu0 %v6458_v21  ;;  %4677 = vmatprep.subr.bf16.mxu1 %v6461_v56 }
 0x37e   :  { %4647 = vmatpush1.bf16.msra.mxu0 %v6464_v10  ;;  %4679 = vmatpush1.bf16.msra.mxu1 %v6468_v26 }
 0x37f   :  { %4681 = vmatprep.subr.bf16.mxu0 %v6331_v17  ;;  %4713 = vmatprep.subr.bf16.mxu1 %v6333_v30 }
 0x434   :  { %v1252_v29 = vpop.f32.mrb[6].mxu0  ;;  %v1323_v22 = vpop.f32.mrb[6].mxu1 }
 0x435   :  { %v5478_v35 = vadd.f32 %v1252_v29, %v6258_v6  ;;  %v1254_v36 = vpop.f32.mrb[7].mxu0  ;;  %v1325_v39 = vpop.f32.mrb[7].mxu1  ;;  %v5494_v8 = vadd.f32 %v1323_v22, %v6275_v32 }
 0x436   :  { %v5479_v41 = vadd.f32 %v1254_v36, %v6262_v9  ;;  %v5495_v3 = vadd.f32 %v1325_v39, %v6269_v23 }
 0x437   :  { %v4268_v53 = vmul.f32 -1.442695, %v5478_v35 }
 0x438   :  { %v4269_v54 = vmul.f32 -1.442695, %v5479_v41  ;;  %v4270_v4 = vmul.f32 -1.442695, %v5495_v3 }
 0x439   :  { %5658 = vpow2.f32 %v4268_v53 }
 0x43a   :  { %5660 = vpow2.f32 %v4269_v54 }
 0x43b   :  { %5662 = vpow2.f32 %v4270_v4 }
 0x43c   :  { %5664 = vtanh.f32 %v5494_v8 }
 0x443   :  { %v5659_v37 = vpop.eup %5658 }
 0x444   :  { %v5661_v38 = vpop.eup %5660  ;;  %v1338_v46 = vadd.f32 1.0, %v5659_v37 }
 0x445   :  { %v1339_v59 = vadd.f32 1.0, %v5661_v38  ;;  %v5663_v52 = vpop.eup %5662 }
 0x446   :  { %5666 = vrcp.f32 %v1338_v46  ;;  %v5665_v51 = vpop.eup %5664  ;;  %v1348_v41 = vadd.f32 1.0, %v5663_v52 }
 0x447   :  { %5668 = vrcp.f32 %v1339_v59 }
 0x448   :  { %5670 = vrcp.f32 %v1348_v41 }
 0x450   :  { %v5667_v29 = vpop.eup %5666 }
 0x451   :  { %v5669_v35 = vpop.eup %5668  ;;  %v1352_v36 = vmul.f32 %v5667_v29, %v5665_v51 }
 0x452   :  { %v1351_v53 = vmul.f32 %v5669_v35, %v6386_v60  ;;  %v5671_v22 = vpop.eup %5670 }
 0x454   :  { %v6480_v39 = vadd.f32 %v1352_v36, %v1351_v53 }
 0x456   :  { %5672 = vtanh.f32 %v6480_v39 }
 0x460   :  { %v5673_v54 = vpop.eup %5672 }
 0x461   :  { %v6483_v3 = vmul.f32 %v5673_v54, %v5671_v22 }
 0x463   :  { %1490 = vmatmul.mubr.f32.vlgmr.msra.gmra.mrb[8].mxu0 %v6483_v3  ;;  %1561 = vmatmul.mubr.f32.vlgmr.msra.gmra.mrb[8].mxu1 %v6483_v3 }
 0x464   :  { %4683 = vmatpush1.bf16.msra.mxu0 %v6335_v15  ;;  %4715 = vmatpush1.bf16.msra.mxu1 %v6338_v19 }
 0x465   :  { %4685 = vmatprep.subr.bf16.mxu0 %v6343_v34  ;;  %4717 = vmatprep.subr.bf16.mxu1 %v6345_v42 }
 0x466   :  { %1728 = vmatprep.mubr.f32.mxu0 %v5941_v0  ;;  %1799 = vmatprep.mubr.f32.mxu1 %v5941_v0 }
 0x468   :  { %4687 = vmatpush1.bf16.msra.mxu0 %v6347_v47  ;;  %4719 = vmatpush1.bf16.msra.mxu1 %v6350_v50 }
 0x469   :  { %4689 = vmatprep.subr.bf16.mxu0 %v6401_v2  ;;  %4721 = vmatprep.subr.bf16.mxu1 %v6403_v16 }
 0x46c   :  { %4691 = vmatpush1.bf16.msra.mxu0 %v6405_v18  ;;  %4723 = vmatpush1.bf16.msra.mxu1 %v6408_v33 }
 0x46d   :  { %4693 = vmatprep.subr.bf16.mxu0 %v6413_v48  ;;  %4725 = vmatprep.subr.bf16.mxu1 %v6415_v44 }
 0x470   :  { %4695 = vmatpush1.bf16.msra.mxu0 %v6417_v45  ;;  %4727 = vmatpush1.bf16.msra.mxu1 %v6420_v57 }
 0x471   :  { %4697 = vmatprep.subr.bf16.mxu0 %v6425_v7  ;;  %4729 = vmatprep.subr.bf16.mxu1 %v6427_v24 }
 0x474   :  { %4699 = vmatpush1.bf16.msra.mxu0 %v6429_v27  ;;  %4731 = vmatpush1.bf16.msra.mxu1 %v6432_v43 }
 0x475   :  { %4701 = vmatprep.subr.bf16.mxu0 %v6436_v61  ;;  %4733 = vmatprep.subr.bf16.mxu1 %v6439_v14 }
 0x478   :  { %4703 = vmatpush1.bf16.msra.mxu0 %v6441_v25  ;;  %4735 = vmatpush1.bf16.msra.mxu1 %v6444_v31 }
 0x479   :  { %4705 = vmatprep.subr.bf16.mxu0 %v6447_v49  ;;  %4737 = vmatprep.subr.bf16.mxu1 %v6449_v40 }
 0x47c   :  { %4707 = vmatpush1.bf16.msra.mxu0 %v6452_v58  ;;  %4739 = vmatpush1.bf16.msra.mxu1 %v6456_v20 }
 0x47d   :  { %4709 = vmatprep.subr.bf16.mxu0 %v6458_v21  ;;  %4741 = vmatprep.subr.bf16.mxu1 %v6461_v56 }
 0x480   :  { %4711 = vmatpush1.bf16.msra.mxu0 %v6464_v10  ;;  %4743 = vmatpush1.bf16.msra.mxu1 %v6468_v26 }
 0x481   :  { %4745 = vmatprep.subr.bf16.mxu0 %v6331_v17  ;;  %4777 = vmatprep.subr.bf16.mxu1 %v6333_v30 }
 0x536   :  { %v1491_v60 = vpop.f32.mrb[8].mxu0  ;;  %v1562_v4 = vpop.f32.mrb[8].mxu1 }
 0x537   :  { %v5480_v8 = vadd.f32 %v1491_v60, %v6258_v6  ;;  %v1493_v37 = vpop.f32.mrb[9].mxu0  ;;  %v1564_v38 = vpop.f32.mrb[9].mxu1  ;;  %v5496_v35 = vadd.f32 %v1562_v4, %v6275_v32 }
 0x538   :  { %v5481_v46 = vadd.f32 %v1493_v37, %v6262_v9  ;;  %v5497_v51 = vadd.f32 %v1564_v38, %v6269_v23 }
 0x539   :  { %v4271_v59 = vmul.f32 -1.442695, %v5480_v8 }
 0x53a   :  { %v4272_v52 = vmul.f32 -1.442695, %v5481_v46  ;;  %v4273_v29 = vmul.f32 -1.442695, %v5497_v51 }
 0x53b   :  { %5674 = vpow2.f32 %v4271_v59 }
 0x53c   :  { %5676 = vpow2.f32 %v4272_v52 }
 0x53d   :  { %5678 = vpow2.f32 %v4273_v29 }
 0x53e   :  { %5680 = vtanh.f32 %v5496_v35 }
 0x545   :  { %v5675_v17 = vpop.eup %5674 }
 0x546   :  { %v5677_v36 = vpop.eup %5676  ;;  %v1577_v30 = vadd.f32 1.0, %v5675_v17 }
 0x547   :  { %v1578_v41 = vadd.f32 1.0, %v5677_v36  ;;  %v5679_v53 = vpop.eup %5678 }
 0x548   :  { %5682 = vrcp.f32 %v1577_v30  ;;  %v5681_v22 = vpop.eup %5680  ;;  %v1587_v37 = vadd.f32 1.0, %v5679_v53 }
 0x549   :  { %5684 = vrcp.f32 %v1578_v41 }
 0x54a   :  { %5686 = vrcp.f32 %v1587_v37 }
 0x552   :  { %v5683_v54 = vpop.eup %5682 }
 0x553   :  { %v5685_v60 = vpop.eup %5684  ;;  %v1591_v8 = vmul.f32 %v5683_v54, %v5681_v22 }
 0x554   :  { %v1590_v46 = vmul.f32 %v5685_v60, %v6480_v39  ;;  %v5687_v4 = vpop.eup %5686 }
 0x556   :  { %v6526_v38 = vadd.f32 %v1591_v8, %v1590_v46 }
 0x558   :  { %5688 = vtanh.f32 %v6526_v38 }
 0x562   :  { %v5689_v59 = vpop.eup %5688 }
 0x563   :  { %v6529_v52 = vmul.f32 %v5689_v59, %v5687_v4 }
 0x565   :  { %1729 = vmatmul.mubr.f32.vlgmr.msra.gmra.mrb[10].mxu0 %v6529_v52  ;;  %1800 = vmatmul.mubr.f32.vlgmr.msra.gmra.mrb[10].mxu1 %v6529_v52 }
 0x566   :  { %4747 = vmatpush1.bf16.msra.mxu0 %v6335_v15  ;;  %4779 = vmatpush1.bf16.msra.mxu1 %v6338_v19 }
 0x567   :  { %4749 = vmatprep.subr.bf16.mxu0 %v6343_v34  ;;  %4781 = vmatprep.subr.bf16.mxu1 %v6345_v42 }
 0x568   :  { %1967 = vmatprep.mubr.f32.mxu0 %v5941_v0  ;;  %2038 = vmatprep.mubr.f32.mxu1 %v5941_v0 }
 0x56a   :  { %4751 = vmatpush1.bf16.msra.mxu0 %v6347_v47  ;;  %4783 = vmatpush1.bf16.msra.mxu1 %v6350_v50 }
 0x56b   :  { %4753 = vmatprep.subr.bf16.mxu0 %v6401_v2  ;;  %4785 = vmatprep.subr.bf16.mxu1 %v6403_v16 }
 0x56e   :  { %4755 = vmatpush1.bf16.msra.mxu0 %v6405_v18  ;;  %4787 = vmatpush1.bf16.msra.mxu1 %v6408_v33 }
 0x56f   :  { %4757 = vmatprep.subr.bf16.mxu0 %v6413_v48  ;;  %4789 = vmatprep.subr.bf16.mxu1 %v6415_v44 }
 0x572   :  { %4759 = vmatpush1.bf16.msra.mxu0 %v6417_v45  ;;  %4791 = vmatpush1.bf16.msra.mxu1 %v6420_v57 }
 0x573   :  { %4761 = vmatprep.subr.bf16.mxu0 %v6425_v7  ;;  %4793 = vmatprep.subr.bf16.mxu1 %v6427_v24 }
 0x576   :  { %4763 = vmatpush1.bf16.msra.mxu0 %v6429_v27  ;;  %4795 = vmatpush1.bf16.msra.mxu1 %v6432_v43 }
 0x577   :  { %4765 = vmatprep.subr.bf16.mxu0 %v6436_v61  ;;  %4797 = vmatprep.subr.bf16.mxu1 %v6439_v14 }
 0x57a   :  { %4767 = vmatpush1.bf16.msra.mxu0 %v6441_v25  ;;  %4799 = vmatpush1.bf16.msra.mxu1 %v6444_v31 }
 0x57b   :  { %4769 = vmatprep.subr.bf16.mxu0 %v6447_v49  ;;  %4801 = vmatprep.subr.bf16.mxu1 %v6449_v40 }
 0x57e   :  { %4771 = vmatpush1.bf16.msra.mxu0 %v6452_v58  ;;  %4803 = vmatpush1.bf16.msra.mxu1 %v6456_v20 }
 0x57f   :  { %4773 = vmatprep.subr.bf16.mxu0 %v6458_v21  ;;  %4805 = vmatprep.subr.bf16.mxu1 %v6461_v56 }
 0x582   :  { %4775 = vmatpush1.bf16.msra.mxu0 %v6464_v10  ;;  %4807 = vmatpush1.bf16.msra.mxu1 %v6468_v26 }
 0x638   :  { %v1730_v15 = vpop.f32.mrb[10].mxu0  ;;  %v1801_v19 = vpop.f32.mrb[10].mxu1 }
 0x639   :  { %v5482_v34 = vadd.f32 %v1730_v15, %v6258_v6  ;;  %v1732_v42 = vpop.f32.mrb[11].mxu0  ;;  %v1803_v47 = vpop.f32.mrb[11].mxu1  ;;  %v5498_v17 = vadd.f32 %v1801_v19, %v6275_v32 }
 0x63a   :  { %v5483_v50 = vadd.f32 %v1732_v42, %v6262_v9  ;;  %v5499_v29 = vadd.f32 %v1803_v47, %v6269_v23  ;;  %v2079_v42 = vld [vmem:[#allocation4 + $0x8] sm:$0xff] }
 0x63b   :  { %v4274_v39 = vmul.f32 -1.442695, %v5482_v34  ;;  %v2083_v47 = vld [vmem:[#allocation4 + $0x28] sm:$0xff] }
 0x63c   :  { %v4275_v51 = vmul.f32 -1.442695, %v5483_v50  ;;  %v4276_v35 = vmul.f32 -1.442695, %v5499_v29  ;;  %v4808_v50 = vpack.c.bf16 %v2083_v47, %v2079_v42  ;;  %v2082_v29 = vld [vmem:[#allocation4 + $0x20] sm:$0xff]  ;;  %v2092_v42 = vld [vmem:[#allocation4 + $0x70] sm:$0xff] }
 0x63d   :  { %5690 = vpow2.f32 %v4274_v39  ;;  %v2085_v39 = vld [vmem:[#allocation4 + $0x38] sm:$0xff] }
 0x63e   :  { %5692 = vpow2.f32 %v4275_v51  ;;  %v2078_v51 = vld [vmem:[#allocation4] sm:$0xff]  ;;  %4809 = vmatprep.subr.bf16.mxu0 %v4808_v50 }
 0x63f   :  { %5694 = vpow2.f32 %v4276_v35 }
 0x640   :  { %5696 = vtanh.f32 %v5498_v17  ;;  %v4810_v17 = vpack.c.bf16 %v2082_v29, %v2078_v51 }
 0x647   :  { %v5691_v36 = vpop.eup %5690 }
 0x648   :  { %v5693_v30 = vpop.eup %5692  ;;  %v1816_v41 = vadd.f32 1.0, %v5691_v36  ;;  %v2080_v36 = vld [vmem:[#allocation4 + $0x10] sm:$0xff] }
 0x649   :  { %v1817_v53 = vadd.f32 1.0, %v5693_v30  ;;  %v5695_v22 = vpop.eup %5694  ;;  %v2084_v30 = vld [vmem:[#allocation4 + $0x30] sm:$0xff] }
 0x64a   :  { %5698 = vrcp.f32 %v1816_v41  ;;  %v5697_v54 = vpop.eup %5696  ;;  %v1826_v46 = vadd.f32 1.0, %v5695_v22  ;;  %v4842_v41 = vpack.c.bf16 %v2084_v30, %v2080_v36  ;;  %v2091_v22 = vld [vmem:[#allocation4 + $0x68] sm:$0xff]  ;;  %v2323_v36 = vld [vmem:[#allocation6 + $0x10] sm:$0xff] }
 0x64b   :  { %5700 = vrcp.f32 %v1817_v53  ;;  %v2087_v53 = vld [vmem:[#allocation4 + $0x48] sm:$0xff]  ;;  %v2327_v30 = vld [vmem:[#allocation6 + $0x30] sm:$0xff] }
 0x64c   :  { %5702 = vrcp.f32 %v1826_v46  ;;  %v2090_v46 = vld [vmem:[#allocation4 + $0x60] sm:$0xff] }
 0x654   :  { %v5699_v60 = vpop.eup %5698 }
 0x655   :  { %v5701_v8 = vpop.eup %5700  ;;  %v1830_v37 = vmul.f32 %v5699_v60, %v5697_v54  ;;  %v2089_v54 = vld [vmem:[#allocation4 + $0x58] sm:$0xff]  ;;  %v4812_v60 = vpack.c.bf16 %v2091_v22, %v2087_v53  ;;  %v2334_v53 = vld [vmem:[#allocation6 + $0x68] sm:$0xff] }
 0x656   :  { %v1829_v4 = vmul.f32 %v5701_v8, %v6526_v38  ;;  %v5703_v15 = vpop.eup %5702  ;;  %v2081_v38 = vld [vmem:[#allocation4 + $0x18] sm:$0xff] }
 0x657   :  { %v4840_v35 = vpack.c.bf16 %v2085_v39, %v2081_v38  ;;  %v2093_v8 = vld [vmem:[#allocation4 + $0x78] sm:$0xff] }
 0x658   :  { %v6570_v59 = vadd.f32 %v1830_v37, %v1829_v4  ;;  %v2086_v37 = vld [vmem:[#allocation4 + $0x40] sm:$0xff]  ;;  %v4844_v4 = vpack.c.bf16 %v2093_v8, %v2089_v54  ;;  %v2332_v22 = vld [vmem:[#allocation6 + $0x58] sm:$0xff] }
 0x659   :  { %4841 = vmatprep.subr.bf16.mxu1 %v4840_v35  ;;  %v2321_v35 = vld [vmem:[#allocation6] sm:$0xff]  ;;  %v2336_v54 = vld [vmem:[#allocation6 + $0x78] sm:$0xff] }
 0x65a   :  { %5704 = vtanh.f32 %v6570_v59 }
 0x664   :  { %v5705_v19 = vpop.eup %5704 }
 0x665   :  { %v6573_v34 = vmul.f32 %v5705_v19, %v5703_v15  ;;  %v4814_v15 = vpack.c.bf16 %v2090_v46, %v2086_v37  ;;  %v2088_v19 = vld [vmem:[#allocation4 + $0x50] sm:$0xff]  ;;  %v4906_v46 = vpack.c.bf16 %v2327_v30, %v2323_v36  ;;  %v2353_v30 = vld [vmem:[#allocation6 + $0x100] sm:$0xff] }
 0x666   :  { %v4846_v47 = vpack.c.bf16 %v2092_v42, %v2088_v19  ;;  %v4908_v42 = vpack.c.bf16 %v2336_v54, %v2332_v22  ;;  %v2355_v54 = vld [vmem:[#allocation6 + $0x110] sm:$0xff] }
 0x667   :  { %1968 = vmatmul.mubr.f32.vlgmr.msra.gmra.mrb[12].mxu0 %v6573_v34  ;;  %2039 = vmatmul.mubr.f32.vlgmr.msra.gmra.mrb[12].mxu1 %v6573_v34 }
 0x668   :  { %2206 = vmatprep.mubr.f32.mxu0 %v5941_v0  ;;  %2277 = vmatprep.mubr.f32.mxu1 %v5941_v0 }
 0x669   :  { %4811 = vmatpush1.bf16.msra.mxu0 %v4810_v17  ;;  %4843 = vmatpush1.bf16.msra.mxu1 %v4842_v41  ;;  %v2325_v17 = vld [vmem:[#allocation6 + $0x20] sm:$0xff]  ;;  %v2330_v41 = vld [vmem:[#allocation6 + $0x48] sm:$0xff] }
 0x66a   :  { %4813 = vmatprep.subr.bf16.mxu0 %v4812_v60  ;;  %4845 = vmatprep.subr.bf16.mxu1 %v4844_v4  ;;  %v4874_v37 = vpack.c.bf16 %v2325_v17, %v2321_v35  ;;  %v2329_v4 = vld [vmem:[#allocation6 + $0x40] sm:$0xff]  ;;  %v4876_v19 = vpack.c.bf16 %v2334_v53, %v2330_v41  ;;  %v2360_v35 = vld [vmem:[#allocation6 + $0x138] sm:$0xff] }
 0x66b   :  { %v2357_v41 = vld [vmem:[#allocation6 + $0x120] sm:$0xff] }
 0x66d   :  { %4815 = vmatpush1.bf16.msra.mxu0 %v4814_v15  ;;  %4847 = vmatpush1.bf16.msra.mxu1 %v4846_v47  ;;  %v2333_v15 = vld [vmem:[#allocation6 + $0x60] sm:$0xff]  ;;  %v2331_v47 = vld [vmem:[#allocation6 + $0x50] sm:$0xff] }
 0x66e   :  { %4817 = vmatprep.subr.bf16.mxu0 %v6401_v2  ;;  %4849 = vmatprep.subr.bf16.mxu1 %v6403_v16  ;;  %v2322_v2 = vld [vmem:[#allocation6 + $0x8] sm:$0xff] }
 0x66f   :  { %v2326_v16 = vld [vmem:[#allocation6 + $0x28] sm:$0xff] }
 0x671   :  { %4819 = vmatpush1.bf16.msra.mxu0 %v6405_v18  ;;  %4851 = vmatpush1.bf16.msra.mxu1 %v6408_v33  ;;  %v2324_v18 = vld [vmem:[#allocation6 + $0x18] sm:$0xff] }
 0x672   :  { %4821 = vmatprep.subr.bf16.mxu0 %v6413_v48  ;;  %4853 = vmatprep.subr.bf16.mxu1 %v6415_v44  ;;  %v2328_v33 = vld [vmem:[#allocation6 + $0x38] sm:$0xff]  ;;  %v4872_v48 = vpack.c.bf16 %v2326_v16, %v2322_v2  ;;  %v2335_v2 = vld [vmem:[#allocation6 + $0x70] sm:$0xff]  ;;  %v2338_v16 = vld [vmem:[#allocation6 + $0x88] sm:$0xff] }
 0x673   :  { %v4904_v44 = vpack.c.bf16 %v2328_v33, %v2324_v18  ;;  %v2342_v18 = vld [vmem:[#allocation6 + $0xa8] sm:$0xff]  ;;  %v2340_v33 = vld [vmem:[#allocation6 + $0x98] sm:$0xff] }
 0x675   :  { %4823 = vmatpush1.bf16.msra.mxu0 %v6417_v45  ;;  %4855 = vmatpush1.bf16.msra.mxu1 %v6420_v57 }
 0x676   :  { %4825 = vmatprep.subr.bf16.mxu0 %v6425_v7  ;;  %4857 = vmatprep.subr.bf16.mxu1 %v6427_v24 }
 0x679   :  { %4827 = vmatpush1.bf16.msra.mxu0 %v6429_v27  ;;  %4859 = vmatpush1.bf16.msra.mxu1 %v6432_v43 }
 0x67a   :  { %4829 = vmatprep.subr.bf16.mxu0 %v6436_v61  ;;  %4861 = vmatprep.subr.bf16.mxu1 %v6439_v14 }
 0x67d   :  { %4831 = vmatpush1.bf16.msra.mxu0 %v6441_v25  ;;  %4863 = vmatpush1.bf16.msra.mxu1 %v6444_v31 }
 0x67e   :  { %4833 = vmatprep.subr.bf16.mxu0 %v6447_v49  ;;  %4865 = vmatprep.subr.bf16.mxu1 %v6449_v40 }
 0x681   :  { %4835 = vmatpush1.bf16.msra.mxu0 %v6452_v58  ;;  %4867 = vmatpush1.bf16.msra.mxu1 %v6456_v20 }
 0x682   :  { %4837 = vmatprep.subr.bf16.mxu0 %v6458_v21  ;;  %4869 = vmatprep.subr.bf16.mxu1 %v6461_v56 }
 0x685   :  { %4839 = vmatpush1.bf16.msra.mxu0 %v6464_v10  ;;  %4871 = vmatpush1.bf16.msra.mxu1 %v6468_v26 }
 0x686   :  { %4873 = vmatprep.subr.bf16.mxu0 %v4872_v48  ;;  %4905 = vmatprep.subr.bf16.mxu1 %v4904_v44  ;;  %v2344_v48 = vld [vmem:[#allocation6 + $0xb8] sm:$0xff]  ;;  %v4878_v44 = vpack.c.bf16 %v2333_v15, %v2329_v4  ;;  %v4890_v15 = vpack.c.bf16 %v2357_v41, %v2353_v30 }
 0x687   :  { %v2368_v4 = vld [vmem:[#allocation6 + $0x178] sm:$0xff] }
 0x73a   :  { %v1969_v45 = vpop.f32.mrb[12].mxu0  ;;  %v2040_v57 = vpop.f32.mrb[12].mxu1 }
 0x73b   :  { %v5484_v7 = vadd.f32 %v1969_v45, %v6258_v6  ;;  %v1971_v24 = vpop.f32.mrb[13].mxu0  ;;  %v2042_v27 = vpop.f32.mrb[13].mxu1  ;;  %v5500_v49 = vadd.f32 %v2040_v57, %v6275_v32  ;;  %v4910_v45 = vpack.c.bf16 %v2335_v2, %v2331_v47  ;;  %v2337_v57 = vld [vmem:[#allocation6 + $0x80] sm:$0xff] }
 0x73c   :  { %v5485_v43 = vadd.f32 %v1971_v24, %v6262_v9  ;;  %v5501_v25 = vadd.f32 %v2042_v27, %v6269_v23  ;;  %v4880_v24 = vpack.c.bf16 %v2342_v18, %v2338_v16  ;;  %v4912_v27 = vpack.c.bf16 %v2344_v48, %v2340_v33  ;;  %v2365_v47 = vld [vmem:[#allocation6 + $0x160] sm:$0xff]  ;;  %v2363_v18 = vld [vmem:[#allocation6 + $0x150] sm:$0xff]  ;;  %v2370_v48 = vld [vmem:[#allocation6 + $0x188] sm:$0xff] }
 0x73d   :  { %v4277_v61 = vmul.f32 -1.442695, %v5484_v7  ;;  %v2341_v7 = vld [vmem:[#allocation6 + $0xa0] sm:$0xff]  ;;  %v2367_v33 = vld [vmem:[#allocation6 + $0x170] sm:$0xff] }
 0x73e   :  { %v4278_v14 = vmul.f32 -1.442695, %v5485_v43  ;;  %v4279_v31 = vmul.f32 -1.442695, %v5501_v25  ;;  %v2339_v43 = vld [vmem:[#allocation6 + $0x90] sm:$0xff]  ;;  %v2350_v25 = vld [vmem:[#allocation6 + $0xe8] sm:$0xff] }
 0x73f   :  { %5706 = vpow2.f32 %v4277_v61  ;;  %v2343_v61 = vld [vmem:[#allocation6 + $0xb0] sm:$0xff] }
 0x740   :  { %5708 = vpow2.f32 %v4278_v14  ;;  %v2346_v14 = vld [vmem:[#allocation6 + $0xc8] sm:$0xff] }
 0x741   :  { %5710 = vpow2.f32 %v4279_v31  ;;  %v2348_v31 = vld [vmem:[#allocation6 + $0xd8] sm:$0xff] }
 0x742   :  { %5712 = vtanh.f32 %v5500_v49  ;;  %v2352_v49 = vld [vmem:[#allocation6 + $0xf8] sm:$0xff] }
 0x749   :  { %v5707_v40 = vpop.eup %5706 }
 0x74a   :  { %v5709_v58 = vpop.eup %5708  ;;  %v2055_v20 = vadd.f32 1.0, %v5707_v40  ;;  %v4882_v40 = vpack.c.bf16 %v2341_v7, %v2337_v57  ;;  %v2376_v57 = vld [vmem:[#allocation6 + $0x1b8] sm:$0xff] }
 0x74b   :  { %v2056_v21 = vadd.f32 1.0, %v5709_v58  ;;  %v5711_v56 = vpop.eup %5710  ;;  %v4914_v58 = vpack.c.bf16 %v2343_v61, %v2339_v43  ;;  %v2373_v43 = vld [vmem:[#allocation6 + $0x1a0] sm:$0xff] }
 0x74c   :  { %5714 = vrcp.f32 %v2055_v20  ;;  %v5713_v10 = vpop.eup %5712  ;;  %v2065_v39 = vadd.f32 1.0, %v5711_v56  ;;  %v2345_v20 = vld [vmem:[#allocation6 + $0xc0] sm:$0xff]  ;;  %v4884_v56 = vpack.c.bf16 %v2350_v25, %v2346_v14  ;;  %v2371_v25 = vld [vmem:[#allocation6 + $0x190] sm:$0xff] }
 0x74d   :  { %5716 = vrcp.f32 %v2056_v21  ;;  %v2349_v21 = vld [vmem:[#allocation6 + $0xe0] sm:$0xff] }
 0x74e   :  { %5718 = vrcp.f32 %v2065_v39  ;;  %v2358_v39 = vld [vmem:[#allocation6 + $0x128] sm:$0xff]  ;;  %v4886_v17 = vpack.c.bf16 %v2349_v21, %v2345_v20  ;;  %v2384_v20 = vld [vmem:[#allocation6 + $0x1f8] sm:$0xff] }
 0x756   :  { %v5715_v26 = vpop.eup %5714 }
 0x757   :  { %v5717_v38 = vpop.eup %5716  ;;  %v2069_v50 = vmul.f32 %v5715_v26, %v5713_v10  ;;  %v4916_v10 = vpack.c.bf16 %v2352_v49, %v2348_v31  ;;  %v2347_v26 = vld [vmem:[#allocation6 + $0xd0] sm:$0xff]  ;;  %v2378_v49 = vld [vmem:[#allocation6 + $0x1c8] sm:$0xff] }
 0x758   :  { %v2068_v51 = vmul.f32 %v5717_v38, %v6570_v59  ;;  %v5719_v60 = vpop.eup %5718  ;;  %v2351_v38 = vld [vmem:[#allocation6 + $0xf0] sm:$0xff] }
 0x759   :  { %v4918_v36 = vpack.c.bf16 %v2351_v38, %v2347_v26  ;;  %v2375_v31 = vld [vmem:[#allocation6 + $0x1b0] sm:$0xff] }
 0x75a   :  { %v6608_v29 = vadd.f32 %v2069_v50, %v2068_v51  ;;  %v2354_v50 = vld [vmem:[#allocation6 + $0x108] sm:$0xff]  ;;  %v2356_v51 = vld [vmem:[#allocation6 + $0x118] sm:$0xff] }
 0x75b   :  { %v4888_v53 = vpack.c.bf16 %v2358_v39, %v2354_v50  ;;  %v4920_v22 = vpack.c.bf16 %v2360_v35, %v2356_v51  ;;  %v2381_v50 = vld [vmem:[#allocation6 + $0x1e0] sm:$0xff]  ;;  %v2379_v39 = vld [vmem:[#allocation6 + $0x1d0] sm:$0xff] }
 0x75c   :  { %5720 = vtanh.f32 %v6608_v29  ;;  %v2383_v51 = vld [vmem:[#allocation6 + $0x1f0] sm:$0xff] }
 0x766   :  { %v5721_v8 = vpop.eup %5720 }
 0x767   :  { %v6611_v59 = vmul.f32 %v5721_v8, %v5719_v60  ;;  %v2359_v60 = vld [vmem:[#allocation6 + $0x130] sm:$0xff]  ;;  %v2362_v8 = vld [vmem:[#allocation6 + $0x148] sm:$0xff] }
 0x769   :  { %2207 = vmatmul.mubr.f32.vlgmr.msra.gmra.mrb[14].mxu0 %v6611_v59  ;;  %2278 = vmatmul.mubr.f32.vlgmr.msra.gmra.mrb[14].mxu1 %v6611_v59 }
 0x76a   :  { %4875 = vmatpush1.bf16.msra.mxu0 %v4874_v37  ;;  %4907 = vmatpush1.bf16.msra.mxu1 %v4906_v46  ;;  %v2366_v37 = vld [vmem:[#allocation6 + $0x168] sm:$0xff]  ;;  %v2364_v46 = vld [vmem:[#allocation6 + $0x158] sm:$0xff] }
 0x76b   :  { %4877 = vmatprep.subr.bf16.mxu0 %v4876_v19  ;;  %4909 = vmatprep.subr.bf16.mxu1 %v4908_v42  ;;  %v4922_v19 = vpack.c.bf16 %v2359_v60, %v2355_v54  ;;  %v2361_v42 = vld [vmem:[#allocation6 + $0x140] sm:$0xff]  ;;  %v4892_v2 = vpack.c.bf16 %v2366_v37, %v2362_v8  ;;  %v4924_v16 = vpack.c.bf16 %v2368_v4, %v2364_v46  ;;  %v2678_v54 = vld [vmem:[#allocation8 + $0x48] sm:$0xff]  ;;  %v2680_v8 = vld [vmem:[#allocation8 + $0x58] sm:$0xff] }
 0x76c   :  { %2471 = vmatprep.mubr.f32.mxu0 %v5941_v0  ;;  %2584 = vmatprep.mubr.f32.mxu1 %v5941_v0  ;;  %v4894_v7 = vpack.c.bf16 %v2365_v47, %v2361_v42  ;;  %v2682_v60 = vld [vmem:[#allocation8 + $0x68] sm:$0xff]  ;;  %v2684_v46 = vld [vmem:[#allocation8 + $0x78] sm:$0xff]  ;;  %v2677_v4 = vld [vmem:[#allocation8 + $0x40] sm:$0xff] }
 0x76d   :  { %v6657_v37 = vpack.c.bf16 %v2682_v60, %v2678_v54  ;;  %v2679_v47 = vld [vmem:[#allocation8 + $0x50] sm:$0xff]  ;;  %v2714_v54 = vld [vmem:[#allocation8 + $0x168] sm:$0xff] }
 0x76e   :  { %4879 = vmatpush1.bf16.msra.mxu0 %v4878_v44  ;;  %4911 = vmatpush1.bf16.msra.mxu1 %v4910_v45  ;;  %v2374_v44 = vld [vmem:[#allocation6 + $0x1a8] sm:$0xff]  ;;  %v2372_v45 = vld [vmem:[#allocation6 + $0x198] sm:$0xff] }
 0x76f   :  { %4881 = vmatprep.subr.bf16.mxu0 %v4880_v24  ;;  %4913 = vmatprep.subr.bf16.mxu1 %v4912_v27  ;;  %v4926_v24 = vpack.c.bf16 %v2367_v33, %v2363_v18  ;;  %v2369_v27 = vld [vmem:[#allocation6 + $0x180] sm:$0xff]  ;;  %v4896_v61 = vpack.c.bf16 %v2374_v44, %v2370_v48  ;;  %v4928_v14 = vpack.c.bf16 %v2376_v57, %v2372_v45  ;;  %v2686_v18 = vld [vmem:[#allocation8 + $0x88] sm:$0xff]  ;;  %v2688_v48 = vld [vmem:[#allocation8 + $0x98] sm:$0xff] }
 0x770   :  { %v4898_v21 = vpack.c.bf16 %v2373_v43, %v2369_v27  ;;  %v2690_v33 = vld [vmem:[#allocation8 + $0xa8] sm:$0xff]  ;;  %v2692_v45 = vld [vmem:[#allocation8 + $0xb8] sm:$0xff]  ;;  %v2685_v57 = vld [vmem:[#allocation8 + $0x80] sm:$0xff] }
 0x771   :  { %v6669_v44 = vpack.c.bf16 %v2690_v33, %v2686_v18  ;;  %v2687_v43 = vld [vmem:[#allocation8 + $0x90] sm:$0xff] }
 0x772   :  { %4883 = vmatpush1.bf16.msra.mxu0 %v4882_v40  ;;  %4915 = vmatpush1.bf16.msra.mxu1 %v4914_v58  ;;  %v2382_v40 = vld [vmem:[#allocation6 + $0x1e8] sm:$0xff]  ;;  %v2380_v58 = vld [vmem:[#allocation6 + $0x1d8] sm:$0xff]  ;;  %v2711_v18 = vld [vmem:[#allocation8 + $0x150] sm:$0xff] }
 0x773   :  { %4885 = vmatprep.subr.bf16.mxu0 %v4884_v56  ;;  %4917 = vmatprep.subr.bf16.mxu1 %v4916_v10  ;;  %v4930_v56 = vpack.c.bf16 %v2375_v31, %v2371_v25  ;;  %v2377_v10 = vld [vmem:[#allocation6 + $0x1c0] sm:$0xff]  ;;  %v4900_v26 = vpack.c.bf16 %v2382_v40, %v2378_v49  ;;  %v4932_v38 = vpack.c.bf16 %v2384_v20, %v2380_v58  ;;  %v2694_v25 = vld [vmem:[#allocation8 + $0xc8] sm:$0xff]  ;;  %v2696_v49 = vld [vmem:[#allocation8 + $0xd8] sm:$0xff] }
 0x774   :  { %v4902_v35 = vpack.c.bf16 %v2381_v50, %v2377_v10  ;;  %v2698_v31 = vld [vmem:[#allocation8 + $0xe8] sm:$0xff]  ;;  %v2700_v58 = vld [vmem:[#allocation8 + $0xf8] sm:$0xff]  ;;  %v2693_v20 = vld [vmem:[#allocation8 + $0xc0] sm:$0xff] }
 0x775   :  { %v6681_v40 = vpack.c.bf16 %v2698_v31, %v2694_v25  ;;  %v2702_v50 = vld [vmem:[#allocation8 + $0x108] sm:$0xff]  ;;  %v2715_v33 = vld [vmem:[#allocation8 + $0x170] sm:$0xff]  ;;  %v2724_v25 = vld [vmem:[#allocation8 + $0x1b8] sm:$0xff] }
 0x776   :  { %4887 = vmatpush1.bf16.msra.mxu0 %v4886_v17  ;;  %4919 = vmatpush1.bf16.msra.mxu1 %v4918_v36  ;;  %v4934_v17 = vpack.c.bf16 %v2383_v51, %v2379_v39  ;;  %v2669_v36 = vld [vmem:[#allocation8] sm:$0xff]  ;;  %v2706_v51 = vld [vmem:[#allocation8 + $0x128] sm:$0xff] }
 0x777   :  { %4889 = vmatprep.subr.bf16.mxu0 %v4888_v53  ;;  %4921 = vmatprep.subr.bf16.mxu1 %v4920_v22  ;;  %v2671_v53 = vld [vmem:[#allocation8 + $0x10] sm:$0xff]  ;;  %v2717_v31 = vld [vmem:[#allocation8 + $0x180] sm:$0xff] }
 0x778   :  { %v2675_v22 = vld [vmem:[#allocation8 + $0x30] sm:$0xff] }
 0x77a   :  { %4891 = vmatpush1.bf16.msra.mxu0 %v4890_v15  ;;  %4923 = vmatpush1.bf16.msra.mxu1 %v4922_v19  ;;  %v2681_v15 = vld [vmem:[#allocation8 + $0x60] sm:$0xff]  ;;  %v6659_v19 = vpack.c.bf16 %v2684_v46, %v2680_v8  ;;  %v2712_v46 = vld [vmem:[#allocation8 + $0x158] sm:$0xff] }
 0x77b   :  { %4893 = vmatprep.subr.bf16.mxu0 %v4892_v2  ;;  %4925 = vmatprep.subr.bf16.mxu1 %v4924_v16  ;;  %v6661_v42 = vpack.c.bf16 %v2681_v15, %v2677_v4  ;;  %v2683_v2 = vld [vmem:[#allocation8 + $0x70] sm:$0xff]  ;;  %v2716_v4 = vld [vmem:[#allocation8 + $0x178] sm:$0xff]  ;;  %v2709_v15 = vld [vmem:[#allocation8 + $0x140] sm:$0xff] }
 0x77c   :  { %v6664_v16 = vpack.c.bf16 %v2683_v2, %v2679_v47  ;;  %v6705_v47 = vpack.c.bf16 %v2716_v4, %v2712_v46  ;;  %v2713_v2 = vld [vmem:[#allocation8 + $0x160] sm:$0xff]  ;;  %v2731_v46 = vld [vmem:[#allocation8 + $0x1f0] sm:$0xff] }
 0x77e   :  { %4895 = vmatpush1.bf16.msra.mxu0 %v4894_v7  ;;  %4927 = vmatpush1.bf16.msra.mxu1 %v4926_v24  ;;  %v2689_v7 = vld [vmem:[#allocation8 + $0xa0] sm:$0xff]  ;;  %v6671_v24 = vpack.c.bf16 %v2692_v45, %v2688_v48  ;;  %v6708_v48 = vpack.c.bf16 %v2713_v2, %v2709_v15  ;;  %v2718_v45 = vld [vmem:[#allocation8 + $0x188] sm:$0xff] }
 0x77f   :  { %4897 = vmatprep.subr.bf16.mxu0 %v4896_v61  ;;  %4929 = vmatprep.subr.bf16.mxu1 %v4928_v14  ;;  %v6673_v27 = vpack.c.bf16 %v2689_v7, %v2685_v57  ;;  %v2691_v61 = vld [vmem:[#allocation8 + $0xb0] sm:$0xff]  ;;  %v2722_v57 = vld [vmem:[#allocation8 + $0x1a8] sm:$0xff]  ;;  %v2720_v7 = vld [vmem:[#allocation8 + $0x198] sm:$0xff] }
 0x780   :  { %v6676_v14 = vpack.c.bf16 %v2691_v61, %v2687_v43  ;;  %v6712_v43 = vpack.c.bf16 %v2715_v33, %v2711_v18  ;;  %v6714_v61 = vpack.c.bf16 %v2722_v57, %v2718_v45 }
 0x782   :  { %4899 = vmatpush1.bf16.msra.mxu0 %v4898_v21  ;;  %4931 = vmatpush1.bf16.msra.mxu1 %v4930_v56  ;;  %v2697_v21 = vld [vmem:[#allocation8 + $0xe0] sm:$0xff]  ;;  %v6683_v56 = vpack.c.bf16 %v2700_v58, %v2696_v49  ;;  %v6717_v58 = vpack.c.bf16 %v2724_v25, %v2720_v7 }
 0x783   :  { %4901 = vmatprep.subr.bf16.mxu0 %v4900_v26  ;;  %4933 = vmatprep.subr.bf16.mxu1 %v4932_v38  ;;  %v6685_v10 = vpack.c.bf16 %v2697_v21, %v2693_v20  ;;  %v2695_v26 = vld [vmem:[#allocation8 + $0xd0] sm:$0xff]  ;;  %v2721_v49 = vld [vmem:[#allocation8 + $0x1a0] sm:$0xff] }
 0x784   :  { %v2699_v38 = vld [vmem:[#allocation8 + $0xf0] sm:$0xff] }
 0x785   :  { %v6688_v39 = vpack.c.bf16 %v2699_v38, %v2695_v26  ;;  %v2719_v20 = vld [vmem:[#allocation8 + $0x190] sm:$0xff]  ;;  %v6720_v26 = vpack.c.bf16 %v2721_v49, %v2717_v31 }
 0x786   :  { %4903 = vmatpush1.bf16.msra.mxu0 %v4902_v35  ;;  %4935 = vmatpush1.bf16.msra.mxu1 %v4934_v17  ;;  %v2704_v35 = vld [vmem:[#allocation8 + $0x118] sm:$0xff]  ;;  %v2723_v21 = vld [vmem:[#allocation8 + $0x1b0] sm:$0xff] }
 0x787   :  { %v2708_v17 = vld [vmem:[#allocation8 + $0x138] sm:$0xff]  ;;  %v6724_v38 = vpack.c.bf16 %v2723_v21, %v2719_v20 }
 0x789   :  { %2472 = vmatmul.mubr.f32.vlgmr.msra.gmra.mrb[16].mxu0 %v6281_v12  ;;  %2585 = vmatmul.mubr.f32.vlgmr.msra.gmra.mrb[16].mxu1 %v6281_v12  ;;  %v2670_v12 = vld [vmem:[#allocation8 + $0x8] sm:$0xff] }
 0x78a   :  { %2477 = vmatprep.mubr.f32.mxu0 %v5941_v0  ;;  %2590 = vmatprep.mubr.f32.mxu1 %v5941_v0 }
 0x78d   :  { %2478 = vmatmul.mubr.f32.gmra.mrb[18].mxu0 %v6325_v13  ;;  %2591 = vmatmul.mubr.f32.gmra.mrb[18].mxu1 %v6325_v13  ;;  %v2674_v13 = vld [vmem:[#allocation8 + $0x28] sm:$0xff] }
 0x78e   :  { %2483 = vmatprep.mubr.f32.mxu0 %v5941_v0  ;;  %2596 = vmatprep.mubr.f32.mxu1 %v5941_v0 }
 0x791   :  { %2484 = vmatmul.mubr.f32.gmra.mrb[20].mxu0 %v6389_v55  ;;  %2597 = vmatmul.mubr.f32.gmra.mrb[20].mxu1 %v6389_v55  ;;  %v2672_v55 = vld [vmem:[#allocation8 + $0x18] sm:$0xff] }
 0x792   :  { %2489 = vmatprep.mubr.f32.mxu0 %v5941_v0  ;;  %2602 = vmatprep.mubr.f32.mxu1 %v5941_v0 }
 0x795   :  { %2490 = vmatmul.mubr.f32.gmra.mrb[22].mxu0 %v6483_v3  ;;  %2603 = vmatmul.mubr.f32.gmra.mrb[22].mxu1 %v6483_v3  ;;  %v6645_v3 = vpack.c.bf16 %v2674_v13, %v2670_v12  ;;  %v6692_v12 = vpack.c.bf16 %v2706_v51, %v2702_v50  ;;  %v6694_v13 = vpack.c.bf16 %v2708_v17, %v2704_v35  ;;  %v2726_v50 = vld [vmem:[#allocation8 + $0x1c8] sm:$0xff]  ;;  %v2728_v35 = vld [vmem:[#allocation8 + $0x1d8] sm:$0xff] }
 0x796   :  { %2495 = vmatprep.mubr.f32.mxu0 %v5941_v0  ;;  %2608 = vmatprep.mubr.f32.mxu1 %v5941_v0  ;;  %v2730_v51 = vld [vmem:[#allocation8 + $0x1e8] sm:$0xff] }
 0x797   :  { %4937 = vmatprep.subr.bf16.mxu0 %v6645_v3  ;;  %v6729_v17 = vpack.c.bf16 %v2730_v51, %v2726_v50 }
 0x799   :  { %2496 = vmatmul.mubr.f32.gmra.mrb[24].mxu0 %v6529_v52  ;;  %2609 = vmatmul.mubr.f32.gmra.mrb[24].mxu1 %v6529_v52  ;;  %v2676_v52 = vld [vmem:[#allocation8 + $0x38] sm:$0xff] }
 0x79a   :  { %2501 = vmatprep.mubr.f32.mxu0 %v5941_v0  ;;  %2614 = vmatprep.mubr.f32.mxu1 %v5941_v0  ;;  %v6647_v30 = vpack.c.bf16 %v2676_v52, %v2672_v55  ;;  %v2701_v55 = vld [vmem:[#allocation8 + $0x100] sm:$0xff] }
 0x79b   :  { %v2705_v52 = vld [vmem:[#allocation8 + $0x120] sm:$0xff] }
 0x79c   :  { %4969 = vmatprep.subr.bf16.mxu1 %v6647_v30 }
 0x79d   :  { %2502 = vmatmul.mubr.f32.gmra.mrb[26].mxu0 %v6573_v34  ;;  %2615 = vmatmul.mubr.f32.gmra.mrb[26].mxu1 %v6573_v34  ;;  %v2673_v34 = vld [vmem:[#allocation8 + $0x20] sm:$0xff] }
 0x79e   :  { %2507 = vmatprep.mubr.f32.mxu0 %v5941_v0  ;;  %2620 = vmatprep.mubr.f32.mxu1 %v5941_v0  ;;  %v6649_v41 = vpack.c.bf16 %v2673_v34, %v2669_v36  ;;  %v2703_v36 = vld [vmem:[#allocation8 + $0x110] sm:$0xff]  ;;  %v6697_v34 = vpack.c.bf16 %v2705_v52, %v2701_v55  ;;  %v2732_v55 = vld [vmem:[#allocation8 + $0x1f8] sm:$0xff]  ;;  %v2725_v52 = vld [vmem:[#allocation8 + $0x1c0] sm:$0xff] }
 0x7a0   :  { %4939 = vmatpush1.bf16.msra.mxu0 %v6649_v41 }
 0x7a1   :  { %2508 = vmatmul.mubr.f32.gmra.mrb[28].mxu0 %v6611_v59  ;;  %2621 = vmatmul.mubr.f32.gmra.mrb[28].mxu1 %v6611_v59  ;;  %v6652_v59 = vpack.c.bf16 %v2675_v22, %v2671_v53  ;;  %v2707_v53 = vld [vmem:[#allocation8 + $0x130] sm:$0xff]  ;;  %v2710_v22 = vld [vmem:[#allocation8 + $0x148] sm:$0xff] }
 0x7a2   :  { %2513 = vmatprep.mubr.f32.mxu0 %v5941_v0  ;;  %2626 = vmatprep.mubr.f32.mxu1 %v5941_v0  ;;  %v6701_v60 = vpack.c.bf16 %v2707_v53, %v2703_v36  ;;  %v6703_v8 = vpack.c.bf16 %v2714_v54, %v2710_v22  ;;  %v2729_v36 = vld [vmem:[#allocation8 + $0x1e0] sm:$0xff]  ;;  %v6731_v53 = vpack.c.bf16 %v2732_v55, %v2728_v35  ;;  %v2727_v54 = vld [vmem:[#allocation8 + $0x1d0] sm:$0xff] }
 0x7a3   :  { %4971 = vmatpush1.bf16.msra.mxu1 %v6652_v59  ;;  %4941 = vmatprep.subr.bf16.mxu0 %v6657_v37  ;;  %v6733_v22 = vpack.c.bf16 %v2729_v36, %v2725_v52  ;;  %v6736_v4 = vpack.c.bf16 %v2731_v46, %v2727_v54 }
 0x7a4   :  { %4973 = vmatprep.subr.bf16.mxu1 %v6659_v19  ;;  %4943 = vmatpush1.bf16.msra.mxu0 %v6661_v42 }
 0x7a5   :  { %4945 = vmatprep.subr.bf16.mxu0 %v6669_v44 }
 0x7a7   :  { %4975 = vmatpush1.bf16.msra.mxu1 %v6664_v16 }
 0x7a8   :  { %4977 = vmatprep.subr.bf16.mxu1 %v6671_v24  ;;  %4947 = vmatpush1.bf16.msra.mxu0 %v6673_v27 }
 0x7a9   :  { %4949 = vmatprep.subr.bf16.mxu0 %v6681_v40 }
 0x7ab   :  { %4979 = vmatpush1.bf16.msra.mxu1 %v6676_v14 }
 0x7ac   :  { %4981 = vmatprep.subr.bf16.mxu1 %v6683_v56  ;;  %4951 = vmatpush1.bf16.msra.mxu0 %v6685_v10 }
 0x7ad   :  { %4953 = vmatprep.subr.bf16.mxu0 %v6692_v12 }
 0x7af   :  { %4983 = vmatpush1.bf16.msra.mxu1 %v6688_v39 }
 0x7b0   :  { %4985 = vmatprep.subr.bf16.mxu1 %v6694_v13  ;;  %4955 = vmatpush1.bf16.msra.mxu0 %v6697_v34 }
 0x7b1   :  { %4957 = vmatprep.subr.bf16.mxu0 %v6703_v8 }
 0x7b3   :  { %4987 = vmatpush1.bf16.msra.mxu1 %v6701_v60 }
 0x7b4   :  { %4989 = vmatprep.subr.bf16.mxu1 %v6705_v47  ;;  %4959 = vmatpush1.bf16.msra.mxu0 %v6708_v48 }
 0x7b5   :  { %4961 = vmatprep.subr.bf16.mxu0 %v6714_v61 }
 0x7b7   :  { %4991 = vmatpush1.bf16.msra.mxu1 %v6712_v43 }
 0x7b8   :  { %4993 = vmatprep.subr.bf16.mxu1 %v6717_v58  ;;  %4963 = vmatpush1.bf16.msra.mxu0 %v6720_v26 }
 0x7b9   :  { %4965 = vmatprep.subr.bf16.mxu0 %v6729_v17 }
 0x7bb   :  { %4995 = vmatpush1.bf16.msra.mxu1 %v6724_v38 }
 0x7bc   :  { %4997 = vmatprep.subr.bf16.mxu1 %v6731_v53  ;;  %4967 = vmatpush1.bf16.msra.mxu0 %v6733_v22 }
 0x7bd   :  { %5001 = vmatprep.subr.bf16.mxu0 %v6645_v3 }
 0x7bf   :  { %4999 = vmatpush1.bf16.msra.mxu1 %v6736_v4 }
 0x7c0   :  { %5033 = vmatprep.subr.bf16.mxu1 %v6647_v30 }
 0x83c   :  { %v2208_v15 = vpop.f32.mrb[14].mxu0  ;;  %v2279_v2 = vpop.f32.mrb[14].mxu1 }
 0x83d   :  { %v5486_v18 = vadd.f32 %v2208_v15, %v6258_v6  ;;  %v2210_v33 = vpop.f32.mrb[15].mxu0  ;;  %v2281_v45 = vpop.f32.mrb[15].mxu1  ;;  %v5502_v20 = vadd.f32 %v2279_v2, %v6275_v32 }
 0x83e   :  { %v5487_v57 = vadd.f32 %v2210_v33, %v6262_v9  ;;  %v5503_v31 = vadd.f32 %v2281_v45, %v6269_v23 }
 0x83f   :  { %v4280_v7 = vmul.f32 -1.442695, %v5486_v18 }
 0x840   :  { %v4281_v25 = vmul.f32 -1.442695, %v5487_v57  ;;  %v4282_v49 = vmul.f32 -1.442695, %v5503_v31 }
 0x841   :  { %5722 = vpow2.f32 %v4280_v7 }
 0x842   :  { %5724 = vpow2.f32 %v4281_v25 }
 0x843   :  { %5726 = vpow2.f32 %v4282_v49 }
 0x844   :  { %5728 = vtanh.f32 %v5502_v20 }
 0x84b   :  { %v5723_v21 = vpop.eup %5722 }
 0x84c   :  { %v5725_v50 = vpop.eup %5724  ;;  %v2294_v51 = vadd.f32 1.0, %v5723_v21 }
 0x84d   :  { %v2295_v35 = vadd.f32 1.0, %v5725_v50  ;;  %v5727_v6 = vpop.eup %5726 }
 0x84e   :  { %5730 = vrcp.f32 %v2294_v51  ;;  %v5729_v55 = vpop.eup %5728  ;;  %v2304_v54 = vadd.f32 1.0, %v5727_v6 }
 0x84f   :  { %5732 = vrcp.f32 %v2295_v35 }
 0x850   :  { %5734 = vrcp.f32 %v2304_v54 }
 0x858   :  { %v5731_v9 = vpop.eup %5730 }
 0x859   :  { %v5733_v52 = vpop.eup %5732  ;;  %v2308_v36 = vmul.f32 %v5731_v9, %v5729_v55 }
 0x85a   :  { %v2307_v46 = vmul.f32 %v5733_v52, %v6608_v29  ;;  %v5735_v32 = vpop.eup %5734  ;;  %v2385_v29 = vld [vmem:[%s7129_s6] sm:$0xf] }
 0x85b   :  { %v6791_v18 = vrot.slane %v2385_v29, %v87_v1  ;;  %v6795_v33 = vrot.slane %v2385_v29, %v91_v5  ;;  %v6801_v50 = vrot.slane %v2385_v29, %v99_v11  ;;  %v6806_v5 = vrot.slane %v2385_v29, %v95_v28 }
 0x85c   :  { %v2309_v23 = vadd.f32 %v2308_v36, %v2307_v46 }
 0x85e   :  { %5736 = vtanh.f32 %v2309_v23 }
 0x868   :  { %v5737_v15 = vpop.eup %5736 }
 0x869   :  { %v2311_v2 = vmul.f32 %v5737_v15, %v5735_v32 }
 0x86b   :  { %2514 = vmatmul.mubr.f32.gmra.mrb[30].mxu0 %v2311_v2  ;;  %2627 = vmatmul.mubr.f32.gmra.mrb[30].mxu1 %v2311_v2 }
 0x86c   :  { %2797 = vmatprep.mubr.f32.mxu0 %v5941_v0  ;;  %2868 = vmatprep.mubr.f32.mxu1 %v5941_v0 }
 0x86f   :  { %2798 = vmatmul.mubr.f32.vlgmr.msra.gmra.mrb[16].mxu0 %v5941_v0  ;;  %2869 = vmatmul.mubr.f32.vlgmr.msra.gmra.mrb[16].mxu1 %v5941_v0 }
 0x870   :  { %5003 = vmatpush1.bf16.msra.mxu0 %v6649_v41  ;;  %5035 = vmatpush1.bf16.msra.mxu1 %v6652_v59 }
 0x871   :  { %5005 = vmatprep.subr.bf16.mxu0 %v6657_v37  ;;  %5037 = vmatprep.subr.bf16.mxu1 %v6659_v19 }
 0x872   :  { %2971 = vmatprep.mubr.f32.mxu0 %v5941_v0  ;;  %3042 = vmatprep.mubr.f32.mxu1 %v5941_v0 }
 0x874   :  { %5007 = vmatpush1.bf16.msra.mxu0 %v6661_v42  ;;  %5039 = vmatpush1.bf16.msra.mxu1 %v6664_v16 }
 0x875   :  { %5009 = vmatprep.subr.bf16.mxu0 %v6669_v44  ;;  %5041 = vmatprep.subr.bf16.mxu1 %v6671_v24 }
 0x878   :  { %5011 = vmatpush1.bf16.msra.mxu0 %v6673_v27  ;;  %5043 = vmatpush1.bf16.msra.mxu1 %v6676_v14 }
 0x879   :  { %5013 = vmatprep.subr.bf16.mxu0 %v6681_v40  ;;  %5045 = vmatprep.subr.bf16.mxu1 %v6683_v56 }
 0x87c   :  { %5015 = vmatpush1.bf16.msra.mxu0 %v6685_v10  ;;  %5047 = vmatpush1.bf16.msra.mxu1 %v6688_v39 }
 0x87d   :  { %5017 = vmatprep.subr.bf16.mxu0 %v6692_v12  ;;  %5049 = vmatprep.subr.bf16.mxu1 %v6694_v13 }
 0x880   :  { %5019 = vmatpush1.bf16.msra.mxu0 %v6697_v34  ;;  %5051 = vmatpush1.bf16.msra.mxu1 %v6701_v60 }
 0x881   :  { %5021 = vmatprep.subr.bf16.mxu0 %v6703_v8  ;;  %5053 = vmatprep.subr.bf16.mxu1 %v6705_v47 }
 0x884   :  { %5023 = vmatpush1.bf16.msra.mxu0 %v6708_v48  ;;  %5055 = vmatpush1.bf16.msra.mxu1 %v6712_v43 }
 0x885   :  { %5025 = vmatprep.subr.bf16.mxu0 %v6714_v61  ;;  %5057 = vmatprep.subr.bf16.mxu1 %v6717_v58 }
 0x888   :  { %5027 = vmatpush1.bf16.msra.mxu0 %v6720_v26  ;;  %5059 = vmatpush1.bf16.msra.mxu1 %v6724_v38 }
 0x889   :  { %5029 = vmatprep.subr.bf16.mxu0 %v6729_v17  ;;  %5061 = vmatprep.subr.bf16.mxu1 %v6731_v53 }
 0x88c   :  { %5031 = vmatpush1.bf16.msra.mxu0 %v6733_v22  ;;  %5063 = vmatpush1.bf16.msra.mxu1 %v6736_v4 }
 0x88d   :  { %5065 = vmatprep.subr.bf16.mxu0 %v6645_v3  ;;  %5097 = vmatprep.subr.bf16.mxu1 %v6647_v30 }
 0x942   :  { %v2799_v45 = vpop.f32.mrb[16].mxu0  ;;  %v2870_v57 = vpop.f32.mrb[16].mxu1 }
 0x943   :  { %v5504_v7 = vadd.f32 %v2799_v45, %v6791_v18  ;;  %v2801_v25 = vpop.f32.mrb[17].mxu0  ;;  %v2872_v31 = vpop.f32.mrb[17].mxu1  ;;  %v5520_v35 = vadd.f32 %v2870_v57, %v6806_v5 }
 0x944   :  { %v5505_v49 = vadd.f32 %v2801_v25, %v6795_v33  ;;  %v5521_v1 = vadd.f32 %v2872_v31, %v6801_v50 }
 0x945   :  { %v4283_v20 = vmul.f32 -1.442695, %v5504_v7 }
 0x946   :  { %v4284_v21 = vmul.f32 -1.442695, %v5505_v49  ;;  %v4285_v51 = vmul.f32 -1.442695, %v5521_v1 }
 0x947   :  { %5738 = vpow2.f32 %v4283_v20 }
 0x948   :  { %5740 = vpow2.f32 %v4284_v21 }
 0x949   :  { %5742 = vpow2.f32 %v4285_v51 }
 0x94a   :  { %5744 = vtanh.f32 %v5520_v35 }
 0x951   :  { %v5739_v6 = vpop.eup %5738 }
 0x952   :  { %v5741_v55 = vpop.eup %5740  ;;  %v2885_v9 = vadd.f32 1.0, %v5739_v6 }
 0x953   :  { %v2886_v52 = vadd.f32 1.0, %v5741_v55  ;;  %v5743_v11 = vpop.eup %5742 }
 0x954   :  { %5746 = vrcp.f32 %v2885_v9  ;;  %v5745_v36 = vpop.eup %5744  ;;  %v2895_v32 = vadd.f32 1.0, %v5743_v11 }
 0x955   :  { %5748 = vrcp.f32 %v2886_v52 }
 0x956   :  { %5750 = vrcp.f32 %v2895_v32 }
 0x95e   :  { %v5747_v54 = vpop.eup %5746 }
 0x95f   :  { %v5749_v46 = vpop.eup %5748  ;;  %v2899_v23 = vmul.f32 %v5747_v54, %v5745_v36 }
 0x960   :  { %v2898_v63 = vmul.f32 0.0, %v5749_v46  ;;  %v5751_v15 = vpop.eup %5750 }
 0x962   :  { %v6809_v28 = vadd.f32 %v2899_v23, %v2898_v63 }
 0x964   :  { %5752 = vtanh.f32 %v6809_v28 }
 0x96e   :  { %v5753_v2 = vpop.eup %5752 }
 0x96f   :  { %v2902_v29 = vmul.f32 %v5753_v2, %v5751_v15 }
 0x971   :  { %2972 = vmatmul.mubr.f32.vlgmr.msra.gmra.mrb[18].mxu0 %v2902_v29  ;;  %3043 = vmatmul.mubr.f32.vlgmr.msra.gmra.mrb[18].mxu1 %v2902_v29 }
 0x972   :  { %5067 = vmatpush1.bf16.msra.mxu0 %v6649_v41  ;;  %5099 = vmatpush1.bf16.msra.mxu1 %v6652_v59 }
 0x973   :  { %5069 = vmatprep.subr.bf16.mxu0 %v6657_v37  ;;  %5101 = vmatprep.subr.bf16.mxu1 %v6659_v19 }
 0x974   :  { %3145 = vmatprep.mubr.f32.mxu0 %v5941_v0  ;;  %3216 = vmatprep.mubr.f32.mxu1 %v5941_v0 }
 0x976   :  { %5071 = vmatpush1.bf16.msra.mxu0 %v6661_v42  ;;  %5103 = vmatpush1.bf16.msra.mxu1 %v6664_v16 }
 0x977   :  { %5073 = vmatprep.subr.bf16.mxu0 %v6669_v44  ;;  %5105 = vmatprep.subr.bf16.mxu1 %v6671_v24 }
 0x97a   :  { %5075 = vmatpush1.bf16.msra.mxu0 %v6673_v27  ;;  %5107 = vmatpush1.bf16.msra.mxu1 %v6676_v14 }
 0x97b   :  { %5077 = vmatprep.subr.bf16.mxu0 %v6681_v40  ;;  %5109 = vmatprep.subr.bf16.mxu1 %v6683_v56 }
 0x97e   :  { %5079 = vmatpush1.bf16.msra.mxu0 %v6685_v10  ;;  %5111 = vmatpush1.bf16.msra.mxu1 %v6688_v39 }
 0x97f   :  { %5081 = vmatprep.subr.bf16.mxu0 %v6692_v12  ;;  %5113 = vmatprep.subr.bf16.mxu1 %v6694_v13 }
 0x982   :  { %5083 = vmatpush1.bf16.msra.mxu0 %v6697_v34  ;;  %5115 = vmatpush1.bf16.msra.mxu1 %v6701_v60 }
 0x983   :  { %5085 = vmatprep.subr.bf16.mxu0 %v6703_v8  ;;  %5117 = vmatprep.subr.bf16.mxu1 %v6705_v47 }
 0x986   :  { %5087 = vmatpush1.bf16.msra.mxu0 %v6708_v48  ;;  %5119 = vmatpush1.bf16.msra.mxu1 %v6712_v43 }
 0x987   :  { %5089 = vmatprep.subr.bf16.mxu0 %v6714_v61  ;;  %5121 = vmatprep.subr.bf16.mxu1 %v6717_v58 }
 0x98a   :  { %5091 = vmatpush1.bf16.msra.mxu0 %v6720_v26  ;;  %5123 = vmatpush1.bf16.msra.mxu1 %v6724_v38 }
 0x98b   :  { %5093 = vmatprep.subr.bf16.mxu0 %v6729_v17  ;;  %5125 = vmatprep.subr.bf16.mxu1 %v6731_v53 }
 0x98e   :  { %5095 = vmatpush1.bf16.msra.mxu0 %v6733_v22  ;;  %5127 = vmatpush1.bf16.msra.mxu1 %v6736_v4 }
 0x98f   :  { %5129 = vmatprep.subr.bf16.mxu0 %v6645_v3  ;;  %5161 = vmatprep.subr.bf16.mxu1 %v6647_v30 }
 0xa44   :  { %v2973_v45 = vpop.f32.mrb[18].mxu0  ;;  %v3044_v57 = vpop.f32.mrb[18].mxu1 }
 0xa45   :  { %v5506_v7 = vadd.f32 %v2973_v45, %v6791_v18  ;;  %v2975_v25 = vpop.f32.mrb[19].mxu0  ;;  %v3046_v31 = vpop.f32.mrb[19].mxu1  ;;  %v5522_v35 = vadd.f32 %v3044_v57, %v6806_v5 }
 0xa46   :  { %v5507_v49 = vadd.f32 %v2975_v25, %v6795_v33  ;;  %v5523_v1 = vadd.f32 %v3046_v31, %v6801_v50 }
 0xa47   :  { %v4286_v20 = vmul.f32 -1.442695, %v5506_v7 }
 0xa48   :  { %v4287_v21 = vmul.f32 -1.442695, %v5507_v49  ;;  %v4288_v51 = vmul.f32 -1.442695, %v5523_v1 }
 0xa49   :  { %5754 = vpow2.f32 %v4286_v20 }
 0xa4a   :  { %5756 = vpow2.f32 %v4287_v21 }
 0xa4b   :  { %5758 = vpow2.f32 %v4288_v51 }
 0xa4c   :  { %5760 = vtanh.f32 %v5522_v35 }
 0xa53   :  { %v5755_v6 = vpop.eup %5754 }
 0xa54   :  { %v5757_v55 = vpop.eup %5756  ;;  %v3059_v9 = vadd.f32 1.0, %v5755_v6 }
 0xa55   :  { %v3060_v52 = vadd.f32 1.0, %v5757_v55  ;;  %v5759_v11 = vpop.eup %5758 }
 0xa56   :  { %5762 = vrcp.f32 %v3059_v9  ;;  %v5761_v36 = vpop.eup %5760  ;;  %v3069_v32 = vadd.f32 1.0, %v5759_v11 }
 0xa57   :  { %5764 = vrcp.f32 %v3060_v52 }
 0xa58   :  { %5766 = vrcp.f32 %v3069_v32 }
 0xa60   :  { %v5763_v54 = vpop.eup %5762 }
 0xa61   :  { %v5765_v46 = vpop.eup %5764  ;;  %v3073_v23 = vmul.f32 %v5763_v54, %v5761_v36 }
 0xa62   :  { %v3072_v63 = vmul.f32 %v5765_v46, %v6809_v28  ;;  %v5767_v2 = vpop.eup %5766 }
 0xa64   :  { %v6851_v15 = vadd.f32 %v3073_v23, %v3072_v63 }
 0xa66   :  { %5768 = vtanh.f32 %v6851_v15 }
 0xa70   :  { %v5769_v29 = vpop.eup %5768 }
 0xa71   :  { %v3076_v45 = vmul.f32 %v5769_v29, %v5767_v2 }
 0xa73   :  { %3146 = vmatmul.mubr.f32.vlgmr.msra.gmra.mrb[20].mxu0 %v3076_v45  ;;  %3217 = vmatmul.mubr.f32.vlgmr.msra.gmra.mrb[20].mxu1 %v3076_v45 }
 0xa74   :  { %5131 = vmatpush1.bf16.msra.mxu0 %v6649_v41  ;;  %5163 = vmatpush1.bf16.msra.mxu1 %v6652_v59 }
 0xa75   :  { %5133 = vmatprep.subr.bf16.mxu0 %v6657_v37  ;;  %5165 = vmatprep.subr.bf16.mxu1 %v6659_v19 }
 0xa76   :  { %3319 = vmatprep.mubr.f32.mxu0 %v5941_v0  ;;  %3390 = vmatprep.mubr.f32.mxu1 %v5941_v0 }
 0xa78   :  { %5135 = vmatpush1.bf16.msra.mxu0 %v6661_v42  ;;  %5167 = vmatpush1.bf16.msra.mxu1 %v6664_v16 }
 0xa79   :  { %5137 = vmatprep.subr.bf16.mxu0 %v6669_v44  ;;  %5169 = vmatprep.subr.bf16.mxu1 %v6671_v24 }
 0xa7c   :  { %5139 = vmatpush1.bf16.msra.mxu0 %v6673_v27  ;;  %5171 = vmatpush1.bf16.msra.mxu1 %v6676_v14 }
 0xa7d   :  { %5141 = vmatprep.subr.bf16.mxu0 %v6681_v40  ;;  %5173 = vmatprep.subr.bf16.mxu1 %v6683_v56 }
 0xa80   :  { %5143 = vmatpush1.bf16.msra.mxu0 %v6685_v10  ;;  %5175 = vmatpush1.bf16.msra.mxu1 %v6688_v39 }
 0xa81   :  { %5145 = vmatprep.subr.bf16.mxu0 %v6692_v12  ;;  %5177 = vmatprep.subr.bf16.mxu1 %v6694_v13 }
 0xa84   :  { %5147 = vmatpush1.bf16.msra.mxu0 %v6697_v34  ;;  %5179 = vmatpush1.bf16.msra.mxu1 %v6701_v60 }
 0xa85   :  { %5149 = vmatprep.subr.bf16.mxu0 %v6703_v8  ;;  %5181 = vmatprep.subr.bf16.mxu1 %v6705_v47 }
 0xa88   :  { %5151 = vmatpush1.bf16.msra.mxu0 %v6708_v48  ;;  %5183 = vmatpush1.bf16.msra.mxu1 %v6712_v43 }
 0xa89   :  { %5153 = vmatprep.subr.bf16.mxu0 %v6714_v61  ;;  %5185 = vmatprep.subr.bf16.mxu1 %v6717_v58 }
 0xa8c   :  { %5155 = vmatpush1.bf16.msra.mxu0 %v6720_v26  ;;  %5187 = vmatpush1.bf16.msra.mxu1 %v6724_v38 }
 0xa8d   :  { %5157 = vmatprep.subr.bf16.mxu0 %v6729_v17  ;;  %5189 = vmatprep.subr.bf16.mxu1 %v6731_v53 }
 0xa90   :  { %5159 = vmatpush1.bf16.msra.mxu0 %v6733_v22  ;;  %5191 = vmatpush1.bf16.msra.mxu1 %v6736_v4 }
 0xa91   :  { %5193 = vmatprep.subr.bf16.mxu0 %v6645_v3  ;;  %5225 = vmatprep.subr.bf16.mxu1 %v6647_v30 }
 0xb46   :  { %v3147_v28 = vpop.f32.mrb[20].mxu0  ;;  %v3218_v57 = vpop.f32.mrb[20].mxu1 }
 0xb47   :  { %v5508_v7 = vadd.f32 %v3147_v28, %v6791_v18  ;;  %v3149_v25 = vpop.f32.mrb[21].mxu0  ;;  %v3220_v31 = vpop.f32.mrb[21].mxu1  ;;  %v5524_v35 = vadd.f32 %v3218_v57, %v6806_v5 }
 0xb48   :  { %v5509_v49 = vadd.f32 %v3149_v25, %v6795_v33  ;;  %v5525_v1 = vadd.f32 %v3220_v31, %v6801_v50 }
 0xb49   :  { %v4289_v20 = vmul.f32 -1.442695, %v5508_v7 }
 0xb4a   :  { %v4290_v21 = vmul.f32 -1.442695, %v5509_v49  ;;  %v4291_v51 = vmul.f32 -1.442695, %v5525_v1 }
 0xb4b   :  { %5770 = vpow2.f32 %v4289_v20 }
 0xb4c   :  { %5772 = vpow2.f32 %v4290_v21 }
 0xb4d   :  { %5774 = vpow2.f32 %v4291_v51 }
 0xb4e   :  { %5776 = vtanh.f32 %v5524_v35 }
 0xb55   :  { %v5771_v6 = vpop.eup %5770 }
 0xb56   :  { %v5773_v55 = vpop.eup %5772  ;;  %v3233_v9 = vadd.f32 1.0, %v5771_v6 }
 0xb57   :  { %v3234_v52 = vadd.f32 1.0, %v5773_v55  ;;  %v5775_v11 = vpop.eup %5774 }
 0xb58   :  { %5778 = vrcp.f32 %v3233_v9  ;;  %v5777_v36 = vpop.eup %5776  ;;  %v3243_v32 = vadd.f32 1.0, %v5775_v11 }
 0xb59   :  { %5780 = vrcp.f32 %v3234_v52 }
 0xb5a   :  { %5782 = vrcp.f32 %v3243_v32 }
 0xb62   :  { %v5779_v54 = vpop.eup %5778 }
 0xb63   :  { %v5781_v46 = vpop.eup %5780  ;;  %v3247_v23 = vmul.f32 %v5779_v54, %v5777_v36 }
 0xb64   :  { %v3246_v63 = vmul.f32 %v5781_v46, %v6851_v15  ;;  %v5783_v29 = vpop.eup %5782 }
 0xb66   :  { %v6893_v2 = vadd.f32 %v3247_v23, %v3246_v63 }
 0xb68   :  { %5784 = vtanh.f32 %v6893_v2 }
 0xb72   :  { %v5785_v45 = vpop.eup %5784 }
 0xb73   :  { %v3250_v28 = vmul.f32 %v5785_v45, %v5783_v29 }
 0xb75   :  { %3320 = vmatmul.mubr.f32.vlgmr.msra.gmra.mrb[22].mxu0 %v3250_v28  ;;  %3391 = vmatmul.mubr.f32.vlgmr.msra.gmra.mrb[22].mxu1 %v3250_v28 }
 0xb76   :  { %5195 = vmatpush1.bf16.msra.mxu0 %v6649_v41  ;;  %5227 = vmatpush1.bf16.msra.mxu1 %v6652_v59 }
 0xb77   :  { %5197 = vmatprep.subr.bf16.mxu0 %v6657_v37  ;;  %5229 = vmatprep.subr.bf16.mxu1 %v6659_v19 }
 0xb78   :  { %3493 = vmatprep.mubr.f32.mxu0 %v5941_v0  ;;  %3564 = vmatprep.mubr.f32.mxu1 %v5941_v0 }
 0xb7a   :  { %5199 = vmatpush1.bf16.msra.mxu0 %v6661_v42  ;;  %5231 = vmatpush1.bf16.msra.mxu1 %v6664_v16 }
 0xb7b   :  { %5201 = vmatprep.subr.bf16.mxu0 %v6669_v44  ;;  %5233 = vmatprep.subr.bf16.mxu1 %v6671_v24 }
 0xb7e   :  { %5203 = vmatpush1.bf16.msra.mxu0 %v6673_v27  ;;  %5235 = vmatpush1.bf16.msra.mxu1 %v6676_v14 }
 0xb7f   :  { %5205 = vmatprep.subr.bf16.mxu0 %v6681_v40  ;;  %5237 = vmatprep.subr.bf16.mxu1 %v6683_v56 }
 0xb82   :  { %5207 = vmatpush1.bf16.msra.mxu0 %v6685_v10  ;;  %5239 = vmatpush1.bf16.msra.mxu1 %v6688_v39 }
 0xb83   :  { %5209 = vmatprep.subr.bf16.mxu0 %v6692_v12  ;;  %5241 = vmatprep.subr.bf16.mxu1 %v6694_v13 }
 0xb86   :  { %5211 = vmatpush1.bf16.msra.mxu0 %v6697_v34  ;;  %5243 = vmatpush1.bf16.msra.mxu1 %v6701_v60 }
 0xb87   :  { %5213 = vmatprep.subr.bf16.mxu0 %v6703_v8  ;;  %5245 = vmatprep.subr.bf16.mxu1 %v6705_v47 }
 0xb8a   :  { %5215 = vmatpush1.bf16.msra.mxu0 %v6708_v48  ;;  %5247 = vmatpush1.bf16.msra.mxu1 %v6712_v43 }
 0xb8b   :  { %5217 = vmatprep.subr.bf16.mxu0 %v6714_v61  ;;  %5249 = vmatprep.subr.bf16.mxu1 %v6717_v58 }
 0xb8e   :  { %5219 = vmatpush1.bf16.msra.mxu0 %v6720_v26  ;;  %5251 = vmatpush1.bf16.msra.mxu1 %v6724_v38 }
 0xb8f   :  { %5221 = vmatprep.subr.bf16.mxu0 %v6729_v17  ;;  %5253 = vmatprep.subr.bf16.mxu1 %v6731_v53 }
 0xb92   :  { %5223 = vmatpush1.bf16.msra.mxu0 %v6733_v22  ;;  %5255 = vmatpush1.bf16.msra.mxu1 %v6736_v4 }
 0xb93   :  { %5257 = vmatprep.subr.bf16.mxu0 %v6645_v3  ;;  %5289 = vmatprep.subr.bf16.mxu1 %v6647_v30 }
 0xc48   :  { %v3321_v15 = vpop.f32.mrb[22].mxu0  ;;  %v3392_v57 = vpop.f32.mrb[22].mxu1 }
 0xc49   :  { %v5510_v7 = vadd.f32 %v3321_v15, %v6791_v18  ;;  %v3323_v25 = vpop.f32.mrb[23].mxu0  ;;  %v3394_v31 = vpop.f32.mrb[23].mxu1  ;;  %v5526_v35 = vadd.f32 %v3392_v57, %v6806_v5 }
 0xc4a   :  { %v5511_v49 = vadd.f32 %v3323_v25, %v6795_v33  ;;  %v5527_v1 = vadd.f32 %v3394_v31, %v6801_v50 }
 0xc4b   :  { %v4292_v20 = vmul.f32 -1.442695, %v5510_v7 }
 0xc4c   :  { %v4293_v21 = vmul.f32 -1.442695, %v5511_v49  ;;  %v4294_v51 = vmul.f32 -1.442695, %v5527_v1 }
 0xc4d   :  { %5786 = vpow2.f32 %v4292_v20 }
 0xc4e   :  { %5788 = vpow2.f32 %v4293_v21 }
 0xc4f   :  { %5790 = vpow2.f32 %v4294_v51 }
 0xc50   :  { %5792 = vtanh.f32 %v5526_v35 }
 0xc57   :  { %v5787_v6 = vpop.eup %5786 }
 0xc58   :  { %v5789_v55 = vpop.eup %5788  ;;  %v3407_v9 = vadd.f32 1.0, %v5787_v6 }
 0xc59   :  { %v3408_v52 = vadd.f32 1.0, %v5789_v55  ;;  %v5791_v11 = vpop.eup %5790 }
 0xc5a   :  { %5794 = vrcp.f32 %v3407_v9  ;;  %v5793_v36 = vpop.eup %5792  ;;  %v3417_v32 = vadd.f32 1.0, %v5791_v11 }
 0xc5b   :  { %5796 = vrcp.f32 %v3408_v52 }
 0xc5c   :  { %5798 = vrcp.f32 %v3417_v32 }
 0xc64   :  { %v5795_v54 = vpop.eup %5794 }
 0xc65   :  { %v5797_v46 = vpop.eup %5796  ;;  %v3421_v23 = vmul.f32 %v5795_v54, %v5793_v36 }
 0xc66   :  { %v3420_v63 = vmul.f32 %v5797_v46, %v6893_v2  ;;  %v5799_v45 = vpop.eup %5798 }
 0xc68   :  { %v6935_v29 = vadd.f32 %v3421_v23, %v3420_v63 }
 0xc6a   :  { %5800 = vtanh.f32 %v6935_v29 }
 0xc74   :  { %v5801_v28 = vpop.eup %5800 }
 0xc75   :  { %v3424_v15 = vmul.f32 %v5801_v28, %v5799_v45 }
 0xc77   :  { %3494 = vmatmul.mubr.f32.vlgmr.msra.gmra.mrb[24].mxu0 %v3424_v15  ;;  %3565 = vmatmul.mubr.f32.vlgmr.msra.gmra.mrb[24].mxu1 %v3424_v15 }
 0xc78   :  { %5259 = vmatpush1.bf16.msra.mxu0 %v6649_v41  ;;  %5291 = vmatpush1.bf16.msra.mxu1 %v6652_v59 }
 0xc79   :  { %5261 = vmatprep.subr.bf16.mxu0 %v6657_v37  ;;  %5293 = vmatprep.subr.bf16.mxu1 %v6659_v19 }
 0xc7a   :  { %3667 = vmatprep.mubr.f32.mxu0 %v5941_v0  ;;  %3738 = vmatprep.mubr.f32.mxu1 %v5941_v0 }
 0xc7c   :  { %5263 = vmatpush1.bf16.msra.mxu0 %v6661_v42  ;;  %5295 = vmatpush1.bf16.msra.mxu1 %v6664_v16 }
 0xc7d   :  { %5265 = vmatprep.subr.bf16.mxu0 %v6669_v44  ;;  %5297 = vmatprep.subr.bf16.mxu1 %v6671_v24 }
 0xc80   :  { %5267 = vmatpush1.bf16.msra.mxu0 %v6673_v27  ;;  %5299 = vmatpush1.bf16.msra.mxu1 %v6676_v14 }
 0xc81   :  { %5269 = vmatprep.subr.bf16.mxu0 %v6681_v40  ;;  %5301 = vmatprep.subr.bf16.mxu1 %v6683_v56 }
 0xc84   :  { %5271 = vmatpush1.bf16.msra.mxu0 %v6685_v10  ;;  %5303 = vmatpush1.bf16.msra.mxu1 %v6688_v39 }
 0xc85   :  { %5273 = vmatprep.subr.bf16.mxu0 %v6692_v12  ;;  %5305 = vmatprep.subr.bf16.mxu1 %v6694_v13 }
 0xc88   :  { %5275 = vmatpush1.bf16.msra.mxu0 %v6697_v34  ;;  %5307 = vmatpush1.bf16.msra.mxu1 %v6701_v60 }
 0xc89   :  { %5277 = vmatprep.subr.bf16.mxu0 %v6703_v8  ;;  %5309 = vmatprep.subr.bf16.mxu1 %v6705_v47 }
 0xc8c   :  { %5279 = vmatpush1.bf16.msra.mxu0 %v6708_v48  ;;  %5311 = vmatpush1.bf16.msra.mxu1 %v6712_v43 }
 0xc8d   :  { %5281 = vmatprep.subr.bf16.mxu0 %v6714_v61  ;;  %5313 = vmatprep.subr.bf16.mxu1 %v6717_v58 }
 0xc90   :  { %5283 = vmatpush1.bf16.msra.mxu0 %v6720_v26  ;;  %5315 = vmatpush1.bf16.msra.mxu1 %v6724_v38 }
 0xc91   :  { %5285 = vmatprep.subr.bf16.mxu0 %v6729_v17  ;;  %5317 = vmatprep.subr.bf16.mxu1 %v6731_v53 }
 0xc94   :  { %5287 = vmatpush1.bf16.msra.mxu0 %v6733_v22  ;;  %5319 = vmatpush1.bf16.msra.mxu1 %v6736_v4 }
 0xc95   :  { %5321 = vmatprep.subr.bf16.mxu0 %v6645_v3  ;;  %5353 = vmatprep.subr.bf16.mxu1 %v6647_v30 }
 0xd4a   :  { %v3495_v2 = vpop.f32.mrb[24].mxu0  ;;  %v3566_v57 = vpop.f32.mrb[24].mxu1 }
 0xd4b   :  { %v5512_v7 = vadd.f32 %v3495_v2, %v6791_v18  ;;  %v3497_v25 = vpop.f32.mrb[25].mxu0  ;;  %v3568_v31 = vpop.f32.mrb[25].mxu1  ;;  %v5528_v35 = vadd.f32 %v3566_v57, %v6806_v5 }
 0xd4c   :  { %v5513_v49 = vadd.f32 %v3497_v25, %v6795_v33  ;;  %v5529_v1 = vadd.f32 %v3568_v31, %v6801_v50 }
 0xd4d   :  { %v4295_v20 = vmul.f32 -1.442695, %v5512_v7 }
 0xd4e   :  { %v4296_v21 = vmul.f32 -1.442695, %v5513_v49  ;;  %v4297_v51 = vmul.f32 -1.442695, %v5529_v1 }
 0xd4f   :  { %5802 = vpow2.f32 %v4295_v20 }
 0xd50   :  { %5804 = vpow2.f32 %v4296_v21 }
 0xd51   :  { %5806 = vpow2.f32 %v4297_v51 }
 0xd52   :  { %5808 = vtanh.f32 %v5528_v35 }
 0xd59   :  { %v5803_v6 = vpop.eup %5802 }
 0xd5a   :  { %v5805_v55 = vpop.eup %5804  ;;  %v3581_v9 = vadd.f32 1.0, %v5803_v6 }
 0xd5b   :  { %v3582_v52 = vadd.f32 1.0, %v5805_v55  ;;  %v5807_v11 = vpop.eup %5806 }
 0xd5c   :  { %5810 = vrcp.f32 %v3581_v9  ;;  %v5809_v36 = vpop.eup %5808  ;;  %v3591_v32 = vadd.f32 1.0, %v5807_v11 }
 0xd5d   :  { %5812 = vrcp.f32 %v3582_v52 }
 0xd5e   :  { %5814 = vrcp.f32 %v3591_v32 }
 0xd66   :  { %v5811_v54 = vpop.eup %5810 }
 0xd67   :  { %v5813_v46 = vpop.eup %5812  ;;  %v3595_v23 = vmul.f32 %v5811_v54, %v5809_v36 }
 0xd68   :  { %v3594_v63 = vmul.f32 %v5813_v46, %v6935_v29  ;;  %v5815_v28 = vpop.eup %5814 }
 0xd6a   :  { %v6977_v45 = vadd.f32 %v3595_v23, %v3594_v63 }
 0xd6c   :  { %5816 = vtanh.f32 %v6977_v45 }
 0xd76   :  { %v5817_v15 = vpop.eup %5816 }
 0xd77   :  { %v3598_v2 = vmul.f32 %v5817_v15, %v5815_v28 }
 0xd79   :  { %3668 = vmatmul.mubr.f32.vlgmr.msra.gmra.mrb[26].mxu0 %v3598_v2  ;;  %3739 = vmatmul.mubr.f32.vlgmr.msra.gmra.mrb[26].mxu1 %v3598_v2  ;;  %v4124_v2 = vld [vmem:[%s7130_s7 + $0x18] sm:$0xff] }
 0xd7a   :  { %5323 = vmatpush1.bf16.msra.mxu0 %v6649_v41  ;;  %5355 = vmatpush1.bf16.msra.mxu1 %v6652_v59 }
 0xd7b   :  { %5325 = vmatprep.subr.bf16.mxu0 %v6657_v37  ;;  %5357 = vmatprep.subr.bf16.mxu1 %v6659_v19 }
 0xd7c   :  { %3841 = vmatprep.mubr.f32.mxu0 %v5941_v0  ;;  %3912 = vmatprep.mubr.f32.mxu1 %v5941_v0 }
 0xd7e   :  { %5327 = vmatpush1.bf16.msra.mxu0 %v6661_v42  ;;  %5359 = vmatpush1.bf16.msra.mxu1 %v6664_v16 }
 0xd7f   :  { %5329 = vmatprep.subr.bf16.mxu0 %v6669_v44  ;;  %5361 = vmatprep.subr.bf16.mxu1 %v6671_v24 }
 0xd82   :  { %5331 = vmatpush1.bf16.msra.mxu0 %v6673_v27  ;;  %5363 = vmatpush1.bf16.msra.mxu1 %v6676_v14 }
 0xd83   :  { %5333 = vmatprep.subr.bf16.mxu0 %v6681_v40  ;;  %5365 = vmatprep.subr.bf16.mxu1 %v6683_v56 }
 0xd86   :  { %5335 = vmatpush1.bf16.msra.mxu0 %v6685_v10  ;;  %5367 = vmatpush1.bf16.msra.mxu1 %v6688_v39 }
 0xd87   :  { %5337 = vmatprep.subr.bf16.mxu0 %v6692_v12  ;;  %5369 = vmatprep.subr.bf16.mxu1 %v6694_v13 }
 0xd8a   :  { %5339 = vmatpush1.bf16.msra.mxu0 %v6697_v34  ;;  %5371 = vmatpush1.bf16.msra.mxu1 %v6701_v60 }
 0xd8b   :  { %5341 = vmatprep.subr.bf16.mxu0 %v6703_v8  ;;  %5373 = vmatprep.subr.bf16.mxu1 %v6705_v47 }
 0xd8e   :  { %5343 = vmatpush1.bf16.msra.mxu0 %v6708_v48  ;;  %5375 = vmatpush1.bf16.msra.mxu1 %v6712_v43 }
 0xd8f   :  { %5345 = vmatprep.subr.bf16.mxu0 %v6714_v61  ;;  %5377 = vmatprep.subr.bf16.mxu1 %v6717_v58 }
 0xd92   :  { %5347 = vmatpush1.bf16.msra.mxu0 %v6720_v26  ;;  %5379 = vmatpush1.bf16.msra.mxu1 %v6724_v38 }
 0xd93   :  { %5349 = vmatprep.subr.bf16.mxu0 %v6729_v17  ;;  %5381 = vmatprep.subr.bf16.mxu1 %v6731_v53 }
 0xd96   :  { %5351 = vmatpush1.bf16.msra.mxu0 %v6733_v22  ;;  %5383 = vmatpush1.bf16.msra.mxu1 %v6736_v4 }
 0xd97   :  { %5385 = vmatprep.subr.bf16.mxu0 %v6645_v3  ;;  %5417 = vmatprep.subr.bf16.mxu1 %v6647_v30 }
 0xe4c   :  { %v3669_v29 = vpop.f32.mrb[26].mxu0  ;;  %v3740_v57 = vpop.f32.mrb[26].mxu1 }
 0xe4d   :  { %v5514_v7 = vadd.f32 %v3669_v29, %v6791_v18  ;;  %v3671_v25 = vpop.f32.mrb[27].mxu0  ;;  %v3742_v31 = vpop.f32.mrb[27].mxu1  ;;  %v5530_v35 = vadd.f32 %v3740_v57, %v6806_v5  ;;  %v4125_v57 = vld [vmem:[%s7130_s7 + $0x20] sm:$0xff] }
 0xe4e   :  { %v5515_v49 = vadd.f32 %v3671_v25, %v6795_v33  ;;  %v5531_v1 = vadd.f32 %v3742_v31, %v6801_v50  ;;  %v4127_v31 = vld [vmem:[%s7130_s7 + $0x30] sm:$0xff] }
 0xe4f   :  { %v4298_v20 = vmul.f32 -1.442695, %v5514_v7  ;;  %v4126_v7 = vld [vmem:[%s7130_s7 + $0x28] sm:$0xff] }
 0xe50   :  { %v4299_v21 = vmul.f32 -1.442695, %v5515_v49  ;;  %v4300_v51 = vmul.f32 -1.442695, %v5531_v1  ;;  %v5455_v25 = vpack.c.bf16 %v4126_v7, %v4125_v57  ;;  %v4128_v49 = vld [vmem:[%s7130_s7 + $0x38] sm:$0xff]  ;;  %v4130_v1 = vld [vmem:[%s7130_s7 + $0x48] sm:$0xff] }
 0xe51   :  { %5818 = vpow2.f32 %v4298_v20  ;;  %v5458_v20 = vpack.c.bf16 %v4128_v49, %v4127_v31 }
 0xe52   :  { %5820 = vpow2.f32 %v4299_v21  ;;  %v4129_v21 = vld [vmem:[%s7130_s7 + $0x40] sm:$0xff] }
 0xe53   :  { %5822 = vpow2.f32 %v4300_v51  ;;  %v5461_v51 = vpack.c.bf16 %v4130_v1, %v4129_v21 }
 0xe54   :  { %5824 = vtanh.f32 %v5530_v35  ;;  %v4131_v35 = vld [vmem:[%s7130_s7 + $0x50] sm:$0xff] }
 0xe5b   :  { %v5819_v3 = vpop.eup %5818 }
 0xe5c   :  { %v5821_v6 = vpop.eup %5820  ;;  %v3755_v30 = vadd.f32 1.0, %v5819_v3  ;;  %v4132_v3 = vld [vmem:[%s7130_s7 + $0x58] sm:$0xff] }
 0xe5d   :  { %v3756_v55 = vadd.f32 1.0, %v5821_v6  ;;  %v5823_v9 = vpop.eup %5822  ;;  %v4133_v6 = vld [vmem:[%s7130_s7 + $0x60] sm:$0xff] }
 0xe5e   :  { %5826 = vrcp.f32 %v3755_v30  ;;  %v5825_v52 = vpop.eup %5824  ;;  %v3765_v46 = vadd.f32 1.0, %v5823_v9  ;;  %v5464_v30 = vpack.c.bf16 %v4132_v3, %v4131_v35 }
 0xe5f   :  { %5828 = vrcp.f32 %v3756_v55  ;;  %v4134_v55 = vld [vmem:[%s7130_s7 + $0x68] sm:$0xff] }
 0xe60   :  { %5830 = vrcp.f32 %v3765_v46  ;;  %v5467_v9 = vpack.c.bf16 %v4134_v55, %v4133_v6 }
 0xe68   :  { %v5827_v11 = vpop.eup %5826 }
 0xe69   :  { %v5829_v36 = vpop.eup %5828  ;;  %v3769_v54 = vmul.f32 %v5827_v11, %v5825_v52  ;;  %v4135_v52 = vld [vmem:[%s7130_s7 + $0x70] sm:$0xff]  ;;  %v4136_v11 = vld [vmem:[%s7130_s7 + $0x78] sm:$0xff] }
 0xe6a   :  { %v3768_v23 = vmul.f32 %v5829_v36, %v6977_v45  ;;  %v5831_v63 = vpop.eup %5830  ;;  %v4123_v45 = vld [vmem:[%s7130_s7 + $0x10] sm:$0xff]  ;;  %v5470_v36 = vpack.c.bf16 %v4136_v11, %v4135_v52 }
 0xe6b   :  { %v5452_v29 = vpack.c.bf16 %v4124_v2, %v4123_v45 }
 0xe6c   :  { %v7019_v32 = vadd.f32 %v3769_v54, %v3768_v23 }
 0xe6e   :  { %5832 = vtanh.f32 %v7019_v32 }
 0xe78   :  { %v5833_v28 = vpop.eup %5832 }
 0xe79   :  { %v3772_v15 = vmul.f32 %v5833_v28, %v5831_v63 }
 0xe7b   :  { %3842 = vmatmul.mubr.f32.vlgmr.msra.gmra.mrb[28].mxu0 %v3772_v15  ;;  %3913 = vmatmul.mubr.f32.vlgmr.msra.gmra.mrb[28].mxu1 %v3772_v15 }
 0xe7c   :  { %5387 = vmatpush1.bf16.msra.mxu0 %v6649_v41  ;;  %5419 = vmatpush1.bf16.msra.mxu1 %v6652_v59 }
 0xe7d   :  { %5389 = vmatprep.subr.bf16.mxu0 %v6657_v37  ;;  %5421 = vmatprep.subr.bf16.mxu1 %v6659_v19 }
 0xe7e   :  { %4015 = vmatprep.mubr.f32.mxu0 %v5941_v0  ;;  %4086 = vmatprep.mubr.f32.mxu1 %v5941_v0 }
 0xe80   :  { %5391 = vmatpush1.bf16.msra.mxu0 %v6661_v42  ;;  %5423 = vmatpush1.bf16.msra.mxu1 %v6664_v16 }
 0xe81   :  { %5393 = vmatprep.subr.bf16.mxu0 %v6669_v44  ;;  %5425 = vmatprep.subr.bf16.mxu1 %v6671_v24 }
 0xe84   :  { %5395 = vmatpush1.bf16.msra.mxu0 %v6673_v27  ;;  %5427 = vmatpush1.bf16.msra.mxu1 %v6676_v14 }
 0xe85   :  { %5397 = vmatprep.subr.bf16.mxu0 %v6681_v40  ;;  %5429 = vmatprep.subr.bf16.mxu1 %v6683_v56 }
 0xe88   :  { %5399 = vmatpush1.bf16.msra.mxu0 %v6685_v10  ;;  %5431 = vmatpush1.bf16.msra.mxu1 %v6688_v39 }
 0xe89   :  { %5401 = vmatprep.subr.bf16.mxu0 %v6692_v12  ;;  %5433 = vmatprep.subr.bf16.mxu1 %v6694_v13 }
 0xe8c   :  { %5403 = vmatpush1.bf16.msra.mxu0 %v6697_v34  ;;  %5435 = vmatpush1.bf16.msra.mxu1 %v6701_v60 }
 0xe8d   :  { %5405 = vmatprep.subr.bf16.mxu0 %v6703_v8  ;;  %5437 = vmatprep.subr.bf16.mxu1 %v6705_v47 }
 0xe90   :  { %5407 = vmatpush1.bf16.msra.mxu0 %v6708_v48  ;;  %5439 = vmatpush1.bf16.msra.mxu1 %v6712_v43 }
 0xe91   :  { %5409 = vmatprep.subr.bf16.mxu0 %v6714_v61  ;;  %5441 = vmatprep.subr.bf16.mxu1 %v6717_v58 }
 0xe94   :  { %5411 = vmatpush1.bf16.msra.mxu0 %v6720_v26  ;;  %5443 = vmatpush1.bf16.msra.mxu1 %v6724_v38 }
 0xe95   :  { %5413 = vmatprep.subr.bf16.mxu0 %v6729_v17  ;;  %5445 = vmatprep.subr.bf16.mxu1 %v6731_v53  ;;  %v4121_v17 = vld [vmem:[%s7130_s7] sm:$0xff]  ;;  %v4122_v53 = vld [vmem:[%s7130_s7 + $0x8] sm:$0xff] }
 0xe98   :  { %5415 = vmatpush1.bf16.msra.mxu0 %v6733_v22  ;;  %5447 = vmatpush1.bf16.msra.mxu1 %v6736_v4  ;;  %v5449_v22 = vpack.c.bf16 %v4122_v53, %v4121_v17  ;;  %v5942_v4 = vmov 0.0|0.0  }
 0xe99   :  { %5448 = vmatprep.subr.bf16.mxu0 %v5942_v4 }
 0xf4e   :  { %v3843_v41 = vpop.f32.mrb[28].mxu0  ;;  %v3914_v59 = vpop.f32.mrb[28].mxu1 }
 0xf4f   :  { %v5516_v37 = vadd.f32 %v3843_v41, %v6791_v18  ;;  %v3845_v19 = vpop.f32.mrb[29].mxu0  ;;  %v3916_v42 = vpop.f32.mrb[29].mxu1  ;;  %v5532_v40 = vadd.f32 %v3914_v59, %v6806_v5 }
 0xf50   :  { %v5517_v16 = vadd.f32 %v3845_v19, %v6795_v33  ;;  %v5533_v27 = vadd.f32 %v3916_v42, %v6801_v50 }
 0xf51   :  { %v4301_v44 = vmul.f32 -1.442695, %v5516_v37 }
 0xf52   :  { %v4302_v24 = vmul.f32 -1.442695, %v5517_v16  ;;  %v4303_v14 = vmul.f32 -1.442695, %v5533_v27 }
 0xf53   :  { %5834 = vpow2.f32 %v4301_v44 }
 0xf54   :  { %5836 = vpow2.f32 %v4302_v24 }
 0xf55   :  { %5838 = vpow2.f32 %v4303_v14 }
 0xf56   :  { %5840 = vtanh.f32 %v5532_v40 }
 0xf5d   :  { %v5835_v56 = vpop.eup %5834 }
 0xf5e   :  { %v5837_v10 = vpop.eup %5836  ;;  %v3929_v39 = vadd.f32 1.0, %v5835_v56 }
 0xf5f   :  { %v3930_v12 = vadd.f32 1.0, %v5837_v10  ;;  %v5839_v13 = vpop.eup %5838 }
 0xf60   :  { %5842 = vrcp.f32 %v3929_v39  ;;  %v5841_v34 = vpop.eup %5840  ;;  %v3939_v48 = vadd.f32 1.0, %v5839_v13  ;;  %v4307_v13 = vld [vmem:[%s7131_s8] ss:$0 sm:$0xff] }
 0xf61   :  { %5844 = vrcp.f32 %v3930_v12  ;;  %v4215_v12 = vand.u32 127, %v85_v62 }
 0xf62   :  { %5846 = vrcp.f32 %v3939_v48 }
 0xf6a   :  { %v5843_v60 = vpop.eup %5842 }
 0xf6b   :  { %v5845_v8 = vpop.eup %5844  ;;  %v3943_v47 = vmul.f32 %v5843_v60, %v5841_v34  ;;  %v4220_v34 = vand.u32 3, %v4215_v12 }
 0xf6c   :  { %v3942_v43 = vmul.f32 %v5845_v8, %v7019_v32  ;;  %v5847_v58 = vpop.eup %5846 }
 0xf6d   :  { %vm4228_vm3 = vcmp.eq.s32.totalorder %v4220_v34, 3 }
 0xf6e   :  { %v7059_v61 = vadd.f32 %v3943_v47, %v3942_v43 }
 0xf70   :  { %5848 = vtanh.f32 %v7059_v61 }
 0xf7a   :  { %v5849_v26 = vpop.eup %5848 }
 0xf7b   :  { %v3946_v38 = vmul.f32 %v5849_v26, %v5847_v58 }
 0xf7d   :  { %4016 = vmatmul.mubr.f32.vlgmr.msra.gmra.mrb[30].mxu0 %v3946_v38  ;;  %4087 = vmatmul.mubr.f32.vlgmr.msra.gmra.mrb[30].mxu1 %v3946_v38 }
 0xf7e   :  { %5450 = vmatpush3.bf16.msra.mxu0 %v5449_v22  ;;  %4357 = vmatprep.mubr.msk.f32.mxu0 %vm5943_vm2, %v5941_v0 }
 0xf7f   :  { %5451 = vmatprep.subr.bf16.mxu0 %v5942_v4 }
 0xf82   :  { %5453 = vmatpush3.bf16.msra.mxu0 %v5452_v29 }
 0xf83   :  { %5454 = vmatprep.subr.bf16.mxu0 %v5942_v4 }
 0xf86   :  { %5456 = vmatpush3.bf16.msra.mxu0 %v5455_v25 }
 0xf87   :  { %5457 = vmatprep.subr.bf16.mxu0 %v5942_v4 }
 0xf8a   :  { %5459 = vmatpush3.bf16.msra.mxu0 %v5458_v20 }
 0xf8b   :  { %5460 = vmatprep.subr.bf16.mxu0 %v5942_v4 }
 0xf8e   :  { %5462 = vmatpush3.bf16.msra.mxu0 %v5461_v51 }
 0xf8f   :  { %5463 = vmatprep.subr.bf16.mxu0 %v5942_v4 }
 0xf92   :  { %5465 = vmatpush3.bf16.msra.mxu0 %v5464_v30 }
 0xf93   :  { %5466 = vmatprep.subr.bf16.mxu0 %v5942_v4 }
 0xf96   :  { %5468 = vmatpush3.bf16.msra.mxu0 %v5467_v9 }
 0xf97   :  { %5469 = vmatprep.subr.bf16.mxu0 %v5942_v4 }
 0xf9a   :  { %5471 = vmatpush3.bf16.msra.mxu0 %v5470_v36 }
0x1050   :  { %v4017_v54 = vpop.f32.mrb[30].mxu0  ;;  %v4088_v46 = vpop.f32.mrb[30].mxu1 }
0x1051   :  { %v5518_v23 = vadd.f32 %v4017_v54, %v6791_v18  ;;  %v4019_v0 = vpop.f32.mrb[31].mxu0  ;;  %v4090_v32 = vpop.f32.mrb[31].mxu1  ;;  %v5534_v37 = vadd.f32 %v4088_v46, %v6806_v5 }
0x1052   :  { %v5519_v63 = vadd.f32 %v4019_v0, %v6795_v33  ;;  %v5535_v41 = vadd.f32 %v4090_v32, %v6801_v50 }
0x1053   :  { %v4304_v28 = vmul.f32 -1.442695, %v5518_v23 }
0x1054   :  { %v4305_v15 = vmul.f32 -1.442695, %v5519_v63  ;;  %v4306_v59 = vmul.f32 -1.442695, %v5535_v41 }
0x1055   :  { %5850 = vpow2.f32 %v4304_v28 }
0x1056   :  { %5852 = vpow2.f32 %v4305_v15 }
0x1057   :  { %5854 = vpow2.f32 %v4306_v59 }
0x1058   :  { %5856 = vtanh.f32 %v5534_v37 }
0x105f   :  { %v5851_v19 = vpop.eup %5850 }
0x1060   :  { %v5853_v42 = vpop.eup %5852  ;;  %v4103_v16 = vadd.f32 1.0, %v5851_v19 }
0x1061   :  { %v4104_v44 = vadd.f32 1.0, %v5853_v42  ;;  %v5855_v18 = vpop.eup %5854 }
0x1062   :  { %5858 = vrcp.f32 %v4103_v16  ;;  %v5857_v24 = vpop.eup %5856  ;;  %v4113_v40 = vadd.f32 1.0, %v5855_v18 }
0x1063   :  { %5860 = vrcp.f32 %v4104_v44 }
0x1064   :  { %5862 = vrcp.f32 %v4113_v40 }
0x106c   :  { %v5859_v33 = vpop.eup %5858 }
0x106d   :  { %v5861_v27 = vpop.eup %5860  ;;  %v4117_v14 = vmul.f32 %v5859_v33, %v5857_v24 }
0x106e   :  { %v4116_v56 = vmul.f32 %v5861_v27, %v7059_v61  ;;  %v5863_v5 = vpop.eup %5862 }
0x1070   :  { %v4118_v50 = vadd.f32 %v4117_v14, %v4116_v56 }
0x1072   :  { %5864 = vtanh.f32 %v4118_v50 }
0x107c   :  { %v5865_v10 = vpop.eup %5864 }
0x107d   :  { %v4120_v39 = vmul.f32 %v5865_v10, %v5863_v5 }
0x107f   :  { %4358 = vmatmul.mubr.f32.vlgmr.msra.gmra.mrb[32].mxu0 %v4120_v39 }
0x1152   :  { %v4210_v60 = vpop.f32.mrb[32].mxu0 }
0x1153   :  { %v4211_v8 = vadd.f32 %v4307_v13, %v4210_v60  ;;  %v4359_v47 = vpop.f32.mrb[33].mxu0 }
0x1155   :  { %v4229_v48 = vmax.f32 %v4211_v8, 0.0 }
0x1157   :  { %v4230_v43 = vsel %vm4228_vm3, %v4229_v48, %v4211_v8 }
0x1158   :  { %4232 = vst.msk [vmem:[%s7132_s9] sm:$0xff] %vm4231_vm4, %v4230_v43 }
0x1159   :  { %4237 = vsyncpa [#allocation5], 1 }
0x115a   :  { %4238 = vsyncpa [#allocation7], 1 }

</bundles_post_ra>
